<compile_context>
chip_gen: v7x
topology: tpu7x:2x2x1
jax: 0.10.0
libtpu: 0.0.40
codegen_flags: <defaults>
</compile_context>

<pallas_src>
import jax
import jax.numpy as jnp
import numpy as np
from jax.experimental import pallas as pl
from jax.experimental.pallas import tpu as pltpu


def _sigmoid(x):
    # 1 EUP op (tanh) instead of exp + reciprocal.
    return 0.5 * jnp.tanh(0.5 * x) + 0.5


def _lstm_kernel(gx_ref, x_ref, u_ref,
                 seq_ref, hf_ref, cf_ref,
                 h_sc):
    """One grid step processes a chunk of Tc timesteps.

    gx_ref : (Tc, B, 4*Hp) precomputed x @ W + bias (gate-block lane-padded)
    x_ref  : (Tc, B, Hp)   lane-padded inputs (needed for c = f*x + i*g)
    u_ref  : (Hp, 4*Hp)    recurrent weights (resident)
    seq_ref: (Tc, B, Hp)   hidden-state sequence chunk
    hf_ref, cf_ref : (B, Hp) final states
    h_sc   : (B, Hp) f32   hidden-state carry across chunks
    """
    chunk = pl.program_id(0)
    Hp = h_sc.shape[-1]
    Tc = gx_ref.shape[0]

    @pl.when(chunk == 0)
    def _():
        h_sc[...] = jnp.zeros_like(h_sc)
        hf_ref[...] = jnp.zeros_like(hf_ref)
        cf_ref[...] = jnp.zeros_like(cf_ref)

    u = u_ref[...]                                            # (Hp, 4Hp)

    def step(s, carry):
        h, _ = carry
        gates = (gx_ref[s].astype(jnp.float32)
                 + jnp.dot(h, u, preferred_element_type=jnp.float32))  # (B, 4Hp)
        # lane-aligned gate slices (Hp is a multiple of 128)
        i_t = _sigmoid(gates[:, 0 * Hp:1 * Hp])
        f_t = _sigmoid(gates[:, 1 * Hp:2 * Hp])
        g_t = jnp.tanh(gates[:, 2 * Hp:3 * Hp])
        o_t = _sigmoid(gates[:, 3 * Hp:4 * Hp])

        # Training-mode cell update (matches the PyTorch forward default):
        c_new = f_t * x_ref[s].astype(jnp.float32) + i_t * g_t
        h_new = o_t * jnp.tanh(c_new)

        seq_ref[s] = h_new.astype(seq_ref.dtype)
        return h_new, c_new

    init = (h_sc[...], jnp.zeros_like(h_sc[...]))
    h_last, c_last = jax.lax.fori_loop(0, Tc, step, init, unroll=True)
    h_sc[...] = h_last

    @pl.when(chunk == pl.num_programs(0) - 1)
    def _():
        hf_ref[...] = h_last.astype(hf_ref.dtype)
        cf_ref[...] = c_last.astype(cf_ref.dtype)


def _largest_divisor_at_most(n, target):
    tc = max(1, min(target, n))
    while n % tc:
        tc -= 1
    return tc


def motion_lstm_forward(x, W, U, bias, *, time_chunk=16, lane=128):
    """x: (B, D, T) float32.  Returns (hidden_seq (B,H,T), (h_T, c_T))."""
    B, D, T = x.shape
    H4 = W.shape[1]
    H = H4 // 4
    assert D == H, "training-mode cell update requires input_size == hidden_size"

    Hp = ((H + lane - 1) // lane) * lane          # lane-aligned hidden width
    Tc = _largest_divisor_at_most(T, time_chunk)  # time chunk dividing T
    n_chunks = T // Tc

    f32 = jnp.float32

    # ---- host-side (XLA) preprocessing -------------------------------------
    # time-major, lane-padded input: (T, B, Hp)
    x_tbd = jnp.transpose(x, (2, 0, 1)).astype(f32)
    x_pad = jnp.pad(x_tbd, ((0, 0), (0, 0), (0, Hp - D)))

    def pad_gate_cols(M):
        # (rows, 4H) -> (rows, 4Hp): each gate block starts on a lane boundary.
        rows = M.shape[0]
        Mg = M.reshape(rows, 4, H)
        Mg = jnp.pad(Mg, ((0, 0), (0, 0), (0, Hp - H)))
        return Mg.reshape(rows, 4 * Hp)

    W_pad = jnp.pad(pad_gate_cols(W.astype(f32)), ((0, Hp - D), (0, 0)))   # (Hp, 4Hp)
    U_pad = jnp.pad(pad_gate_cols(U.astype(f32)), ((0, Hp - H), (0, 0)))   # (Hp, 4Hp)
    b_pad = pad_gate_cols(bias.astype(f32).reshape(1, 4 * H))              # (1, 4Hp)

    # Hoisted input projection: one big matmul over T*B rows instead of T tiny ones.
    gates_x = jnp.einsum('tbd,dg->tbg', x_pad, W_pad) + b_pad              # (T, B, 4Hp)

    # ---- Pallas recurrence over time chunks --------------------------------
    grid_spec = pltpu.PrefetchScalarGridSpec(
        num_scalar_prefetch=0,
        grid=(n_chunks,),
        in_specs=[
            pl.BlockSpec((Tc, B, 4 * Hp), lambda c: (c, 0, 0)),  # gates_x chunk
            pl.BlockSpec((Tc, B, Hp), lambda c: (c, 0, 0)),      # x chunk
            pl.BlockSpec((Hp, 4 * Hp), lambda c: (0, 0)),        # U (resident)
        ],
        out_specs=[
            pl.BlockSpec((Tc, B, Hp), lambda c: (c, 0, 0)),      # hidden_seq chunk
            pl.BlockSpec((B, Hp), lambda c: (0, 0)),             # final h
            pl.BlockSpec((B, Hp), lambda c: (0, 0)),             # final c
        ],
        scratch_shapes=[
            pltpu.VMEM((B, Hp), jnp.float32),                    # h carry
        ],
    )

    seq_tbh, h_T, c_T = pl.pallas_call(
        _lstm_kernel,
        out_shape=(
            jax.ShapeDtypeStruct((T, B, Hp), x.dtype),
            jax.ShapeDtypeStruct((B, Hp), x.dtype),
            jax.ShapeDtypeStruct((B, Hp), x.dtype),
        ),
        grid_spec=grid_spec,
        compiler_params=pltpu.CompilerParams(
            dimension_semantics=("arbitrary",),                  # sequential recurrence
        ),
    )(gates_x, x_pad, U_pad)

    hidden_seq = jnp.transpose(seq_tbh[:, :, :H], (1, 2, 0))     # (B, H, T)
    return hidden_seq, (h_T[:, :H], c_T[:, :H])


def motion_lstm_reference(x, W, U, bias):
    """Pure-JAX reference mirroring the PyTorch loop (training mode)."""
    B, D, T = x.shape
    H = W.shape[1] // 4
    h = jnp.zeros((B, H), jnp.float32)
    c = jnp.zeros((B, H), jnp.float32)
    outs = []
    for t in range(T):
        x_t = x[:, :, t]
        gates = x_t @ W + h @ U + bias
        i = jax.nn.sigmoid(gates[:, :H])
        f = jax.nn.sigmoid(gates[:, H:2 * H])
        g = jnp.tanh(gates[:, 2 * H:3 * H])
        o = jax.nn.sigmoid(gates[:, 3 * H:])
        c = f * x_t + i * g
        h = o * jnp.tanh(c)
        outs.append(h[:, :, None])
    return jnp.concatenate(outs, axis=2), (h, c)


if __name__ == "__main__":
    # Small deterministic setup: input_size == hidden_size (required by the
    # module's training-mode cell update f_t * x_t).
    B, H, T = 8, 32, 64
    D = H

    key = jax.random.PRNGKey(0)
    kx, kw, ku, kb = jax.random.split(key, 4)

    stdv = 1.0 / (H ** 0.5)
    W = jax.random.uniform(kw, (D, 4 * H), jnp.float32, -stdv, stdv)
    U = jax.random.uniform(ku, (H, 4 * H), jnp.float32, -stdv, stdv)
    bias = jax.random.uniform(kb, (4 * H,), jnp.float32, -stdv, stdv)
    x = jax.random.normal(kx, (B, D, T), jnp.float32)

    hidden_seq, (h_T, c_T) = motion_lstm_forward(x, W, U, bias, time_chunk=16)
    jax.block_until_ready((hidden_seq, h_T, c_T))

    ref_seq, (ref_h, ref_c) = motion_lstm_reference(x, W, U, bias)
    assert np.allclose(np.asarray(hidden_seq), np.asarray(ref_seq), atol=1e-4, rtol=1e-4)
    assert np.allclose(np.asarray(h_T), np.asarray(ref_h), atol=1e-4, rtol=1e-4)
    assert np.allclose(np.asarray(c_T), np.asarray(ref_c), atol=1e-4, rtol=1e-4)

    print("KERNEL_OK")
</pallas_src>

<mosaic_0001>
module attributes {stable_mosaic.version = 11 : i64} {
  func.func @_lstm_kernel(%arg0: i32, %arg1: memref<16x8x512xf32, #tpu.memory_space<vmem>>, %arg2: memref<16x8x128xf32, #tpu.memory_space<vmem>>, %arg3: memref<128x512xf32, #tpu.memory_space<vmem>>, %arg4: memref<16x8x128xf32, #tpu.memory_space<vmem>>, %arg5: memref<8x128xf32, #tpu.memory_space<vmem>>, %arg6: memref<8x128xf32, #tpu.memory_space<vmem>>, %arg7: memref<8x128xf32, #tpu.memory_space<vmem>>) attributes {dimension_semantics = [#tpu.dimension_semantics<arbitrary>], iteration_bounds = array<i64: 4>, scalar_prefetch = 0 : i64, scratch_operands = 1 : i64, tpu.core_type = #tpu.core_type<tc>, window_params = [{transform_indices = @transform_0, window_bounds = array<i64: 16, 8, 512>}, {transform_indices = @transform_1, window_bounds = array<i64: 16, 8, 128>}, {pipeline_mode = #tpu.pipeline_mode<synchronous>, transform_indices = @transform_2, window_bounds = array<i64: 128, 512>}, {transform_indices = @transform_3, window_bounds = array<i64: 16, 8, 128>}, {pipeline_mode = #tpu.pipeline_mode<synchronous>, transform_indices = @transform_4, window_bounds = array<i64: 8, 128>}, {pipeline_mode = #tpu.pipeline_mode<synchronous>, transform_indices = @transform_5, window_bounds = array<i64: 8, 128>}]} {
    %c0_i32 = arith.constant 0 : i32
    %0 = arith.cmpi eq, %arg0, %c0_i32 : i32
    %1 = arith.extui %0 : i1 to i32
    %c0_i32_0 = arith.constant 0 : i32
    %2 = arith.cmpi ne, %1, %c0_i32_0 : i32
    scf.if %2 {
      %cst_265 = arith.constant 0.000000e+00 : f32
      %698 = vector.broadcast %cst_265 : f32 to vector<8x128xf32>
      %c0_266 = arith.constant 0 : index
      %c0_267 = arith.constant 0 : index
      %699 = vector.load %arg7[%c0_266, %c0_267] : memref<8x128xf32, #tpu.memory_space<vmem>>, vector<8x128xf32>
      tpu.vector_store %arg7[%c0_266, %c0_267], %698 {strides = array<i32>} : memref<8x128xf32, #tpu.memory_space<vmem>>, vector<8x128xf32>,
      %cst_268 = arith.constant 0.000000e+00 : f32
      %700 = vector.broadcast %cst_268 : f32 to vector<8x128xf32>
      %c0_269 = arith.constant 0 : index
      %c0_270 = arith.constant 0 : index
      %701 = vector.load %arg5[%c0_269, %c0_270] : memref<8x128xf32, #tpu.memory_space<vmem>>, vector<8x128xf32>
      tpu.vector_store %arg5[%c0_269, %c0_270], %700 {strides = array<i32>} : memref<8x128xf32, #tpu.memory_space<vmem>>, vector<8x128xf32>,
      %cst_271 = arith.constant 0.000000e+00 : f32
      %702 = vector.broadcast %cst_271 : f32 to vector<8x128xf32>
      %c0_272 = arith.constant 0 : index
      %c0_273 = arith.constant 0 : index
      %703 = vector.load %arg6[%c0_272, %c0_273] : memref<8x128xf32, #tpu.memory_space<vmem>>, vector<8x128xf32>
      tpu.vector_store %arg6[%c0_272, %c0_273], %702 {strides = array<i32>} : memref<8x128xf32, #tpu.memory_space<vmem>>, vector<8x128xf32>,
    } else {
    }
    %c0 = arith.constant 0 : index
    %c0_1 = arith.constant 0 : index
    %3 = vector.load %arg3[%c0, %c0_1] : memref<128x512xf32, #tpu.memory_space<vmem>>, vector<128x512xf32>
    %c0_2 = arith.constant 0 : index
    %c0_3 = arith.constant 0 : index
    %4 = vector.load %arg7[%c0_2, %c0_3] : memref<8x128xf32, #tpu.memory_space<vmem>>, vector<8x128xf32>
    %cst = arith.constant 0.000000e+00 : f32
    %5 = vector.broadcast %cst : f32 to vector<8x128xf32>
    %c0_i32_4 = arith.constant 0 : i32
    %6 = arith.index_cast %c0_i32_4 : i32 to index
    %c0_5 = arith.constant 0 : index
    %c0_6 = arith.constant 0 : index
    %7 = vector.load %arg1[%6, %c0_5, %c0_6] : memref<16x8x512xf32, #tpu.memory_space<vmem>>, vector<1x8x512xf32>
    %8 = vector.shape_cast %7 : vector<1x8x512xf32> to vector<8x512xf32>
    %cst_7 = arith.constant dense<0.000000e+00> : vector<8x512xf32>
    %9 = tpu.matmul %4, %3, %cst_7 {dimension_numbers = #tpu.dot_dimension_numbers<[1], [0], [0], [1], [0, 0, 1, 1], [], []>} : vector<8x128xf32>, vector<128x512xf32>, vector<8x512xf32> -> vector<8x512xf32>
    %10 = arith.addf %8, %9 : vector<8x512xf32>
    %11 = vector.extract_strided_slice %10 {offsets = [0, 0], sizes = [8, 128], strides = [1, 1]} : vector<8x512xf32> to vector<8x128xf32>
    %cst_8 = arith.constant 5.000000e-01 : f32
    %12 = vector.broadcast %cst_8 : f32 to vector<8x128xf32>
    %13 = arith.mulf %12, %11 : vector<8x128xf32>
    %14 = math.tanh %13 : vector<8x128xf32>
    %cst_9 = arith.constant 5.000000e-01 : f32
    %15 = vector.broadcast %cst_9 : f32 to vector<8x128xf32>
    %16 = arith.mulf %15, %14 : vector<8x128xf32>
    %cst_10 = arith.constant 5.000000e-01 : f32
    %17 = vector.broadcast %cst_10 : f32 to vector<8x128xf32>
    %18 = arith.addf %16, %17 : vector<8x128xf32>
    %19 = vector.extract_strided_slice %10 {offsets = [0, 128], sizes = [8, 128], strides = [1, 1]} : vector<8x512xf32> to vector<8x128xf32>
    %cst_11 = arith.constant 5.000000e-01 : f32
    %20 = vector.broadcast %cst_11 : f32 to vector<8x128xf32>
    %21 = arith.mulf %20, %19 : vector<8x128xf32>
    %22 = math.tanh %21 : vector<8x128xf32>
    %cst_12 = arith.constant 5.000000e-01 : f32
    %23 = vector.broadcast %cst_12 : f32 to vector<8x128xf32>
    %24 = arith.mulf %23, %22 : vector<8x128xf32>
    %cst_13 = arith.constant 5.000000e-01 : f32
    %25 = vector.broadcast %cst_13 : f32 to vector<8x128xf32>
    %26 = arith.addf %24, %25 : vector<8x128xf32>
    %27 = vector.extract_strided_slice %10 {offsets = [0, 256], sizes = [8, 128], strides = [1, 1]} : vector<8x512xf32> to vector<8x128xf32>
    %28 = math.tanh %27 : vector<8x128xf32>
    %29 = vector.extract_strided_slice %10 {offsets = [0, 384], sizes = [8, 128], strides = [1, 1]} : vector<8x512xf32> to vector<8x128xf32>
    %cst_14 = arith.constant 5.000000e-01 : f32
    %30 = vector.broadcast %cst_14 : f32 to vector<8x128xf32>
    %31 = arith.mulf %30, %29 : vector<8x128xf32>
    %32 = math.tanh %31 : vector<8x128xf32>
    %cst_15 = arith.constant 5.000000e-01 : f32
    %33 = vector.broadcast %cst_15 : f32 to vector<8x128xf32>
    %34 = arith.mulf %33, %32 : vector<8x128xf32>
    %cst_16 = arith.constant 5.000000e-01 : f32
    %35 = vector.broadcast %cst_16 : f32 to vector<8x128xf32>
    %36 = arith.addf %34, %35 : vector<8x128xf32>
    %37 = arith.index_cast %c0_i32_4 : i32 to index
    %c0_17 = arith.constant 0 : index
    %c0_18 = arith.constant 0 : index
    %38 = vector.load %arg2[%37, %c0_17, %c0_18] : memref<16x8x128xf32, #tpu.memory_space<vmem>>, vector<1x8x128xf32>
    %39 = vector.shape_cast %38 : vector<1x8x128xf32> to vector<8x128xf32>
    %40 = arith.mulf %26, %39 : vector<8x128xf32>
    %41 = arith.mulf %18, %28 : vector<8x128xf32>
    %42 = arith.addf %40, %41 : vector<8x128xf32>
    %43 = math.tanh %42 : vector<8x128xf32>
    %44 = arith.mulf %36, %43 : vector<8x128xf32>
    %45 = arith.index_cast %c0_i32_4 : i32 to index
    %c0_19 = arith.constant 0 : index
    %c0_20 = arith.constant 0 : index
    %46 = vector.load %arg4[%45, %c0_19, %c0_20] : memref<16x8x128xf32, #tpu.memory_space<vmem>>, vector<1x8x128xf32>
    %47 = vector.shape_cast %46 : vector<1x8x128xf32> to vector<8x128xf32>
    %48 = vector.shape_cast %44 : vector<8x128xf32> to vector<1x8x128xf32>
    tpu.vector_store %arg4[%45, %c0_19, %c0_20], %48 {strides = array<i32>} : memref<16x8x128xf32, #tpu.memory_space<vmem>>, vector<1x8x128xf32>,
    %c1_i32 = arith.constant 1 : i32
    %49 = arith.index_cast %c1_i32 : i32 to index
    %c0_21 = arith.constant 0 : index
    %c0_22 = arith.constant 0 : index
    %50 = vector.load %arg1[%49, %c0_21, %c0_22] : memref<16x8x512xf32, #tpu.memory_space<vmem>>, vector<1x8x512xf32>
    %51 = vector.shape_cast %50 : vector<1x8x512xf32> to vector<8x512xf32>
    %cst_23 = arith.constant dense<0.000000e+00> : vector<8x512xf32>
    %52 = tpu.matmul %44, %3, %cst_23 {dimension_numbers = #tpu.dot_dimension_numbers<[1], [0], [0], [1], [0, 0, 1, 1], [], []>} : vector<8x128xf32>, vector<128x512xf32>, vector<8x512xf32> -> vector<8x512xf32>
    %53 = arith.addf %51, %52 : vector<8x512xf32>
    %54 = vector.extract_strided_slice %53 {offsets = [0, 0], sizes = [8, 128], strides = [1, 1]} : vector<8x512xf32> to vector<8x128xf32>
    %cst_24 = arith.constant 5.000000e-01 : f32
    %55 = vector.broadcast %cst_24 : f32 to vector<8x128xf32>
    %56 = arith.mulf %55, %54 : vector<8x128xf32>
    %57 = math.tanh %56 : vector<8x128xf32>
    %cst_25 = arith.constant 5.000000e-01 : f32
    %58 = vector.broadcast %cst_25 : f32 to vector<8x128xf32>
    %59 = arith.mulf %58, %57 : vector<8x128xf32>
    %cst_26 = arith.constant 5.000000e-01 : f32
    %60 = vector.broadcast %cst_26 : f32 to vector<8x128xf32>
    %61 = arith.addf %59, %60 : vector<8x128xf32>
    %62 = vector.extract_strided_slice %53 {offsets = [0, 128], sizes = [8, 128], strides = [1, 1]} : vector<8x512xf32> to vector<8x128xf32>
    %cst_27 = arith.constant 5.000000e-01 : f32
    %63 = vector.broadcast %cst_27 : f32 to vector<8x128xf32>
    %64 = arith.mulf %63, %62 : vector<8x128xf32>
    %65 = math.tanh %64 : vector<8x128xf32>
    %cst_28 = arith.constant 5.000000e-01 : f32
    %66 = vector.broadcast %cst_28 : f32 to vector<8x128xf32>
    %67 = arith.mulf %66, %65 : vector<8x128xf32>
    %cst_29 = arith.constant 5.000000e-01 : f32
    %68 = vector.broadcast %cst_29 : f32 to vector<8x128xf32>
    %69 = arith.addf %67, %68 : vector<8x128xf32>
    %70 = vector.extract_strided_slice %53 {offsets = [0, 256], sizes = [8, 128], strides = [1, 1]} : vector<8x512xf32> to vector<8x128xf32>
    %71 = math.tanh %70 : vector<8x128xf32>
    %72 = vector.extract_strided_slice %53 {offsets = [0, 384], sizes = [8, 128], strides = [1, 1]} : vector<8x512xf32> to vector<8x128xf32>
    %cst_30 = arith.constant 5.000000e-01 : f32
    %73 = vector.broadcast %cst_30 : f32 to vector<8x128xf32>
    %74 = arith.mulf %73, %72 : vector<8x128xf32>
    %75 = math.tanh %74 : vector<8x128xf32>
    %cst_31 = arith.constant 5.000000e-01 : f32
    %76 = vector.broadcast %cst_31 : f32 to vector<8x128xf32>
    %77 = arith.mulf %76, %75 : vector<8x128xf32>
    %cst_32 = arith.constant 5.000000e-01 : f32
    %78 = vector.broadcast %cst_32 : f32 to vector<8x128xf32>
    %79 = arith.addf %77, %78 : vector<8x128xf32>
    %80 = arith.index_cast %c1_i32 : i32 to index
    %c0_33 = arith.constant 0 : index
    %c0_34 = arith.constant 0 : index
    %81 = vector.load %arg2[%80, %c0_33, %c0_34] : memref<16x8x128xf32, #tpu.memory_space<vmem>>, vector<1x8x128xf32>
    %82 = vector.shape_cast %81 : vector<1x8x128xf32> to vector<8x128xf32>
    %83 = arith.mulf %69, %82 : vector<8x128xf32>
    %84 = arith.mulf %61, %71 : vector<8x128xf32>
    %85 = arith.addf %83, %84 : vector<8x128xf32>
    %86 = math.tanh %85 : vector<8x128xf32>
    %87 = arith.mulf %79, %86 : vector<8x128xf32>
    %88 = arith.index_cast %c1_i32 : i32 to index
    %c0_35 = arith.constant 0 : index
    %c0_36 = arith.constant 0 : index
    %89 = vector.load %arg4[%88, %c0_35, %c0_36] : memref<16x8x128xf32, #tpu.memory_space<vmem>>, vector<1x8x128xf32>
    %90 = vector.shape_cast %89 : vector<1x8x128xf32> to vector<8x128xf32>
    %91 = vector.shape_cast %87 : vector<8x128xf32> to vector<1x8x128xf32>
    tpu.vector_store %arg4[%88, %c0_35, %c0_36], %91 {strides = array<i32>} : memref<16x8x128xf32, #tpu.memory_space<vmem>>, vector<1x8x128xf32>,
    %c2_i32 = arith.constant 2 : i32
    %92 = arith.index_cast %c2_i32 : i32 to index
    %c0_37 = arith.constant 0 : index
    %c0_38 = arith.constant 0 : index
    %93 = vector.load %arg1[%92, %c0_37, %c0_38] : memref<16x8x512xf32, #tpu.memory_space<vmem>>, vector<1x8x512xf32>
    %94 = vector.shape_cast %93 : vector<1x8x512xf32> to vector<8x512xf32>
    %cst_39 = arith.constant dense<0.000000e+00> : vector<8x512xf32>
    %95 = tpu.matmul %87, %3, %cst_39 {dimension_numbers = #tpu.dot_dimension_numbers<[1], [0], [0], [1], [0, 0, 1, 1], [], []>} : vector<8x128xf32>, vector<128x512xf32>, vector<8x512xf32> -> vector<8x512xf32>
    %96 = arith.addf %94, %95 : vector<8x512xf32>
    %97 = vector.extract_strided_slice %96 {offsets = [0, 0], sizes = [8, 128], strides = [1, 1]} : vector<8x512xf32> to vector<8x128xf32>
    %cst_40 = arith.constant 5.000000e-01 : f32
    %98 = vector.broadcast %cst_40 : f32 to vector<8x128xf32>
    %99 = arith.mulf %98, %97 : vector<8x128xf32>
    %100 = math.tanh %99 : vector<8x128xf32>
    %cst_41 = arith.constant 5.000000e-01 : f32
    %101 = vector.broadcast %cst_41 : f32 to vector<8x128xf32>
    %102 = arith.mulf %101, %100 : vector<8x128xf32>
    %cst_42 = arith.constant 5.000000e-01 : f32
    %103 = vector.broadcast %cst_42 : f32 to vector<8x128xf32>
    %104 = arith.addf %102, %103 : vector<8x128xf32>
    %105 = vector.extract_strided_slice %96 {offsets = [0, 128], sizes = [8, 128], strides = [1, 1]} : vector<8x512xf32> to vector<8x128xf32>
    %cst_43 = arith.constant 5.000000e-01 : f32
    %106 = vector.broadcast %cst_43 : f32 to vector<8x128xf32>
    %107 = arith.mulf %106, %105 : vector<8x128xf32>
    %108 = math.tanh %107 : vector<8x128xf32>
    %cst_44 = arith.constant 5.000000e-01 : f32
    %109 = vector.broadcast %cst_44 : f32 to vector<8x128xf32>
    %110 = arith.mulf %109, %108 : vector<8x128xf32>
    %cst_45 = arith.constant 5.000000e-01 : f32
    %111 = vector.broadcast %cst_45 : f32 to vector<8x128xf32>
    %112 = arith.addf %110, %111 : vector<8x128xf32>
    %113 = vector.extract_strided_slice %96 {offsets = [0, 256], sizes = [8, 128], strides = [1, 1]} : vector<8x512xf32> to vector<8x128xf32>
    %114 = math.tanh %113 : vector<8x128xf32>
    %115 = vector.extract_strided_slice %96 {offsets = [0, 384], sizes = [8, 128], strides = [1, 1]} : vector<8x512xf32> to vector<8x128xf32>
    %cst_46 = arith.constant 5.000000e-01 : f32
    %116 = vector.broadcast %cst_46 : f32 to vector<8x128xf32>
    %117 = arith.mulf %116, %115 : vector<8x128xf32>
    %118 = math.tanh %117 : vector<8x128xf32>
    %cst_47 = arith.constant 5.000000e-01 : f32
    %119 = vector.broadcast %cst_47 : f32 to vector<8x128xf32>
    %120 = arith.mulf %119, %118 : vector<8x128xf32>
    %cst_48 = arith.constant 5.000000e-01 : f32
    %121 = vector.broadcast %cst_48 : f32 to vector<8x128xf32>
    %122 = arith.addf %120, %121 : vector<8x128xf32>
    %123 = arith.index_cast %c2_i32 : i32 to index
    %c0_49 = arith.constant 0 : index
    %c0_50 = arith.constant 0 : index
    %124 = vector.load %arg2[%123, %c0_49, %c0_50] : memref<16x8x128xf32, #tpu.memory_space<vmem>>, vector<1x8x128xf32>
    %125 = vector.shape_cast %124 : vector<1x8x128xf32> to vector<8x128xf32>
    %126 = arith.mulf %112, %125 : vector<8x128xf32>
    %127 = arith.mulf %104, %114 : vector<8x128xf32>
    %128 = arith.addf %126, %127 : vector<8x128xf32>
    %129 = math.tanh %128 : vector<8x128xf32>
    %130 = arith.mulf %122, %129 : vector<8x128xf32>
    %131 = arith.index_cast %c2_i32 : i32 to index
    %c0_51 = arith.constant 0 : index
    %c0_52 = arith.constant 0 : index
    %132 = vector.load %arg4[%131, %c0_51, %c0_52] : memref<16x8x128xf32, #tpu.memory_space<vmem>>, vector<1x8x128xf32>
    %133 = vector.shape_cast %132 : vector<1x8x128xf32> to vector<8x128xf32>
    %134 = vector.shape_cast %130 : vector<8x128xf32> to vector<1x8x128xf32>
    tpu.vector_store %arg4[%131, %c0_51, %c0_52], %134 {strides = array<i32>} : memref<16x8x128xf32, #tpu.memory_space<vmem>>, vector<1x8x128xf32>,
    %c3_i32 = arith.constant 3 : i32
    %135 = arith.index_cast %c3_i32 : i32 to index
    %c0_53 = arith.constant 0 : index
    %c0_54 = arith.constant 0 : index
    %136 = vector.load %arg1[%135, %c0_53, %c0_54] : memref<16x8x512xf32, #tpu.memory_space<vmem>>, vector<1x8x512xf32>
    %137 = vector.shape_cast %136 : vector<1x8x512xf32> to vector<8x512xf32>
    %cst_55 = arith.constant dense<0.000000e+00> : vector<8x512xf32>
    %138 = tpu.matmul %130, %3, %cst_55 {dimension_numbers = #tpu.dot_dimension_numbers<[1], [0], [0], [1], [0, 0, 1, 1], [], []>} : vector<8x128xf32>, vector<128x512xf32>, vector<8x512xf32> -> vector<8x512xf32>
    %139 = arith.addf %137, %138 : vector<8x512xf32>
    %140 = vector.extract_strided_slice %139 {offsets = [0, 0], sizes = [8, 128], strides = [1, 1]} : vector<8x512xf32> to vector<8x128xf32>
    %cst_56 = arith.constant 5.000000e-01 : f32
    %141 = vector.broadcast %cst_56 : f32 to vector<8x128xf32>
    %142 = arith.mulf %141, %140 : vector<8x128xf32>
    %143 = math.tanh %142 : vector<8x128xf32>
    %cst_57 = arith.constant 5.000000e-01 : f32
    %144 = vector.broadcast %cst_57 : f32 to vector<8x128xf32>
    %145 = arith.mulf %144, %143 : vector<8x128xf32>
    %cst_58 = arith.constant 5.000000e-01 : f32
    %146 = vector.broadcast %cst_58 : f32 to vector<8x128xf32>
    %147 = arith.addf %145, %146 : vector<8x128xf32>
    %148 = vector.extract_strided_slice %139 {offsets = [0, 128], sizes = [8, 128], strides = [1, 1]} : vector<8x512xf32> to vector<8x128xf32>
    %cst_59 = arith.constant 5.000000e-01 : f32
    %149 = vector.broadcast %cst_59 : f32 to vector<8x128xf32>
    %150 = arith.mulf %149, %148 : vector<8x128xf32>
    %151 = math.tanh %150 : vector<8x128xf32>
    %cst_60 = arith.constant 5.000000e-01 : f32
    %152 = vector.broadcast %cst_60 : f32 to vector<8x128xf32>
    %153 = arith.mulf %152, %151 : vector<8x128xf32>
    %cst_61 = arith.constant 5.000000e-01 : f32
    %154 = vector.broadcast %cst_61 : f32 to vector<8x128xf32>
    %155 = arith.addf %153, %154 : vector<8x128xf32>
    %156 = vector.extract_strided_slice %139 {offsets = [0, 256], sizes = [8, 128], strides = [1, 1]} : vector<8x512xf32> to vector<8x128xf32>
    %157 = math.tanh %156 : vector<8x128xf32>
    %158 = vector.extract_strided_slice %139 {offsets = [0, 384], sizes = [8, 128], strides = [1, 1]} : vector<8x512xf32> to vector<8x128xf32>
    %cst_62 = arith.constant 5.000000e-01 : f32
    %159 = vector.broadcast %cst_62 : f32 to vector<8x128xf32>
    %160 = arith.mulf %159, %158 : vector<8x128xf32>
    %161 = math.tanh %160 : vector<8x128xf32>
    %cst_63 = arith.constant 5.000000e-01 : f32
    %162 = vector.broadcast %cst_63 : f32 to vector<8x128xf32>
    %163 = arith.mulf %162, %161 : vector<8x128xf32>
    %cst_64 = arith.constant 5.000000e-01 : f32
    %164 = vector.broadcast %cst_64 : f32 to vector<8x128xf32>
    %165 = arith.addf %163, %164 : vector<8x128xf32>
    %166 = arith.index_cast %c3_i32 : i32 to index
    %c0_65 = arith.constant 0 : index
    %c0_66 = arith.constant 0 : index
    %167 = vector.load %arg2[%166, %c0_65, %c0_66] : memref<16x8x128xf32, #tpu.memory_space<vmem>>, vector<1x8x128xf32>
    %168 = vector.shape_cast %167 : vector<1x8x128xf32> to vector<8x128xf32>
    %169 = arith.mulf %155, %168 : vector<8x128xf32>
    %170 = arith.mulf %147, %157 : vector<8x128xf32>
    %171 = arith.addf %169, %170 : vector<8x128xf32>
    %172 = math.tanh %171 : vector<8x128xf32>
    %173 = arith.mulf %165, %172 : vector<8x128xf32>
    %174 = arith.index_cast %c3_i32 : i32 to index
    %c0_67 = arith.constant 0 : index
    %c0_68 = arith.constant 0 : index
    %175 = vector.load %arg4[%174, %c0_67, %c0_68] : memref<16x8x128xf32, #tpu.memory_space<vmem>>, vector<1x8x128xf32>
    %176 = vector.shape_cast %175 : vector<1x8x128xf32> to vector<8x128xf32>
    %177 = vector.shape_cast %173 : vector<8x128xf32> to vector<1x8x128xf32>
    tpu.vector_store %arg4[%174, %c0_67, %c0_68], %177 {strides = array<i32>} : memref<16x8x128xf32, #tpu.memory_space<vmem>>, vector<1x8x128xf32>,
    %c4_i32 = arith.constant 4 : i32
    %178 = arith.index_cast %c4_i32 : i32 to index
    %c0_69 = arith.constant 0 : index
    %c0_70 = arith.constant 0 : index
    %179 = vector.load %arg1[%178, %c0_69, %c0_70] : memref<16x8x512xf32, #tpu.memory_space<vmem>>, vector<1x8x512xf32>
    %180 = vector.shape_cast %179 : vector<1x8x512xf32> to vector<8x512xf32>
    %cst_71 = arith.constant dense<0.000000e+00> : vector<8x512xf32>
    %181 = tpu.matmul %173, %3, %cst_71 {dimension_numbers = #tpu.dot_dimension_numbers<[1], [0], [0], [1], [0, 0, 1, 1], [], []>} : vector<8x128xf32>, vector<128x512xf32>, vector<8x512xf32> -> vector<8x512xf32>
    %182 = arith.addf %180, %181 : vector<8x512xf32>
    %183 = vector.extract_strided_slice %182 {offsets = [0, 0], sizes = [8, 128], strides = [1, 1]} : vector<8x512xf32> to vector<8x128xf32>
    %cst_72 = arith.constant 5.000000e-01 : f32
    %184 = vector.broadcast %cst_72 : f32 to vector<8x128xf32>
    %185 = arith.mulf %184, %183 : vector<8x128xf32>
    %186 = math.tanh %185 : vector<8x128xf32>
    %cst_73 = arith.constant 5.000000e-01 : f32
    %187 = vector.broadcast %cst_73 : f32 to vector<8x128xf32>
    %188 = arith.mulf %187, %186 : vector<8x128xf32>
    %cst_74 = arith.constant 5.000000e-01 : f32
    %189 = vector.broadcast %cst_74 : f32 to vector<8x128xf32>
    %190 = arith.addf %188, %189 : vector<8x128xf32>
    %191 = vector.extract_strided_slice %182 {offsets = [0, 128], sizes = [8, 128], strides = [1, 1]} : vector<8x512xf32> to vector<8x128xf32>
    %cst_75 = arith.constant 5.000000e-01 : f32
    %192 = vector.broadcast %cst_75 : f32 to vector<8x128xf32>
    %193 = arith.mulf %192, %191 : vector<8x128xf32>
    %194 = math.tanh %193 : vector<8x128xf32>
    %cst_76 = arith.constant 5.000000e-01 : f32
    %195 = vector.broadcast %cst_76 : f32 to vector<8x128xf32>
    %196 = arith.mulf %195, %194 : vector<8x128xf32>
    %cst_77 = arith.constant 5.000000e-01 : f32
    %197 = vector.broadcast %cst_77 : f32 to vector<8x128xf32>
    %198 = arith.addf %196, %197 : vector<8x128xf32>
    %199 = vector.extract_strided_slice %182 {offsets = [0, 256], sizes = [8, 128], strides = [1, 1]} : vector<8x512xf32> to vector<8x128xf32>
    %200 = math.tanh %199 : vector<8x128xf32>
    %201 = vector.extract_strided_slice %182 {offsets = [0, 384], sizes = [8, 128], strides = [1, 1]} : vector<8x512xf32> to vector<8x128xf32>
    %cst_78 = arith.constant 5.000000e-01 : f32
    %202 = vector.broadcast %cst_78 : f32 to vector<8x128xf32>
    %203 = arith.mulf %202, %201 : vector<8x128xf32>
    %204 = math.tanh %203 : vector<8x128xf32>
    %cst_79 = arith.constant 5.000000e-01 : f32
    %205 = vector.broadcast %cst_79 : f32 to vector<8x128xf32>
    %206 = arith.mulf %205, %204 : vector<8x128xf32>
    %cst_80 = arith.constant 5.000000e-01 : f32
    %207 = vector.broadcast %cst_80 : f32 to vector<8x128xf32>
    %208 = arith.addf %206, %207 : vector<8x128xf32>
    %209 = arith.index_cast %c4_i32 : i32 to index
    %c0_81 = arith.constant 0 : index
    %c0_82 = arith.constant 0 : index
    %210 = vector.load %arg2[%209, %c0_81, %c0_82] : memref<16x8x128xf32, #tpu.memory_space<vmem>>, vector<1x8x128xf32>
    %211 = vector.shape_cast %210 : vector<1x8x128xf32> to vector<8x128xf32>
    %212 = arith.mulf %198, %211 : vector<8x128xf32>
    %213 = arith.mulf %190, %200 : vector<8x128xf32>
    %214 = arith.addf %212, %213 : vector<8x128xf32>
    %215 = math.tanh %214 : vector<8x128xf32>
    %216 = arith.mulf %208, %215 : vector<8x128xf32>
    %217 = arith.index_cast %c4_i32 : i32 to index
    %c0_83 = arith.constant 0 : index
    %c0_84 = arith.constant 0 : index
    %218 = vector.load %arg4[%217, %c0_83, %c0_84] : memref<16x8x128xf32, #tpu.memory_space<vmem>>, vector<1x8x128xf32>
    %219 = vector.shape_cast %218 : vector<1x8x128xf32> to vector<8x128xf32>
    %220 = vector.shape_cast %216 : vector<8x128xf32> to vector<1x8x128xf32>
    tpu.vector_store %arg4[%217, %c0_83, %c0_84], %220 {strides = array<i32>} : memref<16x8x128xf32, #tpu.memory_space<vmem>>, vector<1x8x128xf32>,
    %c5_i32 = arith.constant 5 : i32
    %221 = arith.index_cast %c5_i32 : i32 to index
    %c0_85 = arith.constant 0 : index
    %c0_86 = arith.constant 0 : index
    %222 = vector.load %arg1[%221, %c0_85, %c0_86] : memref<16x8x512xf32, #tpu.memory_space<vmem>>, vector<1x8x512xf32>
    %223 = vector.shape_cast %222 : vector<1x8x512xf32> to vector<8x512xf32>
    %cst_87 = arith.constant dense<0.000000e+00> : vector<8x512xf32>
    %224 = tpu.matmul %216, %3, %cst_87 {dimension_numbers = #tpu.dot_dimension_numbers<[1], [0], [0], [1], [0, 0, 1, 1], [], []>} : vector<8x128xf32>, vector<128x512xf32>, vector<8x512xf32> -> vector<8x512xf32>
    %225 = arith.addf %223, %224 : vector<8x512xf32>
    %226 = vector.extract_strided_slice %225 {offsets = [0, 0], sizes = [8, 128], strides = [1, 1]} : vector<8x512xf32> to vector<8x128xf32>
    %cst_88 = arith.constant 5.000000e-01 : f32
    %227 = vector.broadcast %cst_88 : f32 to vector<8x128xf32>
    %228 = arith.mulf %227, %226 : vector<8x128xf32>
    %229 = math.tanh %228 : vector<8x128xf32>
    %cst_89 = arith.constant 5.000000e-01 : f32
    %230 = vector.broadcast %cst_89 : f32 to vector<8x128xf32>
    %231 = arith.mulf %230, %229 : vector<8x128xf32>
    %cst_90 = arith.constant 5.000000e-01 : f32
    %232 = vector.broadcast %cst_90 : f32 to vector<8x128xf32>
    %233 = arith.addf %231, %232 : vector<8x128xf32>
    %234 = vector.extract_strided_slice %225 {offsets = [0, 128], sizes = [8, 128], strides = [1, 1]} : vector<8x512xf32> to vector<8x128xf32>
    %cst_91 = arith.constant 5.000000e-01 : f32
    %235 = vector.broadcast %cst_91 : f32 to vector<8x128xf32>
    %236 = arith.mulf %235, %234 : vector<8x128xf32>
    %237 = math.tanh %236 : vector<8x128xf32>
    %cst_92 = arith.constant 5.000000e-01 : f32
    %238 = vector.broadcast %cst_92 : f32 to vector<8x128xf32>
    %239 = arith.mulf %238, %237 : vector<8x128xf32>
    %cst_93 = arith.constant 5.000000e-01 : f32
    %240 = vector.broadcast %cst_93 : f32 to vector<8x128xf32>
    %241 = arith.addf %239, %240 : vector<8x128xf32>
    %242 = vector.extract_strided_slice %225 {offsets = [0, 256], sizes = [8, 128], strides = [1, 1]} : vector<8x512xf32> to vector<8x128xf32>
    %243 = math.tanh %242 : vector<8x128xf32>
    %244 = vector.extract_strided_slice %225 {offsets = [0, 384], sizes = [8, 128], strides = [1, 1]} : vector<8x512xf32> to vector<8x128xf32>
    %cst_94 = arith.constant 5.000000e-01 : f32
    %245 = vector.broadcast %cst_94 : f32 to vector<8x128xf32>
    %246 = arith.mulf %245, %244 : vector<8x128xf32>
    %247 = math.tanh %246 : vector<8x128xf32>
    %cst_95 = arith.constant 5.000000e-01 : f32
    %248 = vector.broadcast %cst_95 : f32 to vector<8x128xf32>
    %249 = arith.mulf %248, %247 : vector<8x128xf32>
    %cst_96 = arith.constant 5.000000e-01 : f32
    %250 = vector.broadcast %cst_96 : f32 to vector<8x128xf32>
    %251 = arith.addf %249, %250 : vector<8x128xf32>
    %252 = arith.index_cast %c5_i32 : i32 to index
    %c0_97 = arith.constant 0 : index
    %c0_98 = arith.constant 0 : index
    %253 = vector.load %arg2[%252, %c0_97, %c0_98] : memref<16x8x128xf32, #tpu.memory_space<vmem>>, vector<1x8x128xf32>
    %254 = vector.shape_cast %253 : vector<1x8x128xf32> to vector<8x128xf32>
    %255 = arith.mulf %241, %254 : vector<8x128xf32>
    %256 = arith.mulf %233, %243 : vector<8x128xf32>
    %257 = arith.addf %255, %256 : vector<8x128xf32>
    %258 = math.tanh %257 : vector<8x128xf32>
    %259 = arith.mulf %251, %258 : vector<8x128xf32>
    %260 = arith.index_cast %c5_i32 : i32 to index
    %c0_99 = arith.constant 0 : index
    %c0_100 = arith.constant 0 : index
    %261 = vector.load %arg4[%260, %c0_99, %c0_100] : memref<16x8x128xf32, #tpu.memory_space<vmem>>, vector<1x8x128xf32>
    %262 = vector.shape_cast %261 : vector<1x8x128xf32> to vector<8x128xf32>
    %263 = vector.shape_cast %259 : vector<8x128xf32> to vector<1x8x128xf32>
    tpu.vector_store %arg4[%260, %c0_99, %c0_100], %263 {strides = array<i32>} : memref<16x8x128xf32, #tpu.memory_space<vmem>>, vector<1x8x128xf32>,
    %c6_i32 = arith.constant 6 : i32
    %264 = arith.index_cast %c6_i32 : i32 to index
    %c0_101 = arith.constant 0 : index
    %c0_102 = arith.constant 0 : index
    %265 = vector.load %arg1[%264, %c0_101, %c0_102] : memref<16x8x512xf32, #tpu.memory_space<vmem>>, vector<1x8x512xf32>
    %266 = vector.shape_cast %265 : vector<1x8x512xf32> to vector<8x512xf32>
    %cst_103 = arith.constant dense<0.000000e+00> : vector<8x512xf32>
    %267 = tpu.matmul %259, %3, %cst_103 {dimension_numbers = #tpu.dot_dimension_numbers<[1], [0], [0], [1], [0, 0, 1, 1], [], []>} : vector<8x128xf32>, vector<128x512xf32>, vector<8x512xf32> -> vector<8x512xf32>
    %268 = arith.addf %266, %267 : vector<8x512xf32>
    %269 = vector.extract_strided_slice %268 {offsets = [0, 0], sizes = [8, 128], strides = [1, 1]} : vector<8x512xf32> to vector<8x128xf32>
    %cst_104 = arith.constant 5.000000e-01 : f32
    %270 = vector.broadcast %cst_104 : f32 to vector<8x128xf32>
    %271 = arith.mulf %270, %269 : vector<8x128xf32>
    %272 = math.tanh %271 : vector<8x128xf32>
    %cst_105 = arith.constant 5.000000e-01 : f32
    %273 = vector.broadcast %cst_105 : f32 to vector<8x128xf32>
    %274 = arith.mulf %273, %272 : vector<8x128xf32>
    %cst_106 = arith.constant 5.000000e-01 : f32
    %275 = vector.broadcast %cst_106 : f32 to vector<8x128xf32>
    %276 = arith.addf %274, %275 : vector<8x128xf32>
    %277 = vector.extract_strided_slice %268 {offsets = [0, 128], sizes = [8, 128], strides = [1, 1]} : vector<8x512xf32> to vector<8x128xf32>
    %cst_107 = arith.constant 5.000000e-01 : f32
    %278 = vector.broadcast %cst_107 : f32 to vector<8x128xf32>
    %279 = arith.mulf %278, %277 : vector<8x128xf32>
    %280 = math.tanh %279 : vector<8x128xf32>
    %cst_108 = arith.constant 5.000000e-01 : f32
    %281 = vector.broadcast %cst_108 : f32 to vector<8x128xf32>
    %282 = arith.mulf %281, %280 : vector<8x128xf32>
    %cst_109 = arith.constant 5.000000e-01 : f32
    %283 = vector.broadcast %cst_109 : f32 to vector<8x128xf32>
    %284 = arith.addf %282, %283 : vector<8x128xf32>
    %285 = vector.extract_strided_slice %268 {offsets = [0, 256], sizes = [8, 128], strides = [1, 1]} : vector<8x512xf32> to vector<8x128xf32>
    %286 = math.tanh %285 : vector<8x128xf32>
    %287 = vector.extract_strided_slice %268 {offsets = [0, 384], sizes = [8, 128], strides = [1, 1]} : vector<8x512xf32> to vector<8x128xf32>
    %cst_110 = arith.constant 5.000000e-01 : f32
    %288 = vector.broadcast %cst_110 : f32 to vector<8x128xf32>
    %289 = arith.mulf %288, %287 : vector<8x128xf32>
    %290 = math.tanh %289 : vector<8x128xf32>
    %cst_111 = arith.constant 5.000000e-01 : f32
    %291 = vector.broadcast %cst_111 : f32 to vector<8x128xf32>
    %292 = arith.mulf %291, %290 : vector<8x128xf32>
    %cst_112 = arith.constant 5.000000e-01 : f32
    %293 = vector.broadcast %cst_112 : f32 to vector<8x128xf32>
    %294 = arith.addf %292, %293 : vector<8x128xf32>
    %295 = arith.index_cast %c6_i32 : i32 to index
    %c0_113 = arith.constant 0 : index
    %c0_114 = arith.constant 0 : index
    %296 = vector.load %arg2[%295, %c0_113, %c0_114] : memref<16x8x128xf32, #tpu.memory_space<vmem>>, vector<1x8x128xf32>
    %297 = vector.shape_cast %296 : vector<1x8x128xf32> to vector<8x128xf32>
    %298 = arith.mulf %284, %297 : vector<8x128xf32>
    %299 = arith.mulf %276, %286 : vector<8x128xf32>
    %300 = arith.addf %298, %299 : vector<8x128xf32>
    %301 = math.tanh %300 : vector<8x128xf32>
    %302 = arith.mulf %294, %301 : vector<8x128xf32>
    %303 = arith.index_cast %c6_i32 : i32 to index
    %c0_115 = arith.constant 0 : index
    %c0_116 = arith.constant 0 : index
    %304 = vector.load %arg4[%303, %c0_115, %c0_116] : memref<16x8x128xf32, #tpu.memory_space<vmem>>, vector<1x8x128xf32>
    %305 = vector.shape_cast %304 : vector<1x8x128xf32> to vector<8x128xf32>
    %306 = vector.shape_cast %302 : vector<8x128xf32> to vector<1x8x128xf32>
    tpu.vector_store %arg4[%303, %c0_115, %c0_116], %306 {strides = array<i32>} : memref<16x8x128xf32, #tpu.memory_space<vmem>>, vector<1x8x128xf32>,
    %c7_i32 = arith.constant 7 : i32
    %307 = arith.index_cast %c7_i32 : i32 to index
    %c0_117 = arith.constant 0 : index
    %c0_118 = arith.constant 0 : index
    %308 = vector.load %arg1[%307, %c0_117, %c0_118] : memref<16x8x512xf32, #tpu.memory_space<vmem>>, vector<1x8x512xf32>
    %309 = vector.shape_cast %308 : vector<1x8x512xf32> to vector<8x512xf32>
    %cst_119 = arith.constant dense<0.000000e+00> : vector<8x512xf32>
    %310 = tpu.matmul %302, %3, %cst_119 {dimension_numbers = #tpu.dot_dimension_numbers<[1], [0], [0], [1], [0, 0, 1, 1], [], []>} : vector<8x128xf32>, vector<128x512xf32>, vector<8x512xf32> -> vector<8x512xf32>
    %311 = arith.addf %309, %310 : vector<8x512xf32>
    %312 = vector.extract_strided_slice %311 {offsets = [0, 0], sizes = [8, 128], strides = [1, 1]} : vector<8x512xf32> to vector<8x128xf32>
    %cst_120 = arith.constant 5.000000e-01 : f32
    %313 = vector.broadcast %cst_120 : f32 to vector<8x128xf32>
    %314 = arith.mulf %313, %312 : vector<8x128xf32>
    %315 = math.tanh %314 : vector<8x128xf32>
    %cst_121 = arith.constant 5.000000e-01 : f32
    %316 = vector.broadcast %cst_121 : f32 to vector<8x128xf32>
    %317 = arith.mulf %316, %315 : vector<8x128xf32>
    %cst_122 = arith.constant 5.000000e-01 : f32
    %318 = vector.broadcast %cst_122 : f32 to vector<8x128xf32>
    %319 = arith.addf %317, %318 : vector<8x128xf32>
    %320 = vector.extract_strided_slice %311 {offsets = [0, 128], sizes = [8, 128], strides = [1, 1]} : vector<8x512xf32> to vector<8x128xf32>
    %cst_123 = arith.constant 5.000000e-01 : f32
    %321 = vector.broadcast %cst_123 : f32 to vector<8x128xf32>
    %322 = arith.mulf %321, %320 : vector<8x128xf32>
    %323 = math.tanh %322 : vector<8x128xf32>
    %cst_124 = arith.constant 5.000000e-01 : f32
    %324 = vector.broadcast %cst_124 : f32 to vector<8x128xf32>
    %325 = arith.mulf %324, %323 : vector<8x128xf32>
    %cst_125 = arith.constant 5.000000e-01 : f32
    %326 = vector.broadcast %cst_125 : f32 to vector<8x128xf32>
    %327 = arith.addf %325, %326 : vector<8x128xf32>
    %328 = vector.extract_strided_slice %311 {offsets = [0, 256], sizes = [8, 128], strides = [1, 1]} : vector<8x512xf32> to vector<8x128xf32>
    %329 = math.tanh %328 : vector<8x128xf32>
    %330 = vector.extract_strided_slice %311 {offsets = [0, 384], sizes = [8, 128], strides = [1, 1]} : vector<8x512xf32> to vector<8x128xf32>
    %cst_126 = arith.constant 5.000000e-01 : f32
    %331 = vector.broadcast %cst_126 : f32 to vector<8x128xf32>
    %332 = arith.mulf %331, %330 : vector<8x128xf32>
    %333 = math.tanh %332 : vector<8x128xf32>
    %cst_127 = arith.constant 5.000000e-01 : f32
    %334 = vector.broadcast %cst_127 : f32 to vector<8x128xf32>
    %335 = arith.mulf %334, %333 : vector<8x128xf32>
    %cst_128 = arith.constant 5.000000e-01 : f32
    %336 = vector.broadcast %cst_128 : f32 to vector<8x128xf32>
    %337 = arith.addf %335, %336 : vector<8x128xf32>
    %338 = arith.index_cast %c7_i32 : i32 to index
    %c0_129 = arith.constant 0 : index
    %c0_130 = arith.constant 0 : index
    %339 = vector.load %arg2[%338, %c0_129, %c0_130] : memref<16x8x128xf32, #tpu.memory_space<vmem>>, vector<1x8x128xf32>
    %340 = vector.shape_cast %339 : vector<1x8x128xf32> to vector<8x128xf32>
    %341 = arith.mulf %327, %340 : vector<8x128xf32>
    %342 = arith.mulf %319, %329 : vector<8x128xf32>
    %343 = arith.addf %341, %342 : vector<8x128xf32>
    %344 = math.tanh %343 : vector<8x128xf32>
    %345 = arith.mulf %337, %344 : vector<8x128xf32>
    %346 = arith.index_cast %c7_i32 : i32 to index
    %c0_131 = arith.constant 0 : index
    %c0_132 = arith.constant 0 : index
    %347 = vector.load %arg4[%346, %c0_131, %c0_132] : memref<16x8x128xf32, #tpu.memory_space<vmem>>, vector<1x8x128xf32>
    %348 = vector.shape_cast %347 : vector<1x8x128xf32> to vector<8x128xf32>
    %349 = vector.shape_cast %345 : vector<8x128xf32> to vector<1x8x128xf32>
    tpu.vector_store %arg4[%346, %c0_131, %c0_132], %349 {strides = array<i32>} : memref<16x8x128xf32, #tpu.memory_space<vmem>>, vector<1x8x128xf32>,
    %c8_i32 = arith.constant 8 : i32
    %350 = arith.index_cast %c8_i32 : i32 to index
    %c0_133 = arith.constant 0 : index
    %c0_134 = arith.constant 0 : index
    %351 = vector.load %arg1[%350, %c0_133, %c0_134] : memref<16x8x512xf32, #tpu.memory_space<vmem>>, vector<1x8x512xf32>
    %352 = vector.shape_cast %351 : vector<1x8x512xf32> to vector<8x512xf32>
    %cst_135 = arith.constant dense<0.000000e+00> : vector<8x512xf32>
    %353 = tpu.matmul %345, %3, %cst_135 {dimension_numbers = #tpu.dot_dimension_numbers<[1], [0], [0], [1], [0, 0, 1, 1], [], []>} : vector<8x128xf32>, vector<128x512xf32>, vector<8x512xf32> -> vector<8x512xf32>
    %354 = arith.addf %352, %353 : vector<8x512xf32>
    %355 = vector.extract_strided_slice %354 {offsets = [0, 0], sizes = [8, 128], strides = [1, 1]} : vector<8x512xf32> to vector<8x128xf32>
    %cst_136 = arith.constant 5.000000e-01 : f32
    %356 = vector.broadcast %cst_136 : f32 to vector<8x128xf32>
    %357 = arith.mulf %356, %355 : vector<8x128xf32>
    %358 = math.tanh %357 : vector<8x128xf32>
    %cst_137 = arith.constant 5.000000e-01 : f32
    %359 = vector.broadcast %cst_137 : f32 to vector<8x128xf32>
    %360 = arith.mulf %359, %358 : vector<8x128xf32>
    %cst_138 = arith.constant 5.000000e-01 : f32
    %361 = vector.broadcast %cst_138 : f32 to vector<8x128xf32>
    %362 = arith.addf %360, %361 : vector<8x128xf32>
    %363 = vector.extract_strided_slice %354 {offsets = [0, 128], sizes = [8, 128], strides = [1, 1]} : vector<8x512xf32> to vector<8x128xf32>
    %cst_139 = arith.constant 5.000000e-01 : f32
    %364 = vector.broadcast %cst_139 : f32 to vector<8x128xf32>
    %365 = arith.mulf %364, %363 : vector<8x128xf32>
    %366 = math.tanh %365 : vector<8x128xf32>
    %cst_140 = arith.constant 5.000000e-01 : f32
    %367 = vector.broadcast %cst_140 : f32 to vector<8x128xf32>
    %368 = arith.mulf %367, %366 : vector<8x128xf32>
    %cst_141 = arith.constant 5.000000e-01 : f32
    %369 = vector.broadcast %cst_141 : f32 to vector<8x128xf32>
    %370 = arith.addf %368, %369 : vector<8x128xf32>
    %371 = vector.extract_strided_slice %354 {offsets = [0, 256], sizes = [8, 128], strides = [1, 1]} : vector<8x512xf32> to vector<8x128xf32>
    %372 = math.tanh %371 : vector<8x128xf32>
    %373 = vector.extract_strided_slice %354 {offsets = [0, 384], sizes = [8, 128], strides = [1, 1]} : vector<8x512xf32> to vector<8x128xf32>
    %cst_142 = arith.constant 5.000000e-01 : f32
    %374 = vector.broadcast %cst_142 : f32 to vector<8x128xf32>
    %375 = arith.mulf %374, %373 : vector<8x128xf32>
    %376 = math.tanh %375 : vector<8x128xf32>
    %cst_143 = arith.constant 5.000000e-01 : f32
    %377 = vector.broadcast %cst_143 : f32 to vector<8x128xf32>
    %378 = arith.mulf %377, %376 : vector<8x128xf32>
    %cst_144 = arith.constant 5.000000e-01 : f32
    %379 = vector.broadcast %cst_144 : f32 to vector<8x128xf32>
    %380 = arith.addf %378, %379 : vector<8x128xf32>
    %381 = arith.index_cast %c8_i32 : i32 to index
    %c0_145 = arith.constant 0 : index
    %c0_146 = arith.constant 0 : index
    %382 = vector.load %arg2[%381, %c0_145, %c0_146] : memref<16x8x128xf32, #tpu.memory_space<vmem>>, vector<1x8x128xf32>
    %383 = vector.shape_cast %382 : vector<1x8x128xf32> to vector<8x128xf32>
    %384 = arith.mulf %370, %383 : vector<8x128xf32>
    %385 = arith.mulf %362, %372 : vector<8x128xf32>
    %386 = arith.addf %384, %385 : vector<8x128xf32>
    %387 = math.tanh %386 : vector<8x128xf32>
    %388 = arith.mulf %380, %387 : vector<8x128xf32>
    %389 = arith.index_cast %c8_i32 : i32 to index
    %c0_147 = arith.constant 0 : index
    %c0_148 = arith.constant 0 : index
    %390 = vector.load %arg4[%389, %c0_147, %c0_148] : memref<16x8x128xf32, #tpu.memory_space<vmem>>, vector<1x8x128xf32>
    %391 = vector.shape_cast %390 : vector<1x8x128xf32> to vector<8x128xf32>
    %392 = vector.shape_cast %388 : vector<8x128xf32> to vector<1x8x128xf32>
    tpu.vector_store %arg4[%389, %c0_147, %c0_148], %392 {strides = array<i32>} : memref<16x8x128xf32, #tpu.memory_space<vmem>>, vector<1x8x128xf32>,
    %c9_i32 = arith.constant 9 : i32
    %393 = arith.index_cast %c9_i32 : i32 to index
    %c0_149 = arith.constant 0 : index
    %c0_150 = arith.constant 0 : index
    %394 = vector.load %arg1[%393, %c0_149, %c0_150] : memref<16x8x512xf32, #tpu.memory_space<vmem>>, vector<1x8x512xf32>
    %395 = vector.shape_cast %394 : vector<1x8x512xf32> to vector<8x512xf32>
    %cst_151 = arith.constant dense<0.000000e+00> : vector<8x512xf32>
    %396 = tpu.matmul %388, %3, %cst_151 {dimension_numbers = #tpu.dot_dimension_numbers<[1], [0], [0], [1], [0, 0, 1, 1], [], []>} : vector<8x128xf32>, vector<128x512xf32>, vector<8x512xf32> -> vector<8x512xf32>
    %397 = arith.addf %395, %396 : vector<8x512xf32>
    %398 = vector.extract_strided_slice %397 {offsets = [0, 0], sizes = [8, 128], strides = [1, 1]} : vector<8x512xf32> to vector<8x128xf32>
    %cst_152 = arith.constant 5.000000e-01 : f32
    %399 = vector.broadcast %cst_152 : f32 to vector<8x128xf32>
    %400 = arith.mulf %399, %398 : vector<8x128xf32>
    %401 = math.tanh %400 : vector<8x128xf32>
    %cst_153 = arith.constant 5.000000e-01 : f32
    %402 = vector.broadcast %cst_153 : f32 to vector<8x128xf32>
    %403 = arith.mulf %402, %401 : vector<8x128xf32>
    %cst_154 = arith.constant 5.000000e-01 : f32
    %404 = vector.broadcast %cst_154 : f32 to vector<8x128xf32>
    %405 = arith.addf %403, %404 : vector<8x128xf32>
    %406 = vector.extract_strided_slice %397 {offsets = [0, 128], sizes = [8, 128], strides = [1, 1]} : vector<8x512xf32> to vector<8x128xf32>
    %cst_155 = arith.constant 5.000000e-01 : f32
    %407 = vector.broadcast %cst_155 : f32 to vector<8x128xf32>
    %408 = arith.mulf %407, %406 : vector<8x128xf32>
    %409 = math.tanh %408 : vector<8x128xf32>
    %cst_156 = arith.constant 5.000000e-01 : f32
    %410 = vector.broadcast %cst_156 : f32 to vector<8x128xf32>
    %411 = arith.mulf %410, %409 : vector<8x128xf32>
    %cst_157 = arith.constant 5.000000e-01 : f32
    %412 = vector.broadcast %cst_157 : f32 to vector<8x128xf32>
    %413 = arith.addf %411, %412 : vector<8x128xf32>
    %414 = vector.extract_strided_slice %397 {offsets = [0, 256], sizes = [8, 128], strides = [1, 1]} : vector<8x512xf32> to vector<8x128xf32>
    %415 = math.tanh %414 : vector<8x128xf32>
    %416 = vector.extract_strided_slice %397 {offsets = [0, 384], sizes = [8, 128], strides = [1, 1]} : vector<8x512xf32> to vector<8x128xf32>
    %cst_158 = arith.constant 5.000000e-01 : f32
    %417 = vector.broadcast %cst_158 : f32 to vector<8x128xf32>
    %418 = arith.mulf %417, %416 : vector<8x128xf32>
    %419 = math.tanh %418 : vector<8x128xf32>
    %cst_159 = arith.constant 5.000000e-01 : f32
    %420 = vector.broadcast %cst_159 : f32 to vector<8x128xf32>
    %421 = arith.mulf %420, %419 : vector<8x128xf32>
    %cst_160 = arith.constant 5.000000e-01 : f32
    %422 = vector.broadcast %cst_160 : f32 to vector<8x128xf32>
    %423 = arith.addf %421, %422 : vector<8x128xf32>
    %424 = arith.index_cast %c9_i32 : i32 to index
    %c0_161 = arith.constant 0 : index
    %c0_162 = arith.constant 0 : index
    %425 = vector.load %arg2[%424, %c0_161, %c0_162] : memref<16x8x128xf32, #tpu.memory_space<vmem>>, vector<1x8x128xf32>
    %426 = vector.shape_cast %425 : vector<1x8x128xf32> to vector<8x128xf32>
    %427 = arith.mulf %413, %426 : vector<8x128xf32>
    %428 = arith.mulf %405, %415 : vector<8x128xf32>
    %429 = arith.addf %427, %428 : vector<8x128xf32>
    %430 = math.tanh %429 : vector<8x128xf32>
    %431 = arith.mulf %423, %430 : vector<8x128xf32>
    %432 = arith.index_cast %c9_i32 : i32 to index
    %c0_163 = arith.constant 0 : index
    %c0_164 = arith.constant 0 : index
    %433 = vector.load %arg4[%432, %c0_163, %c0_164] : memref<16x8x128xf32, #tpu.memory_space<vmem>>, vector<1x8x128xf32>
    %434 = vector.shape_cast %433 : vector<1x8x128xf32> to vector<8x128xf32>
    %435 = vector.shape_cast %431 : vector<8x128xf32> to vector<1x8x128xf32>
    tpu.vector_store %arg4[%432, %c0_163, %c0_164], %435 {strides = array<i32>} : memref<16x8x128xf32, #tpu.memory_space<vmem>>, vector<1x8x128xf32>,
    %c10_i32 = arith.constant 10 : i32
    %436 = arith.index_cast %c10_i32 : i32 to index
    %c0_165 = arith.constant 0 : index
    %c0_166 = arith.constant 0 : index
    %437 = vector.load %arg1[%436, %c0_165, %c0_166] : memref<16x8x512xf32, #tpu.memory_space<vmem>>, vector<1x8x512xf32>
    %438 = vector.shape_cast %437 : vector<1x8x512xf32> to vector<8x512xf32>
    %cst_167 = arith.constant dense<0.000000e+00> : vector<8x512xf32>
    %439 = tpu.matmul %431, %3, %cst_167 {dimension_numbers = #tpu.dot_dimension_numbers<[1], [0], [0], [1], [0, 0, 1, 1], [], []>} : vector<8x128xf32>, vector<128x512xf32>, vector<8x512xf32> -> vector<8x512xf32>
    %440 = arith.addf %438, %439 : vector<8x512xf32>
    %441 = vector.extract_strided_slice %440 {offsets = [0, 0], sizes = [8, 128], strides = [1, 1]} : vector<8x512xf32> to vector<8x128xf32>
    %cst_168 = arith.constant 5.000000e-01 : f32
    %442 = vector.broadcast %cst_168 : f32 to vector<8x128xf32>
    %443 = arith.mulf %442, %441 : vector<8x128xf32>
    %444 = math.tanh %443 : vector<8x128xf32>
    %cst_169 = arith.constant 5.000000e-01 : f32
    %445 = vector.broadcast %cst_169 : f32 to vector<8x128xf32>
    %446 = arith.mulf %445, %444 : vector<8x128xf32>
    %cst_170 = arith.constant 5.000000e-01 : f32
    %447 = vector.broadcast %cst_170 : f32 to vector<8x128xf32>
    %448 = arith.addf %446, %447 : vector<8x128xf32>
    %449 = vector.extract_strided_slice %440 {offsets = [0, 128], sizes = [8, 128], strides = [1, 1]} : vector<8x512xf32> to vector<8x128xf32>
    %cst_171 = arith.constant 5.000000e-01 : f32
    %450 = vector.broadcast %cst_171 : f32 to vector<8x128xf32>
    %451 = arith.mulf %450, %449 : vector<8x128xf32>
    %452 = math.tanh %451 : vector<8x128xf32>
    %cst_172 = arith.constant 5.000000e-01 : f32
    %453 = vector.broadcast %cst_172 : f32 to vector<8x128xf32>
    %454 = arith.mulf %453, %452 : vector<8x128xf32>
    %cst_173 = arith.constant 5.000000e-01 : f32
    %455 = vector.broadcast %cst_173 : f32 to vector<8x128xf32>
    %456 = arith.addf %454, %455 : vector<8x128xf32>
    %457 = vector.extract_strided_slice %440 {offsets = [0, 256], sizes = [8, 128], strides = [1, 1]} : vector<8x512xf32> to vector<8x128xf32>
    %458 = math.tanh %457 : vector<8x128xf32>
    %459 = vector.extract_strided_slice %440 {offsets = [0, 384], sizes = [8, 128], strides = [1, 1]} : vector<8x512xf32> to vector<8x128xf32>
    %cst_174 = arith.constant 5.000000e-01 : f32
    %460 = vector.broadcast %cst_174 : f32 to vector<8x128xf32>
    %461 = arith.mulf %460, %459 : vector<8x128xf32>
    %462 = math.tanh %461 : vector<8x128xf32>
    %cst_175 = arith.constant 5.000000e-01 : f32
    %463 = vector.broadcast %cst_175 : f32 to vector<8x128xf32>
    %464 = arith.mulf %463, %462 : vector<8x128xf32>
    %cst_176 = arith.constant 5.000000e-01 : f32
    %465 = vector.broadcast %cst_176 : f32 to vector<8x128xf32>
    %466 = arith.addf %464, %465 : vector<8x128xf32>
    %467 = arith.index_cast %c10_i32 : i32 to index
    %c0_177 = arith.constant 0 : index
    %c0_178 = arith.constant 0 : index
    %468 = vector.load %arg2[%467, %c0_177, %c0_178] : memref<16x8x128xf32, #tpu.memory_space<vmem>>, vector<1x8x128xf32>
    %469 = vector.shape_cast %468 : vector<1x8x128xf32> to vector<8x128xf32>
    %470 = arith.mulf %456, %469 : vector<8x128xf32>
    %471 = arith.mulf %448, %458 : vector<8x128xf32>
    %472 = arith.addf %470, %471 : vector<8x128xf32>
    %473 = math.tanh %472 : vector<8x128xf32>
    %474 = arith.mulf %466, %473 : vector<8x128xf32>
    %475 = arith.index_cast %c10_i32 : i32 to index
    %c0_179 = arith.constant 0 : index
    %c0_180 = arith.constant 0 : index
    %476 = vector.load %arg4[%475, %c0_179, %c0_180] : memref<16x8x128xf32, #tpu.memory_space<vmem>>, vector<1x8x128xf32>
    %477 = vector.shape_cast %476 : vector<1x8x128xf32> to vector<8x128xf32>
    %478 = vector.shape_cast %474 : vector<8x128xf32> to vector<1x8x128xf32>
    tpu.vector_store %arg4[%475, %c0_179, %c0_180], %478 {strides = array<i32>} : memref<16x8x128xf32, #tpu.memory_space<vmem>>, vector<1x8x128xf32>,
    %c11_i32 = arith.constant 11 : i32
    %479 = arith.index_cast %c11_i32 : i32 to index
    %c0_181 = arith.constant 0 : index
    %c0_182 = arith.constant 0 : index
    %480 = vector.load %arg1[%479, %c0_181, %c0_182] : memref<16x8x512xf32, #tpu.memory_space<vmem>>, vector<1x8x512xf32>
    %481 = vector.shape_cast %480 : vector<1x8x512xf32> to vector<8x512xf32>
    %cst_183 = arith.constant dense<0.000000e+00> : vector<8x512xf32>
    %482 = tpu.matmul %474, %3, %cst_183 {dimension_numbers = #tpu.dot_dimension_numbers<[1], [0], [0], [1], [0, 0, 1, 1], [], []>} : vector<8x128xf32>, vector<128x512xf32>, vector<8x512xf32> -> vector<8x512xf32>
    %483 = arith.addf %481, %482 : vector<8x512xf32>
    %484 = vector.extract_strided_slice %483 {offsets = [0, 0], sizes = [8, 128], strides = [1, 1]} : vector<8x512xf32> to vector<8x128xf32>
    %cst_184 = arith.constant 5.000000e-01 : f32
    %485 = vector.broadcast %cst_184 : f32 to vector<8x128xf32>
    %486 = arith.mulf %485, %484 : vector<8x128xf32>
    %487 = math.tanh %486 : vector<8x128xf32>
    %cst_185 = arith.constant 5.000000e-01 : f32
    %488 = vector.broadcast %cst_185 : f32 to vector<8x128xf32>
    %489 = arith.mulf %488, %487 : vector<8x128xf32>
    %cst_186 = arith.constant 5.000000e-01 : f32
    %490 = vector.broadcast %cst_186 : f32 to vector<8x128xf32>
    %491 = arith.addf %489, %490 : vector<8x128xf32>
    %492 = vector.extract_strided_slice %483 {offsets = [0, 128], sizes = [8, 128], strides = [1, 1]} : vector<8x512xf32> to vector<8x128xf32>
    %cst_187 = arith.constant 5.000000e-01 : f32
    %493 = vector.broadcast %cst_187 : f32 to vector<8x128xf32>
    %494 = arith.mulf %493, %492 : vector<8x128xf32>
    %495 = math.tanh %494 : vector<8x128xf32>
    %cst_188 = arith.constant 5.000000e-01 : f32
    %496 = vector.broadcast %cst_188 : f32 to vector<8x128xf32>
    %497 = arith.mulf %496, %495 : vector<8x128xf32>
    %cst_189 = arith.constant 5.000000e-01 : f32
    %498 = vector.broadcast %cst_189 : f32 to vector<8x128xf32>
    %499 = arith.addf %497, %498 : vector<8x128xf32>
    %500 = vector.extract_strided_slice %483 {offsets = [0, 256], sizes = [8, 128], strides = [1, 1]} : vector<8x512xf32> to vector<8x128xf32>
    %501 = math.tanh %500 : vector<8x128xf32>
    %502 = vector.extract_strided_slice %483 {offsets = [0, 384], sizes = [8, 128], strides = [1, 1]} : vector<8x512xf32> to vector<8x128xf32>
    %cst_190 = arith.constant 5.000000e-01 : f32
    %503 = vector.broadcast %cst_190 : f32 to vector<8x128xf32>
    %504 = arith.mulf %503, %502 : vector<8x128xf32>
    %505 = math.tanh %504 : vector<8x128xf32>
    %cst_191 = arith.constant 5.000000e-01 : f32
    %506 = vector.broadcast %cst_191 : f32 to vector<8x128xf32>
    %507 = arith.mulf %506, %505 : vector<8x128xf32>
    %cst_192 = arith.constant 5.000000e-01 : f32
    %508 = vector.broadcast %cst_192 : f32 to vector<8x128xf32>
    %509 = arith.addf %507, %508 : vector<8x128xf32>
    %510 = arith.index_cast %c11_i32 : i32 to index
    %c0_193 = arith.constant 0 : index
    %c0_194 = arith.constant 0 : index
    %511 = vector.load %arg2[%510, %c0_193, %c0_194] : memref<16x8x128xf32, #tpu.memory_space<vmem>>, vector<1x8x128xf32>
    %512 = vector.shape_cast %511 : vector<1x8x128xf32> to vector<8x128xf32>
    %513 = arith.mulf %499, %512 : vector<8x128xf32>
    %514 = arith.mulf %491, %501 : vector<8x128xf32>
    %515 = arith.addf %513, %514 : vector<8x128xf32>
    %516 = math.tanh %515 : vector<8x128xf32>
    %517 = arith.mulf %509, %516 : vector<8x128xf32>
    %518 = arith.index_cast %c11_i32 : i32 to index
    %c0_195 = arith.constant 0 : index
    %c0_196 = arith.constant 0 : index
    %519 = vector.load %arg4[%518, %c0_195, %c0_196] : memref<16x8x128xf32, #tpu.memory_space<vmem>>, vector<1x8x128xf32>
    %520 = vector.shape_cast %519 : vector<1x8x128xf32> to vector<8x128xf32>
    %521 = vector.shape_cast %517 : vector<8x128xf32> to vector<1x8x128xf32>
    tpu.vector_store %arg4[%518, %c0_195, %c0_196], %521 {strides = array<i32>} : memref<16x8x128xf32, #tpu.memory_space<vmem>>, vector<1x8x128xf32>,
    %c12_i32 = arith.constant 12 : i32
    %522 = arith.index_cast %c12_i32 : i32 to index
    %c0_197 = arith.constant 0 : index
    %c0_198 = arith.constant 0 : index
    %523 = vector.load %arg1[%522, %c0_197, %c0_198] : memref<16x8x512xf32, #tpu.memory_space<vmem>>, vector<1x8x512xf32>
    %524 = vector.shape_cast %523 : vector<1x8x512xf32> to vector<8x512xf32>
    %cst_199 = arith.constant dense<0.000000e+00> : vector<8x512xf32>
    %525 = tpu.matmul %517, %3, %cst_199 {dimension_numbers = #tpu.dot_dimension_numbers<[1], [0], [0], [1], [0, 0, 1, 1], [], []>} : vector<8x128xf32>, vector<128x512xf32>, vector<8x512xf32> -> vector<8x512xf32>
    %526 = arith.addf %524, %525 : vector<8x512xf32>
    %527 = vector.extract_strided_slice %526 {offsets = [0, 0], sizes = [8, 128], strides = [1, 1]} : vector<8x512xf32> to vector<8x128xf32>
    %cst_200 = arith.constant 5.000000e-01 : f32
    %528 = vector.broadcast %cst_200 : f32 to vector<8x128xf32>
    %529 = arith.mulf %528, %527 : vector<8x128xf32>
    %530 = math.tanh %529 : vector<8x128xf32>
    %cst_201 = arith.constant 5.000000e-01 : f32
    %531 = vector.broadcast %cst_201 : f32 to vector<8x128xf32>
    %532 = arith.mulf %531, %530 : vector<8x128xf32>
    %cst_202 = arith.constant 5.000000e-01 : f32
    %533 = vector.broadcast %cst_202 : f32 to vector<8x128xf32>
    %534 = arith.addf %532, %533 : vector<8x128xf32>
    %535 = vector.extract_strided_slice %526 {offsets = [0, 128], sizes = [8, 128], strides = [1, 1]} : vector<8x512xf32> to vector<8x128xf32>
    %cst_203 = arith.constant 5.000000e-01 : f32
    %536 = vector.broadcast %cst_203 : f32 to vector<8x128xf32>
    %537 = arith.mulf %536, %535 : vector<8x128xf32>
    %538 = math.tanh %537 : vector<8x128xf32>
    %cst_204 = arith.constant 5.000000e-01 : f32
    %539 = vector.broadcast %cst_204 : f32 to vector<8x128xf32>
    %540 = arith.mulf %539, %538 : vector<8x128xf32>
    %cst_205 = arith.constant 5.000000e-01 : f32
    %541 = vector.broadcast %cst_205 : f32 to vector<8x128xf32>
    %542 = arith.addf %540, %541 : vector<8x128xf32>
    %543 = vector.extract_strided_slice %526 {offsets = [0, 256], sizes = [8, 128], strides = [1, 1]} : vector<8x512xf32> to vector<8x128xf32>
    %544 = math.tanh %543 : vector<8x128xf32>
    %545 = vector.extract_strided_slice %526 {offsets = [0, 384], sizes = [8, 128], strides = [1, 1]} : vector<8x512xf32> to vector<8x128xf32>
    %cst_206 = arith.constant 5.000000e-01 : f32
    %546 = vector.broadcast %cst_206 : f32 to vector<8x128xf32>
    %547 = arith.mulf %546, %545 : vector<8x128xf32>
    %548 = math.tanh %547 : vector<8x128xf32>
    %cst_207 = arith.constant 5.000000e-01 : f32
    %549 = vector.broadcast %cst_207 : f32 to vector<8x128xf32>
    %550 = arith.mulf %549, %548 : vector<8x128xf32>
    %cst_208 = arith.constant 5.000000e-01 : f32
    %551 = vector.broadcast %cst_208 : f32 to vector<8x128xf32>
    %552 = arith.addf %550, %551 : vector<8x128xf32>
    %553 = arith.index_cast %c12_i32 : i32 to index
    %c0_209 = arith.constant 0 : index
    %c0_210 = arith.constant 0 : index
    %554 = vector.load %arg2[%553, %c0_209, %c0_210] : memref<16x8x128xf32, #tpu.memory_space<vmem>>, vector<1x8x128xf32>
    %555 = vector.shape_cast %554 : vector<1x8x128xf32> to vector<8x128xf32>
    %556 = arith.mulf %542, %555 : vector<8x128xf32>
    %557 = arith.mulf %534, %544 : vector<8x128xf32>
    %558 = arith.addf %556, %557 : vector<8x128xf32>
    %559 = math.tanh %558 : vector<8x128xf32>
    %560 = arith.mulf %552, %559 : vector<8x128xf32>
    %561 = arith.index_cast %c12_i32 : i32 to index
    %c0_211 = arith.constant 0 : index
    %c0_212 = arith.constant 0 : index
    %562 = vector.load %arg4[%561, %c0_211, %c0_212] : memref<16x8x128xf32, #tpu.memory_space<vmem>>, vector<1x8x128xf32>
    %563 = vector.shape_cast %562 : vector<1x8x128xf32> to vector<8x128xf32>
    %564 = vector.shape_cast %560 : vector<8x128xf32> to vector<1x8x128xf32>
    tpu.vector_store %arg4[%561, %c0_211, %c0_212], %564 {strides = array<i32>} : memref<16x8x128xf32, #tpu.memory_space<vmem>>, vector<1x8x128xf32>,
    %c13_i32 = arith.constant 13 : i32
    %565 = arith.index_cast %c13_i32 : i32 to index
    %c0_213 = arith.constant 0 : index
    %c0_214 = arith.constant 0 : index
    %566 = vector.load %arg1[%565, %c0_213, %c0_214] : memref<16x8x512xf32, #tpu.memory_space<vmem>>, vector<1x8x512xf32>
    %567 = vector.shape_cast %566 : vector<1x8x512xf32> to vector<8x512xf32>
    %cst_215 = arith.constant dense<0.000000e+00> : vector<8x512xf32>
    %568 = tpu.matmul %560, %3, %cst_215 {dimension_numbers = #tpu.dot_dimension_numbers<[1], [0], [0], [1], [0, 0, 1, 1], [], []>} : vector<8x128xf32>, vector<128x512xf32>, vector<8x512xf32> -> vector<8x512xf32>
    %569 = arith.addf %567, %568 : vector<8x512xf32>
    %570 = vector.extract_strided_slice %569 {offsets = [0, 0], sizes = [8, 128], strides = [1, 1]} : vector<8x512xf32> to vector<8x128xf32>
    %cst_216 = arith.constant 5.000000e-01 : f32
    %571 = vector.broadcast %cst_216 : f32 to vector<8x128xf32>
    %572 = arith.mulf %571, %570 : vector<8x128xf32>
    %573 = math.tanh %572 : vector<8x128xf32>
    %cst_217 = arith.constant 5.000000e-01 : f32
    %574 = vector.broadcast %cst_217 : f32 to vector<8x128xf32>
    %575 = arith.mulf %574, %573 : vector<8x128xf32>
    %cst_218 = arith.constant 5.000000e-01 : f32
    %576 = vector.broadcast %cst_218 : f32 to vector<8x128xf32>
    %577 = arith.addf %575, %576 : vector<8x128xf32>
    %578 = vector.extract_strided_slice %569 {offsets = [0, 128], sizes = [8, 128], strides = [1, 1]} : vector<8x512xf32> to vector<8x128xf32>
    %cst_219 = arith.constant 5.000000e-01 : f32
    %579 = vector.broadcast %cst_219 : f32 to vector<8x128xf32>
    %580 = arith.mulf %579, %578 : vector<8x128xf32>
    %581 = math.tanh %580 : vector<8x128xf32>
    %cst_220 = arith.constant 5.000000e-01 : f32
    %582 = vector.broadcast %cst_220 : f32 to vector<8x128xf32>
    %583 = arith.mulf %582, %581 : vector<8x128xf32>
    %cst_221 = arith.constant 5.000000e-01 : f32
    %584 = vector.broadcast %cst_221 : f32 to vector<8x128xf32>
    %585 = arith.addf %583, %584 : vector<8x128xf32>
    %586 = vector.extract_strided_slice %569 {offsets = [0, 256], sizes = [8, 128], strides = [1, 1]} : vector<8x512xf32> to vector<8x128xf32>
    %587 = math.tanh %586 : vector<8x128xf32>
    %588 = vector.extract_strided_slice %569 {offsets = [0, 384], sizes = [8, 128], strides = [1, 1]} : vector<8x512xf32> to vector<8x128xf32>
    %cst_222 = arith.constant 5.000000e-01 : f32
    %589 = vector.broadcast %cst_222 : f32 to vector<8x128xf32>
    %590 = arith.mulf %589, %588 : vector<8x128xf32>
    %591 = math.tanh %590 : vector<8x128xf32>
    %cst_223 = arith.constant 5.000000e-01 : f32
    %592 = vector.broadcast %cst_223 : f32 to vector<8x128xf32>
    %593 = arith.mulf %592, %591 : vector<8x128xf32>
    %cst_224 = arith.constant 5.000000e-01 : f32
    %594 = vector.broadcast %cst_224 : f32 to vector<8x128xf32>
    %595 = arith.addf %593, %594 : vector<8x128xf32>
    %596 = arith.index_cast %c13_i32 : i32 to index
    %c0_225 = arith.constant 0 : index
    %c0_226 = arith.constant 0 : index
    %597 = vector.load %arg2[%596, %c0_225, %c0_226] : memref<16x8x128xf32, #tpu.memory_space<vmem>>, vector<1x8x128xf32>
    %598 = vector.shape_cast %597 : vector<1x8x128xf32> to vector<8x128xf32>
    %599 = arith.mulf %585, %598 : vector<8x128xf32>
    %600 = arith.mulf %577, %587 : vector<8x128xf32>
    %601 = arith.addf %599, %600 : vector<8x128xf32>
    %602 = math.tanh %601 : vector<8x128xf32>
    %603 = arith.mulf %595, %602 : vector<8x128xf32>
    %604 = arith.index_cast %c13_i32 : i32 to index
    %c0_227 = arith.constant 0 : index
    %c0_228 = arith.constant 0 : index
    %605 = vector.load %arg4[%604, %c0_227, %c0_228] : memref<16x8x128xf32, #tpu.memory_space<vmem>>, vector<1x8x128xf32>
    %606 = vector.shape_cast %605 : vector<1x8x128xf32> to vector<8x128xf32>
    %607 = vector.shape_cast %603 : vector<8x128xf32> to vector<1x8x128xf32>
    tpu.vector_store %arg4[%604, %c0_227, %c0_228], %607 {strides = array<i32>} : memref<16x8x128xf32, #tpu.memory_space<vmem>>, vector<1x8x128xf32>,
    %c14_i32 = arith.constant 14 : i32
    %608 = arith.index_cast %c14_i32 : i32 to index
    %c0_229 = arith.constant 0 : index
    %c0_230 = arith.constant 0 : index
    %609 = vector.load %arg1[%608, %c0_229, %c0_230] : memref<16x8x512xf32, #tpu.memory_space<vmem>>, vector<1x8x512xf32>
    %610 = vector.shape_cast %609 : vector<1x8x512xf32> to vector<8x512xf32>
    %cst_231 = arith.constant dense<0.000000e+00> : vector<8x512xf32>
    %611 = tpu.matmul %603, %3, %cst_231 {dimension_numbers = #tpu.dot_dimension_numbers<[1], [0], [0], [1], [0, 0, 1, 1], [], []>} : vector<8x128xf32>, vector<128x512xf32>, vector<8x512xf32> -> vector<8x512xf32>
    %612 = arith.addf %610, %611 : vector<8x512xf32>
    %613 = vector.extract_strided_slice %612 {offsets = [0, 0], sizes = [8, 128], strides = [1, 1]} : vector<8x512xf32> to vector<8x128xf32>
    %cst_232 = arith.constant 5.000000e-01 : f32
    %614 = vector.broadcast %cst_232 : f32 to vector<8x128xf32>
    %615 = arith.mulf %614, %613 : vector<8x128xf32>
    %616 = math.tanh %615 : vector<8x128xf32>
    %cst_233 = arith.constant 5.000000e-01 : f32
    %617 = vector.broadcast %cst_233 : f32 to vector<8x128xf32>
    %618 = arith.mulf %617, %616 : vector<8x128xf32>
    %cst_234 = arith.constant 5.000000e-01 : f32
    %619 = vector.broadcast %cst_234 : f32 to vector<8x128xf32>
    %620 = arith.addf %618, %619 : vector<8x128xf32>
    %621 = vector.extract_strided_slice %612 {offsets = [0, 128], sizes = [8, 128], strides = [1, 1]} : vector<8x512xf32> to vector<8x128xf32>
    %cst_235 = arith.constant 5.000000e-01 : f32
    %622 = vector.broadcast %cst_235 : f32 to vector<8x128xf32>
    %623 = arith.mulf %622, %621 : vector<8x128xf32>
    %624 = math.tanh %623 : vector<8x128xf32>
    %cst_236 = arith.constant 5.000000e-01 : f32
    %625 = vector.broadcast %cst_236 : f32 to vector<8x128xf32>
    %626 = arith.mulf %625, %624 : vector<8x128xf32>
    %cst_237 = arith.constant 5.000000e-01 : f32
    %627 = vector.broadcast %cst_237 : f32 to vector<8x128xf32>
    %628 = arith.addf %626, %627 : vector<8x128xf32>
    %629 = vector.extract_strided_slice %612 {offsets = [0, 256], sizes = [8, 128], strides = [1, 1]} : vector<8x512xf32> to vector<8x128xf32>
    %630 = math.tanh %629 : vector<8x128xf32>
    %631 = vector.extract_strided_slice %612 {offsets = [0, 384], sizes = [8, 128], strides = [1, 1]} : vector<8x512xf32> to vector<8x128xf32>
    %cst_238 = arith.constant 5.000000e-01 : f32
    %632 = vector.broadcast %cst_238 : f32 to vector<8x128xf32>
    %633 = arith.mulf %632, %631 : vector<8x128xf32>
    %634 = math.tanh %633 : vector<8x128xf32>
    %cst_239 = arith.constant 5.000000e-01 : f32
    %635 = vector.broadcast %cst_239 : f32 to vector<8x128xf32>
    %636 = arith.mulf %635, %634 : vector<8x128xf32>
    %cst_240 = arith.constant 5.000000e-01 : f32
    %637 = vector.broadcast %cst_240 : f32 to vector<8x128xf32>
    %638 = arith.addf %636, %637 : vector<8x128xf32>
    %639 = arith.index_cast %c14_i32 : i32 to index
    %c0_241 = arith.constant 0 : index
    %c0_242 = arith.constant 0 : index
    %640 = vector.load %arg2[%639, %c0_241, %c0_242] : memref<16x8x128xf32, #tpu.memory_space<vmem>>, vector<1x8x128xf32>
    %641 = vector.shape_cast %640 : vector<1x8x128xf32> to vector<8x128xf32>
    %642 = arith.mulf %628, %641 : vector<8x128xf32>
    %643 = arith.mulf %620, %630 : vector<8x128xf32>
    %644 = arith.addf %642, %643 : vector<8x128xf32>
    %645 = math.tanh %644 : vector<8x128xf32>
    %646 = arith.mulf %638, %645 : vector<8x128xf32>
    %647 = arith.index_cast %c14_i32 : i32 to index
    %c0_243 = arith.constant 0 : index
    %c0_244 = arith.constant 0 : index
    %648 = vector.load %arg4[%647, %c0_243, %c0_244] : memref<16x8x128xf32, #tpu.memory_space<vmem>>, vector<1x8x128xf32>
    %649 = vector.shape_cast %648 : vector<1x8x128xf32> to vector<8x128xf32>
    %650 = vector.shape_cast %646 : vector<8x128xf32> to vector<1x8x128xf32>
    tpu.vector_store %arg4[%647, %c0_243, %c0_244], %650 {strides = array<i32>} : memref<16x8x128xf32, #tpu.memory_space<vmem>>, vector<1x8x128xf32>,
    %c15_i32 = arith.constant 15 : i32
    %651 = arith.index_cast %c15_i32 : i32 to index
    %c0_245 = arith.constant 0 : index
    %c0_246 = arith.constant 0 : index
    %652 = vector.load %arg1[%651, %c0_245, %c0_246] : memref<16x8x512xf32, #tpu.memory_space<vmem>>, vector<1x8x512xf32>
    %653 = vector.shape_cast %652 : vector<1x8x512xf32> to vector<8x512xf32>
    %cst_247 = arith.constant dense<0.000000e+00> : vector<8x512xf32>
    %654 = tpu.matmul %646, %3, %cst_247 {dimension_numbers = #tpu.dot_dimension_numbers<[1], [0], [0], [1], [0, 0, 1, 1], [], []>} : vector<8x128xf32>, vector<128x512xf32>, vector<8x512xf32> -> vector<8x512xf32>
    %655 = arith.addf %653, %654 : vector<8x512xf32>
    %656 = vector.extract_strided_slice %655 {offsets = [0, 0], sizes = [8, 128], strides = [1, 1]} : vector<8x512xf32> to vector<8x128xf32>
    %cst_248 = arith.constant 5.000000e-01 : f32
    %657 = vector.broadcast %cst_248 : f32 to vector<8x128xf32>
    %658 = arith.mulf %657, %656 : vector<8x128xf32>
    %659 = math.tanh %658 : vector<8x128xf32>
    %cst_249 = arith.constant 5.000000e-01 : f32
    %660 = vector.broadcast %cst_249 : f32 to vector<8x128xf32>
    %661 = arith.mulf %660, %659 : vector<8x128xf32>
    %cst_250 = arith.constant 5.000000e-01 : f32
    %662 = vector.broadcast %cst_250 : f32 to vector<8x128xf32>
    %663 = arith.addf %661, %662 : vector<8x128xf32>
    %664 = vector.extract_strided_slice %655 {offsets = [0, 128], sizes = [8, 128], strides = [1, 1]} : vector<8x512xf32> to vector<8x128xf32>
    %cst_251 = arith.constant 5.000000e-01 : f32
    %665 = vector.broadcast %cst_251 : f32 to vector<8x128xf32>
    %666 = arith.mulf %665, %664 : vector<8x128xf32>
    %667 = math.tanh %666 : vector<8x128xf32>
    %cst_252 = arith.constant 5.000000e-01 : f32
    %668 = vector.broadcast %cst_252 : f32 to vector<8x128xf32>
    %669 = arith.mulf %668, %667 : vector<8x128xf32>
    %cst_253 = arith.constant 5.000000e-01 : f32
    %670 = vector.broadcast %cst_253 : f32 to vector<8x128xf32>
    %671 = arith.addf %669, %670 : vector<8x128xf32>
    %672 = vector.extract_strided_slice %655 {offsets = [0, 256], sizes = [8, 128], strides = [1, 1]} : vector<8x512xf32> to vector<8x128xf32>
    %673 = math.tanh %672 : vector<8x128xf32>
    %674 = vector.extract_strided_slice %655 {offsets = [0, 384], sizes = [8, 128], strides = [1, 1]} : vector<8x512xf32> to vector<8x128xf32>
    %cst_254 = arith.constant 5.000000e-01 : f32
    %675 = vector.broadcast %cst_254 : f32 to vector<8x128xf32>
    %676 = arith.mulf %675, %674 : vector<8x128xf32>
    %677 = math.tanh %676 : vector<8x128xf32>
    %cst_255 = arith.constant 5.000000e-01 : f32
    %678 = vector.broadcast %cst_255 : f32 to vector<8x128xf32>
    %679 = arith.mulf %678, %677 : vector<8x128xf32>
    %cst_256 = arith.constant 5.000000e-01 : f32
    %680 = vector.broadcast %cst_256 : f32 to vector<8x128xf32>
    %681 = arith.addf %679, %680 : vector<8x128xf32>
    %682 = arith.index_cast %c15_i32 : i32 to index
    %c0_257 = arith.constant 0 : index
    %c0_258 = arith.constant 0 : index
    %683 = vector.load %arg2[%682, %c0_257, %c0_258] : memref<16x8x128xf32, #tpu.memory_space<vmem>>, vector<1x8x128xf32>
    %684 = vector.shape_cast %683 : vector<1x8x128xf32> to vector<8x128xf32>
    %685 = arith.mulf %671, %684 : vector<8x128xf32>
    %686 = arith.mulf %663, %673 : vector<8x128xf32>
    %687 = arith.addf %685, %686 : vector<8x128xf32>
    %688 = math.tanh %687 : vector<8x128xf32>
    %689 = arith.mulf %681, %688 : vector<8x128xf32>
    %690 = arith.index_cast %c15_i32 : i32 to index
    %c0_259 = arith.constant 0 : index
    %c0_260 = arith.constant 0 : index
    %691 = vector.load %arg4[%690, %c0_259, %c0_260] : memref<16x8x128xf32, #tpu.memory_space<vmem>>, vector<1x8x128xf32>
    %692 = vector.shape_cast %691 : vector<1x8x128xf32> to vector<8x128xf32>
    %693 = vector.shape_cast %689 : vector<8x128xf32> to vector<1x8x128xf32>
    tpu.vector_store %arg4[%690, %c0_259, %c0_260], %693 {strides = array<i32>} : memref<16x8x128xf32, #tpu.memory_space<vmem>>, vector<1x8x128xf32>,
    %c16_i32 = arith.constant 16 : i32
    %c0_261 = arith.constant 0 : index
    %c0_262 = arith.constant 0 : index
    %694 = vector.load %arg7[%c0_261, %c0_262] : memref<8x128xf32, #tpu.memory_space<vmem>>, vector<8x128xf32>
    tpu.vector_store %arg7[%c0_261, %c0_262], %689 {strides = array<i32>} : memref<8x128xf32, #tpu.memory_space<vmem>>, vector<8x128xf32>,
    %c3_i32_263 = arith.constant 3 : i32
    %695 = arith.cmpi eq, %arg0, %c3_i32_263 : i32
    %696 = arith.extui %695 : i1 to i32
    %c0_i32_264 = arith.constant 0 : i32
    %697 = arith.cmpi ne, %696, %c0_i32_264 : i32
    scf.if %697 {
      %c0_265 = arith.constant 0 : index
      %c0_266 = arith.constant 0 : index
      %698 = vector.load %arg5[%c0_265, %c0_266] : memref<8x128xf32, #tpu.memory_space<vmem>>, vector<8x128xf32>
      tpu.vector_store %arg5[%c0_265, %c0_266], %689 {strides = array<i32>} : memref<8x128xf32, #tpu.memory_space<vmem>>, vector<8x128xf32>,
      %c0_267 = arith.constant 0 : index
      %c0_268 = arith.constant 0 : index
      %699 = vector.load %arg6[%c0_267, %c0_268] : memref<8x128xf32, #tpu.memory_space<vmem>>, vector<8x128xf32>
      tpu.vector_store %arg6[%c0_267, %c0_268], %687 {strides = array<i32>} : memref<8x128xf32, #tpu.memory_space<vmem>>, vector<8x128xf32>,
    } else {
    }
    return
  }
  func.func @transform_0(%arg0: i32) -> (i32, i32, i32) {
    %c0_i32 = arith.constant 0 : i32
    %c0_i32_0 = arith.constant 0 : i32
    %c0_i32_1 = arith.constant 0 : i32
    return %arg0, %c0_i32, %c0_i32_0 : i32, i32, i32
  }
  func.func @transform_1(%arg0: i32) -> (i32, i32, i32) {
    %c0_i32 = arith.constant 0 : i32
    %c0_i32_0 = arith.constant 0 : i32
    %c0_i32_1 = arith.constant 0 : i32
    return %arg0, %c0_i32, %c0_i32_0 : i32, i32, i32
  }
  func.func @transform_2(%arg0: i32) -> (i32, i32) {
    %c0_i32 = arith.constant 0 : i32
    %c0_i32_0 = arith.constant 0 : i32
    %c0_i32_1 = arith.constant 0 : i32
    return %c0_i32, %c0_i32_0 : i32, i32
  }
  func.func @transform_3(%arg0: i32) -> (i32, i32, i32) {
    %c0_i32 = arith.constant 0 : i32
    %c0_i32_0 = arith.constant 0 : i32
    %c0_i32_1 = arith.constant 0 : i32
    return %arg0, %c0_i32, %c0_i32_0 : i32, i32, i32
  }
  func.func @transform_4(%arg0: i32) -> (i32, i32) {
    %c0_i32 = arith.constant 0 : i32
    %c0_i32_0 = arith.constant 0 : i32
    %c0_i32_1 = arith.constant 0 : i32
    return %c0_i32, %c0_i32_0 : i32, i32
  }
  func.func @transform_5(%arg0: i32) -> (i32, i32) {
    %c0_i32 = arith.constant 0 : i32
    %c0_i32_0 = arith.constant 0 : i32
    %c0_i32_1 = arith.constant 0 : i32
    return %c0_i32, %c0_i32_0 : i32, i32
  }
}

</mosaic_0001>

<bundles_post_ra>
// kernel: tpu_custom_call.1
= control target key start
LH: loop header
LB: loop body
LE: loop exit
PB: predicated region body
PF: predicated region fallthrough
CT: control target
= control target key end

     0   :  { %s5956_s0 = inlined_call_operand.hbm [shape: f32[64,8,512], index: 0, kind: input, shape index: {}]   ;;  %s5957_s1 = inlined_call_operand.hbm [shape: f32[64,8,128], index: 1, kind: input, shape index: {}]   ;;  %s5958_s2 = inlined_call_operand.hbm [shape: f32[128,512], index: 2, kind: input, shape index: {}]   ;;  %s5959_s3 = inlined_call_operand.hbm [shape: f32[64,8,128], index: 3, kind: output, shape index: {0}]   ;;  %s5960_s4 = inlined_call_operand.hbm [shape: f32[8,128], index: 4, kind: output, shape index: {1}]   ;;  %s5961_s5 = inlined_call_operand.hbm [shape: f32[8,128], index: 5, kind: output, shape index: {2}]  }
   0x1   :  { %5965 = sst [smem:[#allocation19_spill]] %s5956_s0 }
   0x2   :  { %5966 = sst [smem:[#allocation20_spill]] %s5958_s2 }
   0x3   :  { %11 = vsyncpa [#allocation4], 0 }
   0x4   :  { %13 = vsyncpa [#allocation4 + $0x1], 0 }
   0x5   :  { %14 = vsyncpa [#allocation7], 0 }
   0x6   :  { %16 = vsyncpa [#allocation7 + $0x1], 0 }
   0x7   :  { %17 = vsyncpa [#allocation5], 0 }
   0x8   :  { %19 = vsyncpa [#allocation5 + $0x1], 0 }
   0x9   :  { %20 = vsyncpa [#allocation11], 0  ;;  %s4956_s18 = smov 0   ;;  %s4958_s19 = smov 0  }
   0xa   :  { %s4960_s20 = smov 0   ;;  %s4962_s21 = smov 0  }
   0xb LB: > { %s4977_s22 = sadd.s32 4294967295, %s4910_s21   ;;  %s3303_s23 = sadd.s32 4294967294, %s4910_s21   ;;  %s4910_s21 = sphi %s4962_s21, %s5995_s21   ;;  %s4906_s20 = sphi %s4960_s20, %s5994_s20   ;;  %s4902_s19 = sphi %s4958_s19, %s5993_s19   ;;  %s4898_s18 = sphi %s4956_s18, %s5992_s18  }
   0xc   : > { %p46_p0 = scmp.ne.s32.totalorder %s4902_s19, %s4898_s18  ;;  %p5962_p1 = scmp.eq.s32.totalorder %s4977_s22, 0 }
   0xd   : > { %p123_p3 = scmp.eq.s32.totalorder %s3303_s23, 3  ;;  %p3304_p5 = scmp.ge.s32.totalorder %s4910_s21, 1 }
   0xe   : > { %p4986_p4 = por %p5962_p1, %p46_p0  ;;  %p172_p7 = scmp.lt.s32.totalorder %s4910_s21, 5 }
   0xf   : > { %p4991_p6 = por %p123_p3, %p46_p0  ;;  %s4912_s27 = smov [#allocation8]  }
  0x10   : > { %s5967_s24 = scalar_select %p4986_p4, 1, 0 }
  0x11   : > { %s5968_s25 = scalar_select %p4991_p6, 1, 0 }
  0x12   : > { %p4997_p9 = pnand %p3304_p5, %p172_p7  ;;  %s184_s28 = sshll.u32 %s4912_s27, 4  ;;  %s185_s28 = int_to_ptr.vmem [resolvable:$true] %s184_s28 }
  0x13   : > { %s5010_s30 = sadd.s32 1, %s4910_s21   ;;  %s33_s6 = sadd.s32 1, %s4906_s20 }
  0x14   : > { %s5969_s26 = scalar_select %p4997_p9, 1, 0 }
  0x15   : > { %p4466_p10 = pneg %p4997_p9  ;;  %s30_s7 = ssub.s32 %s4910_s21, %s5010_s30 }
  0x16   : > { %s5971_s2 = sld [smem:[#allocation20_spill]] }
  0x17   : > { %p5005_p11 = pnand %p4466_p10, %p5962_p1 }
  0x19   : > { %p4694_p13 = pneg %p5005_p11 }
  0x1c   : > { %s4692_s10 = scalar_lea.hbm %s5971_s2, 8192 }
  0x1d   : > { %p4693_p12 = scmp.ne.s32.totalorder %s5971_s2, %s4692_s10  ;;  %p4699_p5 = scmp.lt.u32.totalorder %s4692_s10, %s5971_s2 }
  0x1f   : > { %p4695_p0 = pnand %p4694_p13, %p4693_p12 }
  0x21   : > { %p4696_p3 = pneg %p4695_p0 }
  0x23   : > { %p4701_p7 = pnand %p4699_p5, %p4696_p3 }
  0x25   : > { %4704 = shalt.err (!%p4701_p7)
}
  0x26   : > { %s4705_s15 = scalar_lea.vmem %s185_s28, 8192  ;;  %p4713_p2 = scmp.lt.s32.totalorder %s185_s28, %s185_s28 }
  0x27   : > { %p4706_p10 = scmp.ne.s32.totalorder %s185_s28, %s4705_s15  ;;  %p4714_p6 = scmp.lt.s32.totalorder %s4705_s15, %s4705_s15 }
  0x29   : > { %p4708_p8 = pnand %p4706_p10, %p4694_p13  ;;  %p4715_p4 = por %p4714_p6, %p4713_p2 }
  0x2b   : > { %p4709_p1 = pneg %p4708_p8 }
  0x2d   : > { %p4716_p9 = pnand %p4715_p4, %p4709_p1 }
  0x2f   : > { %4719 = shalt.err (!%p4716_p9)
}
  0x30   : > { %s4913_s16 = smov 512   ;;  %s4914_s17 = smov 32  }
  0x31   : > { %4469 = dma.hbm_to_vmem [thread:$0]  (!%p5005_p11), %s5971_s2, 8192, %s185_s28, [#allocation7], %s4913_s16, %s4913_s16, %s4914_s17  }
  0x32   : > { %p31_p1 = scmp.eq.s32.totalorder %s30_s7, 0  ;;  %p40_p2 = scmp.ne.s32.totalorder %s4906_s20, %s4902_s19 }
  0x33   : > { %p41_p4 = scmp.eq.s32.totalorder %s4910_s21, 0  ;;  %p4482_p6 = scmp.lt.s32.totalorder %s4910_s21, 4 }
  0x34   : > { %s5039_s8 = scalar_select %p31_p1, %s4906_s20, %s33_s6  }
  0x35   : > { %p42_p8 = por %p41_p4, %p40_p2  ;;  %p5973_p9 = scmp.eq.s32.totalorder %s4977_s22, 3 }
  0x36   : > { %5972 = sst [smem:[#allocation18_spill]] %s5039_s8  ;;  %s5048_s29 = sand.u32 1, %s4906_s20  }
  0x37   : > { %p5043_p12 = por %p5973_p9, %p40_p2  ;;  %s3421_s10 = sshll.u32 %s4910_s21, 13 }
  0x38   : > { %s3307_s11 = sshll.u32 %s5048_s29, 9  ;;  %s5975_s0 = sld [smem:[#allocation19_spill]] }
  0x39   : > { %s202_s6 = scalar_lea.vmem [#allocation3], %s3307_s11  ;;  %p5057_p11 = pnand %p4482_p6, %p42_p8 }
  0x3a   : > { %s210_s13 = sshll.u32 %s202_s6, 4  ;;  %s199_s23 = scalar_lea.sflag [#allocation4], %s5048_s29  ;;  %s5061_s13 = int_to_ptr.vmem [resolvable:$true] %s210_s13 }
  0x3b   : > { %p4722_p0 = pneg %p5057_p11 }
  0x3e   : > { %s5055_s7 = scalar_lea.hbm %s5975_s0, %s3421_s10  ;;  %s4725_s28 = scalar_lea.hbm %s5975_s0, 32768 }
  0x3f   : > { %s4720_s27 = scalar_lea.hbm %s5055_s7, 8192  ;;  %p4726_p7 = scmp.lt.u32.totalorder %s5055_s7, %s5975_s0 }
  0x40   : > { %p4721_p13 = scmp.ne.s32.totalorder %s5055_s7, %s4720_s27  ;;  %p4727_p10 = scmp.lt.u32.totalorder %s4725_s28, %s4720_s27 }
  0x41   : > { %p4729_p2 = scmp.lt.u32.totalorder %s4720_s27, %s5055_s7 }
  0x42   : > { %p4723_p3 = pnand %p4722_p0, %p4721_p13  ;;  %p4728_p1 = por %p4727_p10, %p4726_p7 }
  0x44   : > { %p4724_p5 = pneg %p4723_p3  ;;  %p4730_p4 = por %p4729_p2, %p4728_p1 }
  0x46   : > { %p4731_p6 = pnand %p4730_p4, %p4724_p5 }
  0x48   : > { %4734 = shalt.err (!%p4731_p6)
}
  0x49   : > { %s4735_s15 = scalar_lea.vmem %s5061_s13, 8192  ;;  %s4915_s10 = smov [#allocation3]  }
  0x4a   : > { %p4736_p8 = scmp.ne.s32.totalorder %s5061_s13, %s4735_s15  ;;  %s4740_s11 = sshll.u32 %s4915_s10, 4  ;;  %s4741_s11 = int_to_ptr.vmem [resolvable:$false] %s4740_s11 }
  0x4b   : > { %s4742_s12 = scalar_lea.vmem %s4741_s11, 16384  ;;  %p4743_p3 = scmp.lt.s32.totalorder %s5061_s13, %s4741_s11 }
  0x4c   : > { %p4738_p9 = pnand %p4736_p8, %p4722_p0  ;;  %p4744_p7 = scmp.lt.s32.totalorder %s4742_s12, %s4735_s15 }
  0x4e   : > { %p4739_p13 = pneg %p4738_p9  ;;  %p4745_p10 = por %p4744_p7, %p4743_p3 }
  0x50   : > { %p4746_p1 = pnand %p4745_p10, %p4739_p13 }
  0x52   : > { %4749 = shalt.err (!%p4746_p1)
}
  0x53   : > { %4473 = dma.hbm_to_vmem [thread:$0]  (!%p5057_p11), %s5055_s7, 8192, %s5061_s13, %s199_s23, %s4913_s16, %s4913_s16, %s4914_s17  }
  0x54   : > { %s3311_s27 = sshll.u32 %s5048_s29, 7  ;;  %s3422_s28 = sshll.u32 %s4910_s21, 11 }
  0x55   : > { %s5100_s10 = scalar_lea.hbm %s5957_s1, %s3422_s28  ;;  %s224_s11 = scalar_lea.vmem [#allocation6], %s3311_s27 }
  0x56   : > { %s231_s12 = sshll.u32 %s224_s11, 4  ;;  %s5977_s0 = sand.u32 1, %s4910_s21   ;;  %s5102_s12 = int_to_ptr.vmem [resolvable:$true] %s231_s12 }
  0x57   : > { %s5106_s2 = scalar_lea.sflag [#allocation7], %s5977_s0  ;;  %s4750_s8 = scalar_lea.hbm %s5100_s10, 2048 }
  0x58   : > { %p4751_p5 = scmp.ne.s32.totalorder %s5100_s10, %s4750_s8  ;;  %s4755_s29 = scalar_lea.hbm %s5957_s1, 8192 }
  0x59   : > { %p4756_p6 = scmp.lt.u32.totalorder %s5100_s10, %s5957_s1  ;;  %p4757_p8 = scmp.lt.u32.totalorder %s4755_s29, %s4750_s8 }
  0x5a   : > { %p4753_p2 = pnand %p4751_p5, %p4722_p0  ;;  %p4759_p13 = scmp.lt.u32.totalorder %s4750_s8, %s5100_s10 }
  0x5b   : > { %p4758_p9 = por %p4757_p8, %p4756_p6 }
  0x5c   : > { %p4754_p4 = pneg %p4753_p2 }
  0x5d   : > { %p4760_p3 = por %p4759_p13, %p4758_p9 }
  0x5f   : > { %p4761_p7 = pnand %p4760_p3, %p4754_p4 }
  0x61   : > { %4764 = shalt.err (!%p4761_p7)
}
  0x62   : > { %s4765_s0 = scalar_lea.vmem %s5102_s12, 2048  ;;  %s4916_s23 = smov [#allocation6]  }
  0x63   : > { %p4766_p10 = scmp.ne.s32.totalorder %s5102_s12, %s4765_s0  ;;  %s4770_s27 = sshll.u32 %s4916_s23, 4  ;;  %s4771_s27 = int_to_ptr.vmem [resolvable:$false] %s4770_s27 }
  0x64   : > { %s4772_s28 = scalar_lea.vmem %s4771_s27, 4096  ;;  %p4773_p2 = scmp.lt.s32.totalorder %s5102_s12, %s4771_s27 }
  0x65   : > { %p4768_p1 = pnand %p4766_p10, %p4722_p0  ;;  %p4774_p6 = scmp.lt.s32.totalorder %s4772_s28, %s4765_s0 }
  0x67   : > { %p4769_p5 = pneg %p4768_p1  ;;  %p4775_p8 = por %p4774_p6, %p4773_p2 }
  0x69   : > { %p4776_p9 = pnand %p4775_p8, %p4769_p5 }
  0x6b   : > { %4779 = shalt.err (!%p4776_p9)
}
  0x6c   : > { %s4917_s8 = smov 128   ;;  %s4918_s15 = smov 8  }
  0x6d   : > { %4476 = dma.hbm_to_vmem [thread:$0]  (!%p5057_p11), %s5100_s10, 2048, %s5102_s12, %s5106_s2, %s4917_s8, %s4917_s8, %s4918_s15  }
  0x6e   : > { %p5978_p0 = scmp.ne.s32.totalorder %s5969_s26, 0 }
  0x6f   : > { %s5135_s6 = sand.u32 (!%p5978_p0), 1, %s4902_s19   ;;  %p5979_p4 = scmp.ne.s32.totalorder (!%p5978_p0), %s5967_s24, 0 }
  0x70   : > { %243 = sbr.rel (%p5978_p0) target bundleno = 4233 (0x1089), region = 32  ;;  %s3315_s11 = sshll.u32 (!%p5978_p0), %s5135_s6, 9 }
  0x71   : > { %s246_s16 = scalar_lea.sflag (!%p5978_p0), [#allocation4], %s5135_s6  ;;  %s5139_s17 = scalar_lea.vmem (!%p5978_p0), [#allocation3], %s3315_s11 }
  0x77   : > { %4877 = dma.done.wait (%p5979_p4), %s246_s16, 8192  }
  0x78   : > { %4879 = vsyncadd (%p5979_p4), %s246_s16, 4294959104  ;;  %s254_s2 = sand.u32 1, %s4977_s22   ;;  %s3316_s26 = sshll.u32 %s5135_s6, 7 }
  0x79   : > { %s255_s14 = scalar_lea.sflag [#allocation7], %s254_s2  ;;  %s5147_s10 = scalar_lea.vmem [#allocation6], %s3316_s26 }
  0x7a   : > { %4881 = dma.done.wait (%p5979_p4), %s255_s14, 2048  }
  0x7b   : > { %4883 = vsyncadd (%p5979_p4), %s255_s14, 4294965248  ;;  %p5980_p11 = scmp.eq.s32.totalorder %s4977_s22, 0 }
  0x7d   : > { %4885 = dma.done.wait (%p5980_p11), [#allocation7], 8192   ;;  %p5981_p13 = pmov %p5980_p11 }
  0x7e   : > { %s5157_s12 = scalar_lea.vmem [#allocation9], %s3316_s26  ;;  %p5982_p3 = scmp.ne.s32.totalorder %s4977_s22, 0 }
  0x7f   : > { %4887 = vsyncadd (%p5981_p13), [#allocation7], 4294959104  ;;  %v4919_v0 = vmov (!%p5982_p3), 0.0  }
  0x80   : > { %300 = sbr.rel (%p5982_p3) target bundleno = 135 (0x87), region = 48  ;;  %301 = vst [vmem:[#allocation2] sm:$0xff] (!%p5982_p3), %v4919_v0  ;;  %302 = vst [vmem:[#allocation10] sm:$0xff] (!%p5982_p3), %v4919_v0 }
  0x81   : > { %303 = vst [vmem:[#allocation12] sm:$0xff] (!%p5982_p3), %v4919_v0 }
  0x87 PF: > { %v305_v1 = vld [vmem:[#allocation8 + $0x8] sm:$0xff]  ;;  %v304_v3 = vld [vmem:[#allocation8] sm:$0xff]  ;;  %v4920_v8 = vmov 0.0   ;;  %v307_v13 = vld [vmem:[#allocation8 + $0x18] sm:$0xff]  ;;  %p3410_p7 = scmp.ne.s32.totalorder %s4977_s22, 3 }
  0x88   : > { %v309_v2 = vld [vmem:[#allocation8 + $0x28] sm:$0xff]  ;;  %v308_v5 = vld [vmem:[#allocation8 + $0x20] sm:$0xff]  ;;  %437 = vmatprep.mubr.f32.mxu0 %v4920_v8  ;;  %508 = vmatprep.mubr.f32.mxu1 %v4920_v8  ;;  %v311_v14 = vld [vmem:[#allocation8 + $0x38] sm:$0xff] }
  0x89   : > { %v5161_v4 = vpack.c.bf16 %v309_v2, %v305_v1  ;;  %v313_v6 = vld [vmem:[#allocation8 + $0x48] sm:$0xff]  ;;  %v5165_v9 = vpack.c.bf16 %v308_v5, %v304_v3  ;;  %v312_v11 = vld [vmem:[#allocation8 + $0x40] sm:$0xff]  ;;  %v306_v15 = vld [vmem:[#allocation8 + $0x10] sm:$0xff]  ;;  %v5173_v18 = vpack.c.bf16 %v311_v14, %v307_v13 }
  0x8a   : > { %v317_v7 = vld [vmem:[#allocation8 + $0x68] sm:$0xff]  ;;  %v316_v12 = vld [vmem:[#allocation8 + $0x60] sm:$0xff]  ;;  %v310_v16 = vld [vmem:[#allocation8 + $0x30] sm:$0xff] }
  0x8b   : > { %v5167_v10 = vpack.c.bf16 %v317_v7, %v313_v6  ;;  %3425 = vmatprep.subr.bf16.mxu0 %v5161_v4  ;;  %v5171_v17 = vpack.c.bf16 %v316_v12, %v312_v11  ;;  %v5175_v19 = vpack.c.bf16 %v310_v16, %v306_v15  ;;  %v321_v20 = vld [vmem:[#allocation8 + $0x88] sm:$0xff]  ;;  %v320_v22 = vld [vmem:[#allocation8 + $0x80] sm:$0xff]  ;;  %v315_v25 = vld [vmem:[#allocation8 + $0x58] sm:$0xff]  ;;  %3457 = vmatprep.subr.bf16.mxu1 %v5173_v18 }
  0x8c   : > { %3427 = vmatpush1.bf16.msra.mxu0 %v5165_v9  ;;  %v325_v21 = vld [vmem:[#allocation8 + $0xa8] sm:$0xff]  ;;  %v324_v24 = vld [vmem:[#allocation8 + $0xa0] sm:$0xff]  ;;  %v319_v26 = vld [vmem:[#allocation8 + $0x78] sm:$0xff] }
  0x8d   : > { %3429 = vmatprep.subr.bf16.mxu0 %v5167_v10  ;;  %v5178_v23 = vpack.c.bf16 %v325_v21, %v321_v20  ;;  %v5181_v27 = vpack.c.bf16 %v319_v26, %v315_v25  ;;  %v314_v28 = vld [vmem:[#allocation8 + $0x50] sm:$0xff]  ;;  %v329_v30 = vld [vmem:[#allocation8 + $0xc8] sm:$0xff]  ;;  %3459 = vmatpush1.bf16.msra.mxu1 %v5175_v19  ;;  %v5187_v33 = vpack.c.bf16 %v324_v24, %v320_v22  ;;  %v323_v34 = vld [vmem:[#allocation8 + $0x98] sm:$0xff] }
  0x8e   : > { %v318_v29 = vld [vmem:[#allocation8 + $0x70] sm:$0xff]  ;;  %v333_v32 = vld [vmem:[#allocation8 + $0xe8] sm:$0xff]  ;;  %v327_v35 = vld [vmem:[#allocation8 + $0xb8] sm:$0xff] }
  0x8f   : > { %v5184_v31 = vpack.c.bf16 %v318_v29, %v314_v28  ;;  %3461 = vmatprep.subr.bf16.mxu1 %v5181_v27  ;;  %v322_v36 = vld [vmem:[#allocation8 + $0x90] sm:$0xff]  ;;  %v5191_v37 = vpack.c.bf16 %v333_v32, %v329_v30  ;;  %v328_v38 = vld [vmem:[#allocation8 + $0xc0] sm:$0xff]  ;;  %v5193_v40 = vpack.c.bf16 %v327_v35, %v323_v34  ;;  %v337_v42 = vld [vmem:[#allocation8 + $0x108] sm:$0xff] }
  0x90   : > { %3431 = vmatpush1.bf16.msra.mxu0 %v5171_v17  ;;  %v332_v39 = vld [vmem:[#allocation8 + $0xe0] sm:$0xff]  ;;  %v326_v41 = vld [vmem:[#allocation8 + $0xb0] sm:$0xff]  ;;  %v341_v43 = vld [vmem:[#allocation8 + $0x128] sm:$0xff] }
  0x91   : > { %3433 = vmatprep.subr.bf16.mxu0 %v5178_v23  ;;  %v331_v44 = vld [vmem:[#allocation8 + $0xd8] sm:$0xff]  ;;  %3463 = vmatpush1.bf16.msra.mxu1 %v5184_v31  ;;  %v5196_v45 = vpack.c.bf16 %v326_v41, %v322_v36  ;;  %v5199_v47 = vpack.c.bf16 %v332_v39, %v328_v38  ;;  %v336_v48 = vld [vmem:[#allocation8 + $0x100] sm:$0xff]  ;;  %v330_v50 = vld [vmem:[#allocation8 + $0xd0] sm:$0xff]  ;;  %v5205_v52 = vpack.c.bf16 %v341_v43, %v337_v42 }
  0x92   : > { %v335_v46 = vld [vmem:[#allocation8 + $0xf8] sm:$0xff]  ;;  %3465 = vmatprep.subr.bf16.mxu1 %v5193_v40  ;;  %v334_v51 = vld [vmem:[#allocation8 + $0xf0] sm:$0xff]  ;;  %v340_v53 = vld [vmem:[#allocation8 + $0x120] sm:$0xff] }
  0x93   : > { %v5202_v49 = vpack.c.bf16 %v335_v46, %v331_v44  ;;  %v339_v54 = vld [vmem:[#allocation8 + $0x118] sm:$0xff]  ;;  %v345_v56 = vld [vmem:[#allocation8 + $0x148] sm:$0xff]  ;;  %v5208_v58 = vpack.c.bf16 %v334_v51, %v330_v50  ;;  %v5211_v59 = vpack.c.bf16 %v340_v53, %v336_v48  ;;  %v344_v60 = vld [vmem:[#allocation8 + $0x140] sm:$0xff] }
  0x94   : > { %3435 = vmatpush1.bf16.msra.mxu0 %v5187_v33  ;;  %v343_v55 = vld [vmem:[#allocation8 + $0x138] sm:$0xff]  ;;  %v349_v57 = vld [vmem:[#allocation8 + $0x168] sm:$0xff]  ;;  %v338_v62 = vld [vmem:[#allocation8 + $0x110] sm:$0xff] }
  0x95   : > { %3437 = vmatprep.subr.bf16.mxu0 %v5191_v37  ;;  %3467 = vmatpush1.bf16.msra.mxu1 %v5196_v45  ;;  %v5214_v61 = vpack.c.bf16 %v343_v55, %v339_v54  ;;  %v342_v63 = vld [vmem:[#allocation8 + $0x130] sm:$0xff]  ;;  %v5217_v0 = vpack.c.bf16 %v349_v57, %v345_v56  ;;  %v348_v1 = vld [vmem:[#allocation8 + $0x160] sm:$0xff]  ;;  %v347_v2 = vld [vmem:[#allocation8 + $0x158] sm:$0xff] }
  0x96   : > { %3469 = vmatprep.subr.bf16.mxu1 %v5202_v49  ;;  %v351_v3 = vld [vmem:[#allocation8 + $0x178] sm:$0xff]  ;;  %v353_v5 = vld [vmem:[#allocation8 + $0x188] sm:$0xff]  ;;  %v5220_v7 = vpack.c.bf16 %v342_v63, %v338_v62  ;;  %v5223_v11 = vpack.c.bf16 %v348_v1, %v344_v60  ;;  %v352_v12 = vld [vmem:[#allocation8 + $0x180] sm:$0xff] }
  0x97   : > { %v357_v6 = vld [vmem:[#allocation8 + $0x1a8] sm:$0xff]  ;;  %v5226_v13 = vpack.c.bf16 %v351_v3, %v347_v2  ;;  %v346_v14 = vld [vmem:[#allocation8 + $0x150] sm:$0xff]  ;;  %v356_v20 = vld [vmem:[#allocation8 + $0x1a0] sm:$0xff] }
  0x98   : > { %3439 = vmatpush1.bf16.msra.mxu0 %v5199_v47  ;;  %v350_v15 = vld [vmem:[#allocation8 + $0x170] sm:$0xff]  ;;  %v5229_v16 = vpack.c.bf16 %v357_v6, %v353_v5  ;;  %v355_v21 = vld [vmem:[#allocation8 + $0x198] sm:$0xff]  ;;  %v361_v24 = vld [vmem:[#allocation8 + $0x1c8] sm:$0xff]  ;;  %v5235_v28 = vpack.c.bf16 %v356_v20, %v352_v12 }
  0x99   : > { %3441 = vmatprep.subr.bf16.mxu0 %v5205_v52  ;;  %3471 = vmatpush1.bf16.msra.mxu1 %v5208_v58  ;;  %v359_v22 = vld [vmem:[#allocation8 + $0x1b8] sm:$0xff]  ;;  %v365_v25 = vld [vmem:[#allocation8 + $0x1e8] sm:$0xff]  ;;  %v5232_v26 = vpack.c.bf16 %v350_v15, %v346_v14  ;;  %v360_v29 = vld [vmem:[#allocation8 + $0x1c0] sm:$0xff] }
  0x9a   : > { %3473 = vmatprep.subr.bf16.mxu1 %v5214_v61  ;;  %v5238_v30 = vpack.c.bf16 %v359_v22, %v355_v21  ;;  %v354_v32 = vld [vmem:[#allocation8 + $0x190] sm:$0xff]  ;;  %v5241_v35 = vpack.c.bf16 %v365_v25, %v361_v24  ;;  %v364_v36 = vld [vmem:[#allocation8 + $0x1e0] sm:$0xff]  ;;  %v363_v38 = vld [vmem:[#allocation8 + $0x1d8] sm:$0xff] }
  0x9b   : > { %v358_v34 = vld [vmem:[#allocation8 + $0x1b0] sm:$0xff]  ;;  %v367_v39 = vld [vmem:[#allocation8 + $0x1f8] sm:$0xff]  ;;  %v5247_v42 = vpack.c.bf16 %v364_v36, %v360_v29  ;;  %v369_v51 = vld [vmem:[%s5139_s17] sm:$0xff] }
  0x9c   : > { %3443 = vmatpush1.bf16.msra.mxu0 %v5211_v59  ;;  %v5244_v41 = vpack.c.bf16 %v358_v34, %v354_v32  ;;  %v5250_v43 = vpack.c.bf16 %v367_v39, %v363_v38  ;;  %v362_v44 = vld [vmem:[#allocation8 + $0x1d0] sm:$0xff]  ;;  %v368_v50 = vld [vmem:[#allocation2] sm:$0xff]  ;;  %v370_v53 = vld [vmem:[%s5139_s17 + $0x8] sm:$0xff] }
  0x9d   : > { %3445 = vmatprep.subr.bf16.mxu0 %v5217_v0  ;;  %3475 = vmatpush1.bf16.msra.mxu1 %v5220_v7  ;;  %v366_v46 = vld [vmem:[#allocation8 + $0x1f0] sm:$0xff]  ;;  %v372_v5 = vld [vmem:[%s5139_s17 + $0x18] sm:$0xff]  ;;  %v532_v25 = vld [vmem:[%s5147_s10] sm:$0xff] }
  0x9e   : > { %3477 = vmatprep.subr.bf16.mxu1 %v5226_v13  ;;  %v5254_v48 = vpack.c.bf16 %v366_v46, %v362_v44  ;;  %v371_v57 = vld [vmem:[%s5139_s17 + $0x10] sm:$0xff] }
  0xa0   : > { %3447 = vmatpush1.bf16.msra.mxu0 %v5223_v11 }
  0xa1   : > { %3449 = vmatprep.subr.bf16.mxu0 %v5229_v16  ;;  %3479 = vmatpush1.bf16.msra.mxu1 %v5232_v26 }
  0xa2   : > { %3481 = vmatprep.subr.bf16.mxu1 %v5238_v30 }
  0xa4   : > { %3451 = vmatpush1.bf16.msra.mxu0 %v5235_v28 }
  0xa5   : > { %3453 = vmatprep.subr.bf16.mxu0 %v5241_v35  ;;  %3483 = vmatpush1.bf16.msra.mxu1 %v5244_v41 }
  0xa6   : > { %3485 = vmatprep.subr.bf16.mxu1 %v5250_v43 }
  0xa8   : > { %3455 = vmatpush1.bf16.msra.mxu0 %v5247_v42 }
  0xa9   : > { %3489 = vmatprep.subr.bf16.mxu0 %v5161_v4  ;;  %3487 = vmatpush1.bf16.msra.mxu1 %v5254_v48 }
  0xaa   : > { %3521 = vmatprep.subr.bf16.mxu1 %v5173_v18 }
  0xab   : > { %438 = vmatmul.mubr.f32.vlgmr.msra.gmra.mrb[0].mxu0 %v368_v50 }
  0xac   : > { %3491 = vmatpush1.bf16.msra.mxu0 %v5165_v9  ;;  %608 = vmatprep.mubr.f32.mxu0 %v4920_v8 }
  0xad   : > { %3493 = vmatprep.subr.bf16.mxu0 %v5167_v10  ;;  %509 = vmatmul.mubr.f32.vlgmr.msra.gmra.mrb[0].mxu1 %v368_v50 }
  0xae   : > { %3523 = vmatpush1.bf16.msra.mxu1 %v5175_v19  ;;  %679 = vmatprep.mubr.f32.mxu1 %v4920_v8 }
  0xaf   : > { %3525 = vmatprep.subr.bf16.mxu1 %v5181_v27 }
  0xb0   : > { %3495 = vmatpush1.bf16.msra.mxu0 %v5171_v17 }
  0xb1   : > { %3497 = vmatprep.subr.bf16.mxu0 %v5178_v23 }
  0xb2   : > { %3527 = vmatpush1.bf16.msra.mxu1 %v5184_v31 }
  0xb3   : > { %3529 = vmatprep.subr.bf16.mxu1 %v5193_v40 }
  0xb4   : > { %3499 = vmatpush1.bf16.msra.mxu0 %v5187_v33 }
  0xb5   : > { %3501 = vmatprep.subr.bf16.mxu0 %v5191_v37 }
  0xb6   : > { %3531 = vmatpush1.bf16.msra.mxu1 %v5196_v45 }
  0xb7   : > { %3533 = vmatprep.subr.bf16.mxu1 %v5202_v49 }
  0xb8   : > { %3503 = vmatpush1.bf16.msra.mxu0 %v5199_v47 }
  0xb9   : > { %3505 = vmatprep.subr.bf16.mxu0 %v5205_v52 }
  0xba   : > { %3535 = vmatpush1.bf16.msra.mxu1 %v5208_v58 }
  0xbb   : > { %3537 = vmatprep.subr.bf16.mxu1 %v5214_v61 }
  0xbc   : > { %3507 = vmatpush1.bf16.msra.mxu0 %v5211_v59 }
  0xbd   : > { %3509 = vmatprep.subr.bf16.mxu0 %v5217_v0 }
  0xbe   : > { %3539 = vmatpush1.bf16.msra.mxu1 %v5220_v7 }
  0xbf   : > { %3541 = vmatprep.subr.bf16.mxu1 %v5226_v13 }
  0xc0   : > { %3511 = vmatpush1.bf16.msra.mxu0 %v5223_v11 }
  0xc1   : > { %3513 = vmatprep.subr.bf16.mxu0 %v5229_v16 }
  0xc2   : > { %3543 = vmatpush1.bf16.msra.mxu1 %v5232_v26 }
  0xc3   : > { %3545 = vmatprep.subr.bf16.mxu1 %v5238_v30 }
  0xc4   : > { %3515 = vmatpush1.bf16.msra.mxu0 %v5235_v28 }
  0xc5   : > { %3517 = vmatprep.subr.bf16.mxu0 %v5241_v35 }
  0xc6   : > { %3547 = vmatpush1.bf16.msra.mxu1 %v5244_v41 }
  0xc7   : > { %3549 = vmatprep.subr.bf16.mxu1 %v5250_v43 }
  0xc8   : > { %3519 = vmatpush1.bf16.msra.mxu0 %v5247_v42 }
  0xc9   : > { %3553 = vmatprep.subr.bf16.mxu0 %v5161_v4 }
  0xca   : > { %3551 = vmatpush1.bf16.msra.mxu1 %v5254_v48 }
  0xcb   : > { %3585 = vmatprep.subr.bf16.mxu1 %v5173_v18 }
 0x17e   : > { %v439_v54 = vpop.f32.mrb[0].mxu0 }
 0x17f   : > { %v515_v55 = vadd.f32 %v439_v54, %v369_v51  ;;  %v441_v56 = vpop.f32.mrb[1].mxu0  ;;  %v3320_v51 = vld [vmem:[%s5139_s17 + $0x20] sm:$0xff] }
 0x180   : > { %v516_v60 = vadd.f32 %v441_v56, %v370_v53  ;;  %v510_v63 = vpop.f32.mrb[0].mxu1  ;;  %v3321_v53 = vld [vmem:[%s5139_s17 + $0x28] sm:$0xff] }
 0x181   : > { %v519_v62 = vmul.f32 0.5, %v515_v55  ;;  %v517_v2 = vadd.f32 %v510_v63, %v371_v57  ;;  %v512_v3 = vpop.f32.mrb[1].mxu1 }
 0x182   : > { %v523_v1 = vmul.f32 0.5, %v516_v60  ;;  %v518_v6 = vadd.f32 %v512_v3, %v372_v5  ;;  %v3323_v5 = vld [vmem:[%s5139_s17 + $0x38] sm:$0xff] }
 0x183   : > { %4532 = vtanh.f32 %v519_v62  ;;  %v3322_v62 = vld [vmem:[%s5139_s17 + $0x30] sm:$0xff] }
 0x184   : > { %4534 = vtanh.f32 %v523_v1  ;;  %v528_v12 = vmul.f32 0.5, %v518_v6 }
 0x185   : > { %4536 = vtanh.f32 %v517_v2 }
 0x186   : > { %4538 = vtanh.f32 %v528_v12 }
 0x18d   : > { %v4533_v14 = vpop.eup %4532 }
 0x18e   : > { %v4535_v15 = vpop.eup %4534  ;;  %v521_v20 = vmul.f32 0.5, %v4533_v14 }
 0x18f   : > { %v4537_v21 = vpop.eup %4536  ;;  %v525_v22 = vmul.f32 0.5, %v4535_v15 }
 0x190   : > { %v522_v24 = vadd.f32 0.5, %v521_v20  ;;  %v4539_v38 = vpop.eup %4538 }
 0x191   : > { %v526_v29 = vadd.f32 0.5, %v525_v22  ;;  %v530_v39 = vmul.f32 0.5, %v4539_v38 }
 0x192   : > { %v534_v32 = vmul.f32 %v4537_v21, %v522_v24  ;;  %v3324_v24 = vld [vmem:[%s5147_s10 + $0x8] sm:$0xff] }
 0x193   : > { %v533_v34 = vmul.f32 %v532_v25, %v526_v29  ;;  %v531_v44 = vadd.f32 0.5, %v530_v39 }
 0x195   : > { %v535_v36 = vadd.f32 %v534_v32, %v533_v34 }
 0x197   : > { %4540 = vtanh.f32 %v535_v36 }
 0x1a1   : > { %v4541_v46 = vpop.eup %4540 }
 0x1a2   : > { %v537_v50 = vmul.f32 %v4541_v46, %v531_v44 }
 0x1a4   : > { %538 = vst [vmem:[%s5157_s12] sm:$0xff] %v537_v50  ;;  %609 = vmatmul.mubr.f32.vlgmr.msra.gmra.mrb[2].mxu0 %v537_v50  ;;  %680 = vmatmul.mubr.f32.vlgmr.msra.gmra.mrb[2].mxu1 %v537_v50 }
 0x1a5   : > { %3555 = vmatpush1.bf16.msra.mxu0 %v5165_v9  ;;  %3587 = vmatpush1.bf16.msra.mxu1 %v5175_v19 }
 0x1a6   : > { %3557 = vmatprep.subr.bf16.mxu0 %v5167_v10  ;;  %3589 = vmatprep.subr.bf16.mxu1 %v5181_v27 }
 0x1a7   : > { %781 = vmatprep.mubr.f32.mxu0 %v4920_v8  ;;  %852 = vmatprep.mubr.f32.mxu1 %v4920_v8 }
 0x1a9   : > { %3559 = vmatpush1.bf16.msra.mxu0 %v5171_v17  ;;  %3591 = vmatpush1.bf16.msra.mxu1 %v5184_v31 }
 0x1aa   : > { %3561 = vmatprep.subr.bf16.mxu0 %v5178_v23  ;;  %3593 = vmatprep.subr.bf16.mxu1 %v5193_v40 }
 0x1ad   : > { %3563 = vmatpush1.bf16.msra.mxu0 %v5187_v33  ;;  %3595 = vmatpush1.bf16.msra.mxu1 %v5196_v45 }
 0x1ae   : > { %3565 = vmatprep.subr.bf16.mxu0 %v5191_v37  ;;  %3597 = vmatprep.subr.bf16.mxu1 %v5202_v49 }
 0x1b1   : > { %3567 = vmatpush1.bf16.msra.mxu0 %v5199_v47  ;;  %3599 = vmatpush1.bf16.msra.mxu1 %v5208_v58 }
 0x1b2   : > { %3569 = vmatprep.subr.bf16.mxu0 %v5205_v52  ;;  %3601 = vmatprep.subr.bf16.mxu1 %v5214_v61 }
 0x1b5   : > { %3571 = vmatpush1.bf16.msra.mxu0 %v5211_v59  ;;  %3603 = vmatpush1.bf16.msra.mxu1 %v5220_v7 }
 0x1b6   : > { %3573 = vmatprep.subr.bf16.mxu0 %v5217_v0  ;;  %3605 = vmatprep.subr.bf16.mxu1 %v5226_v13 }
 0x1b9   : > { %3575 = vmatpush1.bf16.msra.mxu0 %v5223_v11  ;;  %3607 = vmatpush1.bf16.msra.mxu1 %v5232_v26 }
 0x1ba   : > { %3577 = vmatprep.subr.bf16.mxu0 %v5229_v16  ;;  %3609 = vmatprep.subr.bf16.mxu1 %v5238_v30 }
 0x1bd   : > { %3579 = vmatpush1.bf16.msra.mxu0 %v5235_v28  ;;  %3611 = vmatpush1.bf16.msra.mxu1 %v5244_v41 }
 0x1be   : > { %3581 = vmatprep.subr.bf16.mxu0 %v5241_v35  ;;  %3613 = vmatprep.subr.bf16.mxu1 %v5250_v43 }
 0x1c1   : > { %3583 = vmatpush1.bf16.msra.mxu0 %v5247_v42  ;;  %3615 = vmatpush1.bf16.msra.mxu1 %v5254_v48 }
 0x1c2   : > { %3617 = vmatprep.subr.bf16.mxu0 %v5161_v4  ;;  %3649 = vmatprep.subr.bf16.mxu1 %v5173_v18 }
 0x277   : > { %v610_v54 = vpop.f32.mrb[2].mxu0  ;;  %v681_v55 = vpop.f32.mrb[2].mxu1 }
 0x278   : > { %v686_v56 = vadd.f32 %v3320_v51, %v610_v54  ;;  %v612_v57 = vpop.f32.mrb[3].mxu0  ;;  %v683_v60 = vpop.f32.mrb[3].mxu1  ;;  %v688_v3 = vadd.f32 %v3322_v62, %v681_v55  ;;  %v3326_v51 = vld [vmem:[%s5139_s17 + $0x40] sm:$0xff]  ;;  %v3328_v62 = vld [vmem:[%s5139_s17 + $0x50] sm:$0xff] }
 0x279   : > { %v687_v63 = vadd.f32 %v3321_v53, %v612_v57  ;;  %v689_v6 = vadd.f32 %v3323_v5, %v683_v60  ;;  %v3327_v53 = vld [vmem:[%s5139_s17 + $0x48] sm:$0xff]  ;;  %v3329_v5 = vld [vmem:[%s5139_s17 + $0x58] sm:$0xff] }
 0x27a   : > { %v690_v1 = vmul.f32 0.5, %v686_v56 }
 0x27b   : > { %v694_v2 = vmul.f32 0.5, %v687_v63  ;;  %v699_v12 = vmul.f32 0.5, %v689_v6 }
 0x27c   : > { %4542 = vtanh.f32 %v690_v1 }
 0x27d   : > { %4544 = vtanh.f32 %v694_v2 }
 0x27e   : > { %4546 = vtanh.f32 %v688_v3 }
 0x27f   : > { %4548 = vtanh.f32 %v699_v12 }
 0x286   : > { %v4543_v14 = vpop.eup %4542 }
 0x287   : > { %v4545_v15 = vpop.eup %4544  ;;  %v692_v20 = vmul.f32 0.5, %v4543_v14 }
 0x288   : > { %v696_v21 = vmul.f32 0.5, %v4545_v15  ;;  %v4547_v25 = vpop.eup %4546 }
 0x289   : > { %v693_v22 = vadd.f32 0.5, %v692_v20  ;;  %v4549_v38 = vpop.eup %4548 }
 0x28a   : > { %v697_v29 = vadd.f32 0.5, %v696_v21  ;;  %v701_v39 = vmul.f32 0.5, %v4549_v38 }
 0x28b   : > { %v706_v32 = vmul.f32 %v4547_v25, %v693_v22 }
 0x28c   : > { %v705_v34 = vmul.f32 %v3324_v24, %v697_v29  ;;  %v702_v44 = vadd.f32 0.5, %v701_v39  ;;  %v3330_v24 = vld [vmem:[%s5147_s10 + $0x10] sm:$0xff] }
 0x28e   : > { %v707_v36 = vadd.f32 %v706_v32, %v705_v34 }
 0x290   : > { %4550 = vtanh.f32 %v707_v36 }
 0x29a   : > { %v4551_v46 = vpop.eup %4550 }
 0x29b   : > { %v709_v50 = vmul.f32 %v4551_v46, %v702_v44 }
 0x29d   : > { %3325 = vst [vmem:[%s5157_s12 + $0x8] sm:$0xff] %v709_v50  ;;  %782 = vmatmul.mubr.f32.vlgmr.msra.gmra.mrb[4].mxu0 %v709_v50  ;;  %853 = vmatmul.mubr.f32.vlgmr.msra.gmra.mrb[4].mxu1 %v709_v50 }
 0x29e   : > { %3619 = vmatpush1.bf16.msra.mxu0 %v5165_v9  ;;  %3651 = vmatpush1.bf16.msra.mxu1 %v5175_v19 }
 0x29f   : > { %3621 = vmatprep.subr.bf16.mxu0 %v5167_v10  ;;  %3653 = vmatprep.subr.bf16.mxu1 %v5181_v27 }
 0x2a0   : > { %954 = vmatprep.mubr.f32.mxu0 %v4920_v8  ;;  %1025 = vmatprep.mubr.f32.mxu1 %v4920_v8 }
 0x2a2   : > { %3623 = vmatpush1.bf16.msra.mxu0 %v5171_v17  ;;  %3655 = vmatpush1.bf16.msra.mxu1 %v5184_v31 }
 0x2a3   : > { %3625 = vmatprep.subr.bf16.mxu0 %v5178_v23  ;;  %3657 = vmatprep.subr.bf16.mxu1 %v5193_v40 }
 0x2a6   : > { %3627 = vmatpush1.bf16.msra.mxu0 %v5187_v33  ;;  %3659 = vmatpush1.bf16.msra.mxu1 %v5196_v45 }
 0x2a7   : > { %3629 = vmatprep.subr.bf16.mxu0 %v5191_v37  ;;  %3661 = vmatprep.subr.bf16.mxu1 %v5202_v49 }
 0x2aa   : > { %3631 = vmatpush1.bf16.msra.mxu0 %v5199_v47  ;;  %3663 = vmatpush1.bf16.msra.mxu1 %v5208_v58 }
 0x2ab   : > { %3633 = vmatprep.subr.bf16.mxu0 %v5205_v52  ;;  %3665 = vmatprep.subr.bf16.mxu1 %v5214_v61 }
 0x2ae   : > { %3635 = vmatpush1.bf16.msra.mxu0 %v5211_v59  ;;  %3667 = vmatpush1.bf16.msra.mxu1 %v5220_v7 }
 0x2af   : > { %3637 = vmatprep.subr.bf16.mxu0 %v5217_v0  ;;  %3669 = vmatprep.subr.bf16.mxu1 %v5226_v13 }
 0x2b2   : > { %3639 = vmatpush1.bf16.msra.mxu0 %v5223_v11  ;;  %3671 = vmatpush1.bf16.msra.mxu1 %v5232_v26 }
 0x2b3   : > { %3641 = vmatprep.subr.bf16.mxu0 %v5229_v16  ;;  %3673 = vmatprep.subr.bf16.mxu1 %v5238_v30 }
 0x2b6   : > { %3643 = vmatpush1.bf16.msra.mxu0 %v5235_v28  ;;  %3675 = vmatpush1.bf16.msra.mxu1 %v5244_v41 }
 0x2b7   : > { %3645 = vmatprep.subr.bf16.mxu0 %v5241_v35  ;;  %3677 = vmatprep.subr.bf16.mxu1 %v5250_v43 }
 0x2ba   : > { %3647 = vmatpush1.bf16.msra.mxu0 %v5247_v42  ;;  %3679 = vmatpush1.bf16.msra.mxu1 %v5254_v48 }
 0x2bb   : > { %3681 = vmatprep.subr.bf16.mxu0 %v5161_v4  ;;  %3713 = vmatprep.subr.bf16.mxu1 %v5173_v18 }
 0x370   : > { %v783_v54 = vpop.f32.mrb[4].mxu0  ;;  %v854_v55 = vpop.f32.mrb[4].mxu1 }
 0x371   : > { %v859_v56 = vadd.f32 %v3326_v51, %v783_v54  ;;  %v785_v57 = vpop.f32.mrb[5].mxu0  ;;  %v856_v60 = vpop.f32.mrb[5].mxu1  ;;  %v861_v3 = vadd.f32 %v3328_v62, %v854_v55  ;;  %v3332_v51 = vld [vmem:[%s5139_s17 + $0x60] sm:$0xff]  ;;  %v3334_v62 = vld [vmem:[%s5139_s17 + $0x70] sm:$0xff] }
 0x372   : > { %v860_v63 = vadd.f32 %v3327_v53, %v785_v57  ;;  %v862_v6 = vadd.f32 %v3329_v5, %v856_v60  ;;  %v3333_v53 = vld [vmem:[%s5139_s17 + $0x68] sm:$0xff]  ;;  %v3335_v5 = vld [vmem:[%s5139_s17 + $0x78] sm:$0xff] }
 0x373   : > { %v863_v1 = vmul.f32 0.5, %v859_v56 }
 0x374   : > { %v867_v2 = vmul.f32 0.5, %v860_v63  ;;  %v872_v12 = vmul.f32 0.5, %v862_v6 }
 0x375   : > { %4552 = vtanh.f32 %v863_v1 }
 0x376   : > { %4554 = vtanh.f32 %v867_v2 }
 0x377   : > { %4556 = vtanh.f32 %v861_v3 }
 0x378   : > { %4558 = vtanh.f32 %v872_v12 }
 0x37f   : > { %v4553_v14 = vpop.eup %4552 }
 0x380   : > { %v4555_v15 = vpop.eup %4554  ;;  %v865_v20 = vmul.f32 0.5, %v4553_v14 }
 0x381   : > { %v869_v21 = vmul.f32 0.5, %v4555_v15  ;;  %v4557_v25 = vpop.eup %4556 }
 0x382   : > { %v866_v22 = vadd.f32 0.5, %v865_v20  ;;  %v4559_v38 = vpop.eup %4558 }
 0x383   : > { %v870_v29 = vadd.f32 0.5, %v869_v21  ;;  %v874_v39 = vmul.f32 0.5, %v4559_v38 }
 0x384   : > { %v879_v32 = vmul.f32 %v4557_v25, %v866_v22 }
 0x385   : > { %v878_v34 = vmul.f32 %v3330_v24, %v870_v29  ;;  %v875_v44 = vadd.f32 0.5, %v874_v39  ;;  %v3336_v24 = vld [vmem:[%s5147_s10 + $0x18] sm:$0xff] }
 0x387   : > { %v880_v36 = vadd.f32 %v879_v32, %v878_v34 }
 0x389   : > { %4560 = vtanh.f32 %v880_v36 }
 0x393   : > { %v4561_v46 = vpop.eup %4560 }
 0x394   : > { %v882_v50 = vmul.f32 %v4561_v46, %v875_v44 }
 0x396   : > { %3331 = vst [vmem:[%s5157_s12 + $0x10] sm:$0xff] %v882_v50  ;;  %955 = vmatmul.mubr.f32.vlgmr.msra.gmra.mrb[6].mxu0 %v882_v50  ;;  %1026 = vmatmul.mubr.f32.vlgmr.msra.gmra.mrb[6].mxu1 %v882_v50 }
 0x397   : > { %3683 = vmatpush1.bf16.msra.mxu0 %v5165_v9  ;;  %3715 = vmatpush1.bf16.msra.mxu1 %v5175_v19 }
 0x398   : > { %3685 = vmatprep.subr.bf16.mxu0 %v5167_v10  ;;  %3717 = vmatprep.subr.bf16.mxu1 %v5181_v27 }
 0x399   : > { %1127 = vmatprep.mubr.f32.mxu0 %v4920_v8  ;;  %1198 = vmatprep.mubr.f32.mxu1 %v4920_v8 }
 0x39b   : > { %3687 = vmatpush1.bf16.msra.mxu0 %v5171_v17  ;;  %3719 = vmatpush1.bf16.msra.mxu1 %v5184_v31 }
 0x39c   : > { %3689 = vmatprep.subr.bf16.mxu0 %v5178_v23  ;;  %3721 = vmatprep.subr.bf16.mxu1 %v5193_v40 }
 0x39f   : > { %3691 = vmatpush1.bf16.msra.mxu0 %v5187_v33  ;;  %3723 = vmatpush1.bf16.msra.mxu1 %v5196_v45 }
 0x3a0   : > { %3693 = vmatprep.subr.bf16.mxu0 %v5191_v37  ;;  %3725 = vmatprep.subr.bf16.mxu1 %v5202_v49 }
 0x3a3   : > { %3695 = vmatpush1.bf16.msra.mxu0 %v5199_v47  ;;  %3727 = vmatpush1.bf16.msra.mxu1 %v5208_v58 }
 0x3a4   : > { %3697 = vmatprep.subr.bf16.mxu0 %v5205_v52  ;;  %3729 = vmatprep.subr.bf16.mxu1 %v5214_v61 }
 0x3a7   : > { %3699 = vmatpush1.bf16.msra.mxu0 %v5211_v59  ;;  %3731 = vmatpush1.bf16.msra.mxu1 %v5220_v7 }
 0x3a8   : > { %3701 = vmatprep.subr.bf16.mxu0 %v5217_v0  ;;  %3733 = vmatprep.subr.bf16.mxu1 %v5226_v13 }
 0x3ab   : > { %3703 = vmatpush1.bf16.msra.mxu0 %v5223_v11  ;;  %3735 = vmatpush1.bf16.msra.mxu1 %v5232_v26 }
 0x3ac   : > { %3705 = vmatprep.subr.bf16.mxu0 %v5229_v16  ;;  %3737 = vmatprep.subr.bf16.mxu1 %v5238_v30 }
 0x3af   : > { %3707 = vmatpush1.bf16.msra.mxu0 %v5235_v28  ;;  %3739 = vmatpush1.bf16.msra.mxu1 %v5244_v41 }
 0x3b0   : > { %3709 = vmatprep.subr.bf16.mxu0 %v5241_v35  ;;  %3741 = vmatprep.subr.bf16.mxu1 %v5250_v43 }
 0x3b3   : > { %3711 = vmatpush1.bf16.msra.mxu0 %v5247_v42  ;;  %3743 = vmatpush1.bf16.msra.mxu1 %v5254_v48 }
 0x3b4   : > { %3745 = vmatprep.subr.bf16.mxu0 %v5161_v4  ;;  %3777 = vmatprep.subr.bf16.mxu1 %v5173_v18 }
 0x469   : > { %v956_v54 = vpop.f32.mrb[6].mxu0  ;;  %v1027_v55 = vpop.f32.mrb[6].mxu1 }
 0x46a   : > { %v1032_v56 = vadd.f32 %v3332_v51, %v956_v54  ;;  %v958_v57 = vpop.f32.mrb[7].mxu0  ;;  %v1029_v60 = vpop.f32.mrb[7].mxu1  ;;  %v1034_v3 = vadd.f32 %v3334_v62, %v1027_v55  ;;  %v3338_v51 = vld [vmem:[%s5139_s17 + $0x80] sm:$0xff]  ;;  %v3340_v62 = vld [vmem:[%s5139_s17 + $0x90] sm:$0xff] }
 0x46b   : > { %v1033_v63 = vadd.f32 %v3333_v53, %v958_v57  ;;  %v1035_v6 = vadd.f32 %v3335_v5, %v1029_v60  ;;  %v3339_v53 = vld [vmem:[%s5139_s17 + $0x88] sm:$0xff]  ;;  %v3341_v5 = vld [vmem:[%s5139_s17 + $0x98] sm:$0xff] }
 0x46c   : > { %v1036_v1 = vmul.f32 0.5, %v1032_v56 }
 0x46d   : > { %v1040_v2 = vmul.f32 0.5, %v1033_v63  ;;  %v1045_v12 = vmul.f32 0.5, %v1035_v6 }
 0x46e   : > { %4562 = vtanh.f32 %v1036_v1 }
 0x46f   : > { %4564 = vtanh.f32 %v1040_v2 }
 0x470   : > { %4566 = vtanh.f32 %v1034_v3 }
 0x471   : > { %4568 = vtanh.f32 %v1045_v12 }
 0x478   : > { %v4563_v14 = vpop.eup %4562 }
 0x479   : > { %v4565_v15 = vpop.eup %4564  ;;  %v1038_v20 = vmul.f32 0.5, %v4563_v14 }
 0x47a   : > { %v1042_v21 = vmul.f32 0.5, %v4565_v15  ;;  %v4567_v25 = vpop.eup %4566 }
 0x47b   : > { %v1039_v22 = vadd.f32 0.5, %v1038_v20  ;;  %v4569_v38 = vpop.eup %4568 }
 0x47c   : > { %v1043_v29 = vadd.f32 0.5, %v1042_v21  ;;  %v1047_v39 = vmul.f32 0.5, %v4569_v38 }
 0x47d   : > { %v1052_v32 = vmul.f32 %v4567_v25, %v1039_v22 }
 0x47e   : > { %v1051_v34 = vmul.f32 %v3336_v24, %v1043_v29  ;;  %v1048_v44 = vadd.f32 0.5, %v1047_v39  ;;  %v3342_v24 = vld [vmem:[%s5147_s10 + $0x20] sm:$0xff] }
 0x480   : > { %v1053_v36 = vadd.f32 %v1052_v32, %v1051_v34 }
 0x482   : > { %4570 = vtanh.f32 %v1053_v36 }
 0x48c   : > { %v4571_v46 = vpop.eup %4570 }
 0x48d   : > { %v1055_v50 = vmul.f32 %v4571_v46, %v1048_v44 }
 0x48f   : > { %3337 = vst [vmem:[%s5157_s12 + $0x18] sm:$0xff] %v1055_v50  ;;  %1128 = vmatmul.mubr.f32.vlgmr.msra.gmra.mrb[8].mxu0 %v1055_v50  ;;  %1199 = vmatmul.mubr.f32.vlgmr.msra.gmra.mrb[8].mxu1 %v1055_v50 }
 0x490   : > { %3747 = vmatpush1.bf16.msra.mxu0 %v5165_v9  ;;  %3779 = vmatpush1.bf16.msra.mxu1 %v5175_v19 }
 0x491   : > { %3749 = vmatprep.subr.bf16.mxu0 %v5167_v10  ;;  %3781 = vmatprep.subr.bf16.mxu1 %v5181_v27 }
 0x492   : > { %1300 = vmatprep.mubr.f32.mxu0 %v4920_v8  ;;  %1371 = vmatprep.mubr.f32.mxu1 %v4920_v8 }
 0x494   : > { %3751 = vmatpush1.bf16.msra.mxu0 %v5171_v17  ;;  %3783 = vmatpush1.bf16.msra.mxu1 %v5184_v31 }
 0x495   : > { %3753 = vmatprep.subr.bf16.mxu0 %v5178_v23  ;;  %3785 = vmatprep.subr.bf16.mxu1 %v5193_v40 }
 0x498   : > { %3755 = vmatpush1.bf16.msra.mxu0 %v5187_v33  ;;  %3787 = vmatpush1.bf16.msra.mxu1 %v5196_v45 }
 0x499   : > { %3757 = vmatprep.subr.bf16.mxu0 %v5191_v37  ;;  %3789 = vmatprep.subr.bf16.mxu1 %v5202_v49 }
 0x49c   : > { %3759 = vmatpush1.bf16.msra.mxu0 %v5199_v47  ;;  %3791 = vmatpush1.bf16.msra.mxu1 %v5208_v58 }
 0x49d   : > { %3761 = vmatprep.subr.bf16.mxu0 %v5205_v52  ;;  %3793 = vmatprep.subr.bf16.mxu1 %v5214_v61 }
 0x4a0   : > { %3763 = vmatpush1.bf16.msra.mxu0 %v5211_v59  ;;  %3795 = vmatpush1.bf16.msra.mxu1 %v5220_v7 }
 0x4a1   : > { %3765 = vmatprep.subr.bf16.mxu0 %v5217_v0  ;;  %3797 = vmatprep.subr.bf16.mxu1 %v5226_v13 }
 0x4a4   : > { %3767 = vmatpush1.bf16.msra.mxu0 %v5223_v11  ;;  %3799 = vmatpush1.bf16.msra.mxu1 %v5232_v26 }
 0x4a5   : > { %3769 = vmatprep.subr.bf16.mxu0 %v5229_v16  ;;  %3801 = vmatprep.subr.bf16.mxu1 %v5238_v30 }
 0x4a8   : > { %3771 = vmatpush1.bf16.msra.mxu0 %v5235_v28  ;;  %3803 = vmatpush1.bf16.msra.mxu1 %v5244_v41 }
 0x4a9   : > { %3773 = vmatprep.subr.bf16.mxu0 %v5241_v35  ;;  %3805 = vmatprep.subr.bf16.mxu1 %v5250_v43 }
 0x4ac   : > { %3775 = vmatpush1.bf16.msra.mxu0 %v5247_v42  ;;  %3807 = vmatpush1.bf16.msra.mxu1 %v5254_v48 }
 0x4ad   : > { %3809 = vmatprep.subr.bf16.mxu0 %v5161_v4  ;;  %3841 = vmatprep.subr.bf16.mxu1 %v5173_v18 }
 0x562   : > { %v1129_v54 = vpop.f32.mrb[8].mxu0  ;;  %v1200_v55 = vpop.f32.mrb[8].mxu1 }
 0x563   : > { %v1205_v56 = vadd.f32 %v3338_v51, %v1129_v54  ;;  %v1131_v57 = vpop.f32.mrb[9].mxu0  ;;  %v1202_v60 = vpop.f32.mrb[9].mxu1  ;;  %v1207_v3 = vadd.f32 %v3340_v62, %v1200_v55  ;;  %v3344_v51 = vld [vmem:[%s5139_s17 + $0xa0] sm:$0xff]  ;;  %v3346_v62 = vld [vmem:[%s5139_s17 + $0xb0] sm:$0xff] }
 0x564   : > { %v1206_v63 = vadd.f32 %v3339_v53, %v1131_v57  ;;  %v1208_v6 = vadd.f32 %v3341_v5, %v1202_v60  ;;  %v3345_v53 = vld [vmem:[%s5139_s17 + $0xa8] sm:$0xff]  ;;  %v3347_v5 = vld [vmem:[%s5139_s17 + $0xb8] sm:$0xff] }
 0x565   : > { %v1209_v1 = vmul.f32 0.5, %v1205_v56 }
 0x566   : > { %v1213_v2 = vmul.f32 0.5, %v1206_v63  ;;  %v1218_v12 = vmul.f32 0.5, %v1208_v6 }
 0x567   : > { %4572 = vtanh.f32 %v1209_v1 }
 0x568   : > { %4574 = vtanh.f32 %v1213_v2 }
 0x569   : > { %4576 = vtanh.f32 %v1207_v3 }
 0x56a   : > { %4578 = vtanh.f32 %v1218_v12 }
 0x571   : > { %v4573_v14 = vpop.eup %4572 }
 0x572   : > { %v4575_v15 = vpop.eup %4574  ;;  %v1211_v20 = vmul.f32 0.5, %v4573_v14 }
 0x573   : > { %v1215_v21 = vmul.f32 0.5, %v4575_v15  ;;  %v4577_v25 = vpop.eup %4576 }
 0x574   : > { %v1212_v22 = vadd.f32 0.5, %v1211_v20  ;;  %v4579_v38 = vpop.eup %4578 }
 0x575   : > { %v1216_v29 = vadd.f32 0.5, %v1215_v21  ;;  %v1220_v39 = vmul.f32 0.5, %v4579_v38 }
 0x576   : > { %v1225_v32 = vmul.f32 %v4577_v25, %v1212_v22 }
 0x577   : > { %v1224_v34 = vmul.f32 %v3342_v24, %v1216_v29  ;;  %v1221_v44 = vadd.f32 0.5, %v1220_v39  ;;  %v3348_v24 = vld [vmem:[%s5147_s10 + $0x28] sm:$0xff] }
 0x579   : > { %v1226_v36 = vadd.f32 %v1225_v32, %v1224_v34 }
 0x57b   : > { %4580 = vtanh.f32 %v1226_v36 }
 0x585   : > { %v4581_v46 = vpop.eup %4580 }
 0x586   : > { %v1228_v50 = vmul.f32 %v4581_v46, %v1221_v44 }
 0x588   : > { %3343 = vst [vmem:[%s5157_s12 + $0x20] sm:$0xff] %v1228_v50  ;;  %1301 = vmatmul.mubr.f32.vlgmr.msra.gmra.mrb[10].mxu0 %v1228_v50  ;;  %1372 = vmatmul.mubr.f32.vlgmr.msra.gmra.mrb[10].mxu1 %v1228_v50 }
 0x589   : > { %3811 = vmatpush1.bf16.msra.mxu0 %v5165_v9  ;;  %3843 = vmatpush1.bf16.msra.mxu1 %v5175_v19 }
 0x58a   : > { %3813 = vmatprep.subr.bf16.mxu0 %v5167_v10  ;;  %3845 = vmatprep.subr.bf16.mxu1 %v5181_v27 }
 0x58b   : > { %1473 = vmatprep.mubr.f32.mxu0 %v4920_v8  ;;  %1544 = vmatprep.mubr.f32.mxu1 %v4920_v8 }
 0x58d   : > { %3815 = vmatpush1.bf16.msra.mxu0 %v5171_v17  ;;  %3847 = vmatpush1.bf16.msra.mxu1 %v5184_v31 }
 0x58e   : > { %3817 = vmatprep.subr.bf16.mxu0 %v5178_v23  ;;  %3849 = vmatprep.subr.bf16.mxu1 %v5193_v40 }
 0x591   : > { %3819 = vmatpush1.bf16.msra.mxu0 %v5187_v33  ;;  %3851 = vmatpush1.bf16.msra.mxu1 %v5196_v45 }
 0x592   : > { %3821 = vmatprep.subr.bf16.mxu0 %v5191_v37  ;;  %3853 = vmatprep.subr.bf16.mxu1 %v5202_v49 }
 0x595   : > { %3823 = vmatpush1.bf16.msra.mxu0 %v5199_v47  ;;  %3855 = vmatpush1.bf16.msra.mxu1 %v5208_v58 }
 0x596   : > { %3825 = vmatprep.subr.bf16.mxu0 %v5205_v52  ;;  %3857 = vmatprep.subr.bf16.mxu1 %v5214_v61 }
 0x599   : > { %3827 = vmatpush1.bf16.msra.mxu0 %v5211_v59  ;;  %3859 = vmatpush1.bf16.msra.mxu1 %v5220_v7 }
 0x59a   : > { %3829 = vmatprep.subr.bf16.mxu0 %v5217_v0  ;;  %3861 = vmatprep.subr.bf16.mxu1 %v5226_v13 }
 0x59d   : > { %3831 = vmatpush1.bf16.msra.mxu0 %v5223_v11  ;;  %3863 = vmatpush1.bf16.msra.mxu1 %v5232_v26 }
 0x59e   : > { %3833 = vmatprep.subr.bf16.mxu0 %v5229_v16  ;;  %3865 = vmatprep.subr.bf16.mxu1 %v5238_v30 }
 0x5a1   : > { %3835 = vmatpush1.bf16.msra.mxu0 %v5235_v28  ;;  %3867 = vmatpush1.bf16.msra.mxu1 %v5244_v41 }
 0x5a2   : > { %3837 = vmatprep.subr.bf16.mxu0 %v5241_v35  ;;  %3869 = vmatprep.subr.bf16.mxu1 %v5250_v43 }
 0x5a5   : > { %3839 = vmatpush1.bf16.msra.mxu0 %v5247_v42  ;;  %3871 = vmatpush1.bf16.msra.mxu1 %v5254_v48 }
 0x5a6   : > { %3873 = vmatprep.subr.bf16.mxu0 %v5161_v4  ;;  %3905 = vmatprep.subr.bf16.mxu1 %v5173_v18 }
 0x65b   : > { %v1302_v54 = vpop.f32.mrb[10].mxu0  ;;  %v1373_v55 = vpop.f32.mrb[10].mxu1 }
 0x65c   : > { %v1378_v56 = vadd.f32 %v3344_v51, %v1302_v54  ;;  %v1304_v57 = vpop.f32.mrb[11].mxu0  ;;  %v1375_v60 = vpop.f32.mrb[11].mxu1  ;;  %v1380_v3 = vadd.f32 %v3346_v62, %v1373_v55  ;;  %v3350_v51 = vld [vmem:[%s5139_s17 + $0xc0] sm:$0xff]  ;;  %v3352_v62 = vld [vmem:[%s5139_s17 + $0xd0] sm:$0xff] }
 0x65d   : > { %v1379_v63 = vadd.f32 %v3345_v53, %v1304_v57  ;;  %v1381_v6 = vadd.f32 %v3347_v5, %v1375_v60  ;;  %v3351_v53 = vld [vmem:[%s5139_s17 + $0xc8] sm:$0xff]  ;;  %v3353_v5 = vld [vmem:[%s5139_s17 + $0xd8] sm:$0xff] }
 0x65e   : > { %v1382_v1 = vmul.f32 0.5, %v1378_v56 }
 0x65f   : > { %v1386_v2 = vmul.f32 0.5, %v1379_v63  ;;  %v1391_v12 = vmul.f32 0.5, %v1381_v6 }
 0x660   : > { %4582 = vtanh.f32 %v1382_v1 }
 0x661   : > { %4584 = vtanh.f32 %v1386_v2 }
 0x662   : > { %4586 = vtanh.f32 %v1380_v3 }
 0x663   : > { %4588 = vtanh.f32 %v1391_v12 }
 0x66a   : > { %v4583_v14 = vpop.eup %4582 }
 0x66b   : > { %v4585_v15 = vpop.eup %4584  ;;  %v1384_v20 = vmul.f32 0.5, %v4583_v14 }
 0x66c   : > { %v1388_v21 = vmul.f32 0.5, %v4585_v15  ;;  %v4587_v25 = vpop.eup %4586 }
 0x66d   : > { %v1385_v22 = vadd.f32 0.5, %v1384_v20  ;;  %v4589_v38 = vpop.eup %4588 }
 0x66e   : > { %v1389_v29 = vadd.f32 0.5, %v1388_v21  ;;  %v1393_v39 = vmul.f32 0.5, %v4589_v38 }
 0x66f   : > { %v1398_v32 = vmul.f32 %v4587_v25, %v1385_v22 }
 0x670   : > { %v1397_v34 = vmul.f32 %v3348_v24, %v1389_v29  ;;  %v1394_v44 = vadd.f32 0.5, %v1393_v39  ;;  %v3354_v24 = vld [vmem:[%s5147_s10 + $0x30] sm:$0xff] }
 0x672   : > { %v1399_v36 = vadd.f32 %v1398_v32, %v1397_v34 }
 0x674   : > { %4590 = vtanh.f32 %v1399_v36 }
 0x67e   : > { %v4591_v46 = vpop.eup %4590 }
 0x67f   : > { %v1401_v50 = vmul.f32 %v4591_v46, %v1394_v44 }
 0x681   : > { %3349 = vst [vmem:[%s5157_s12 + $0x28] sm:$0xff] %v1401_v50  ;;  %1474 = vmatmul.mubr.f32.vlgmr.msra.gmra.mrb[12].mxu0 %v1401_v50  ;;  %1545 = vmatmul.mubr.f32.vlgmr.msra.gmra.mrb[12].mxu1 %v1401_v50 }
 0x682   : > { %3875 = vmatpush1.bf16.msra.mxu0 %v5165_v9  ;;  %3907 = vmatpush1.bf16.msra.mxu1 %v5175_v19 }
 0x683   : > { %3877 = vmatprep.subr.bf16.mxu0 %v5167_v10  ;;  %3909 = vmatprep.subr.bf16.mxu1 %v5181_v27 }
 0x684   : > { %1646 = vmatprep.mubr.f32.mxu0 %v4920_v8  ;;  %1717 = vmatprep.mubr.f32.mxu1 %v4920_v8 }
 0x686   : > { %3879 = vmatpush1.bf16.msra.mxu0 %v5171_v17  ;;  %3911 = vmatpush1.bf16.msra.mxu1 %v5184_v31 }
 0x687   : > { %3881 = vmatprep.subr.bf16.mxu0 %v5178_v23  ;;  %3913 = vmatprep.subr.bf16.mxu1 %v5193_v40 }
 0x68a   : > { %3883 = vmatpush1.bf16.msra.mxu0 %v5187_v33  ;;  %3915 = vmatpush1.bf16.msra.mxu1 %v5196_v45 }
 0x68b   : > { %3885 = vmatprep.subr.bf16.mxu0 %v5191_v37  ;;  %3917 = vmatprep.subr.bf16.mxu1 %v5202_v49 }
 0x68e   : > { %3887 = vmatpush1.bf16.msra.mxu0 %v5199_v47  ;;  %3919 = vmatpush1.bf16.msra.mxu1 %v5208_v58 }
 0x68f   : > { %3889 = vmatprep.subr.bf16.mxu0 %v5205_v52  ;;  %3921 = vmatprep.subr.bf16.mxu1 %v5214_v61 }
 0x692   : > { %3891 = vmatpush1.bf16.msra.mxu0 %v5211_v59  ;;  %3923 = vmatpush1.bf16.msra.mxu1 %v5220_v7 }
 0x693   : > { %3893 = vmatprep.subr.bf16.mxu0 %v5217_v0  ;;  %3925 = vmatprep.subr.bf16.mxu1 %v5226_v13 }
 0x696   : > { %3895 = vmatpush1.bf16.msra.mxu0 %v5223_v11  ;;  %3927 = vmatpush1.bf16.msra.mxu1 %v5232_v26 }
 0x697   : > { %3897 = vmatprep.subr.bf16.mxu0 %v5229_v16  ;;  %3929 = vmatprep.subr.bf16.mxu1 %v5238_v30 }
 0x69a   : > { %3899 = vmatpush1.bf16.msra.mxu0 %v5235_v28  ;;  %3931 = vmatpush1.bf16.msra.mxu1 %v5244_v41 }
 0x69b   : > { %3901 = vmatprep.subr.bf16.mxu0 %v5241_v35  ;;  %3933 = vmatprep.subr.bf16.mxu1 %v5250_v43 }
 0x69e   : > { %3903 = vmatpush1.bf16.msra.mxu0 %v5247_v42  ;;  %3935 = vmatpush1.bf16.msra.mxu1 %v5254_v48 }
 0x69f   : > { %3937 = vmatprep.subr.bf16.mxu0 %v5161_v4  ;;  %3969 = vmatprep.subr.bf16.mxu1 %v5173_v18 }
 0x754   : > { %v1475_v54 = vpop.f32.mrb[12].mxu0  ;;  %v1546_v55 = vpop.f32.mrb[12].mxu1 }
 0x755   : > { %v1551_v56 = vadd.f32 %v3350_v51, %v1475_v54  ;;  %v1477_v57 = vpop.f32.mrb[13].mxu0  ;;  %v1548_v60 = vpop.f32.mrb[13].mxu1  ;;  %v1553_v3 = vadd.f32 %v3352_v62, %v1546_v55  ;;  %v3356_v51 = vld [vmem:[%s5139_s17 + $0xe0] sm:$0xff]  ;;  %v3358_v62 = vld [vmem:[%s5139_s17 + $0xf0] sm:$0xff] }
 0x756   : > { %v1552_v63 = vadd.f32 %v3351_v53, %v1477_v57  ;;  %v1554_v6 = vadd.f32 %v3353_v5, %v1548_v60  ;;  %v3357_v53 = vld [vmem:[%s5139_s17 + $0xe8] sm:$0xff]  ;;  %v3359_v5 = vld [vmem:[%s5139_s17 + $0xf8] sm:$0xff] }
 0x757   : > { %v1555_v1 = vmul.f32 0.5, %v1551_v56 }
 0x758   : > { %v1559_v2 = vmul.f32 0.5, %v1552_v63  ;;  %v1564_v12 = vmul.f32 0.5, %v1554_v6 }
 0x759   : > { %4592 = vtanh.f32 %v1555_v1 }
 0x75a   : > { %4594 = vtanh.f32 %v1559_v2 }
 0x75b   : > { %4596 = vtanh.f32 %v1553_v3 }
 0x75c   : > { %4598 = vtanh.f32 %v1564_v12 }
 0x763   : > { %v4593_v14 = vpop.eup %4592 }
 0x764   : > { %v4595_v15 = vpop.eup %4594  ;;  %v1557_v20 = vmul.f32 0.5, %v4593_v14 }
 0x765   : > { %v1561_v21 = vmul.f32 0.5, %v4595_v15  ;;  %v4597_v25 = vpop.eup %4596 }
 0x766   : > { %v1558_v22 = vadd.f32 0.5, %v1557_v20  ;;  %v4599_v38 = vpop.eup %4598 }
 0x767   : > { %v1562_v29 = vadd.f32 0.5, %v1561_v21  ;;  %v1566_v39 = vmul.f32 0.5, %v4599_v38 }
 0x768   : > { %v1571_v32 = vmul.f32 %v4597_v25, %v1558_v22 }
 0x769   : > { %v1570_v34 = vmul.f32 %v3354_v24, %v1562_v29  ;;  %v1567_v44 = vadd.f32 0.5, %v1566_v39  ;;  %v3360_v24 = vld [vmem:[%s5147_s10 + $0x38] sm:$0xff] }
 0x76b   : > { %v1572_v36 = vadd.f32 %v1571_v32, %v1570_v34 }
 0x76d   : > { %4600 = vtanh.f32 %v1572_v36 }
 0x777   : > { %v4601_v46 = vpop.eup %4600 }
 0x778   : > { %v1574_v50 = vmul.f32 %v4601_v46, %v1567_v44 }
 0x77a   : > { %3355 = vst [vmem:[%s5157_s12 + $0x30] sm:$0xff] %v1574_v50  ;;  %1647 = vmatmul.mubr.f32.vlgmr.msra.gmra.mrb[14].mxu0 %v1574_v50  ;;  %1718 = vmatmul.mubr.f32.vlgmr.msra.gmra.mrb[14].mxu1 %v1574_v50 }
 0x77b   : > { %3939 = vmatpush1.bf16.msra.mxu0 %v5165_v9  ;;  %3971 = vmatpush1.bf16.msra.mxu1 %v5175_v19 }
 0x77c   : > { %3941 = vmatprep.subr.bf16.mxu0 %v5167_v10  ;;  %3973 = vmatprep.subr.bf16.mxu1 %v5181_v27 }
 0x77d   : > { %1819 = vmatprep.mubr.f32.mxu0 %v4920_v8  ;;  %1890 = vmatprep.mubr.f32.mxu1 %v4920_v8 }
 0x77f   : > { %3943 = vmatpush1.bf16.msra.mxu0 %v5171_v17  ;;  %3975 = vmatpush1.bf16.msra.mxu1 %v5184_v31 }
 0x780   : > { %3945 = vmatprep.subr.bf16.mxu0 %v5178_v23  ;;  %3977 = vmatprep.subr.bf16.mxu1 %v5193_v40 }
 0x783   : > { %3947 = vmatpush1.bf16.msra.mxu0 %v5187_v33  ;;  %3979 = vmatpush1.bf16.msra.mxu1 %v5196_v45 }
 0x784   : > { %3949 = vmatprep.subr.bf16.mxu0 %v5191_v37  ;;  %3981 = vmatprep.subr.bf16.mxu1 %v5202_v49 }
 0x787   : > { %3951 = vmatpush1.bf16.msra.mxu0 %v5199_v47  ;;  %3983 = vmatpush1.bf16.msra.mxu1 %v5208_v58 }
 0x788   : > { %3953 = vmatprep.subr.bf16.mxu0 %v5205_v52  ;;  %3985 = vmatprep.subr.bf16.mxu1 %v5214_v61 }
 0x78b   : > { %3955 = vmatpush1.bf16.msra.mxu0 %v5211_v59  ;;  %3987 = vmatpush1.bf16.msra.mxu1 %v5220_v7 }
 0x78c   : > { %3957 = vmatprep.subr.bf16.mxu0 %v5217_v0  ;;  %3989 = vmatprep.subr.bf16.mxu1 %v5226_v13 }
 0x78f   : > { %3959 = vmatpush1.bf16.msra.mxu0 %v5223_v11  ;;  %3991 = vmatpush1.bf16.msra.mxu1 %v5232_v26 }
 0x790   : > { %3961 = vmatprep.subr.bf16.mxu0 %v5229_v16  ;;  %3993 = vmatprep.subr.bf16.mxu1 %v5238_v30 }
 0x793   : > { %3963 = vmatpush1.bf16.msra.mxu0 %v5235_v28  ;;  %3995 = vmatpush1.bf16.msra.mxu1 %v5244_v41 }
 0x794   : > { %3965 = vmatprep.subr.bf16.mxu0 %v5241_v35  ;;  %3997 = vmatprep.subr.bf16.mxu1 %v5250_v43 }
 0x797   : > { %3967 = vmatpush1.bf16.msra.mxu0 %v5247_v42  ;;  %3999 = vmatpush1.bf16.msra.mxu1 %v5254_v48 }
 0x798   : > { %4001 = vmatprep.subr.bf16.mxu0 %v5161_v4  ;;  %4033 = vmatprep.subr.bf16.mxu1 %v5173_v18 }
 0x84d   : > { %v1648_v54 = vpop.f32.mrb[14].mxu0  ;;  %v1719_v55 = vpop.f32.mrb[14].mxu1 }
 0x84e   : > { %v1724_v56 = vadd.f32 %v3356_v51, %v1648_v54  ;;  %v1650_v57 = vpop.f32.mrb[15].mxu0  ;;  %v1721_v60 = vpop.f32.mrb[15].mxu1  ;;  %v1726_v3 = vadd.f32 %v3358_v62, %v1719_v55  ;;  %v3362_v51 = vld [vmem:[%s5139_s17 + $0x100] sm:$0xff]  ;;  %v3364_v62 = vld [vmem:[%s5139_s17 + $0x110] sm:$0xff] }
 0x84f   : > { %v1725_v63 = vadd.f32 %v3357_v53, %v1650_v57  ;;  %v1727_v6 = vadd.f32 %v3359_v5, %v1721_v60  ;;  %v3363_v53 = vld [vmem:[%s5139_s17 + $0x108] sm:$0xff]  ;;  %v3365_v5 = vld [vmem:[%s5139_s17 + $0x118] sm:$0xff] }
 0x850   : > { %v1728_v1 = vmul.f32 0.5, %v1724_v56 }
 0x851   : > { %v1732_v2 = vmul.f32 0.5, %v1725_v63  ;;  %v1737_v12 = vmul.f32 0.5, %v1727_v6 }
 0x852   : > { %4602 = vtanh.f32 %v1728_v1 }
 0x853   : > { %4604 = vtanh.f32 %v1732_v2 }
 0x854   : > { %4606 = vtanh.f32 %v1726_v3 }
 0x855   : > { %4608 = vtanh.f32 %v1737_v12 }
 0x85c   : > { %v4603_v14 = vpop.eup %4602 }
 0x85d   : > { %v4605_v15 = vpop.eup %4604  ;;  %v1730_v20 = vmul.f32 0.5, %v4603_v14 }
 0x85e   : > { %v1734_v21 = vmul.f32 0.5, %v4605_v15  ;;  %v4607_v25 = vpop.eup %4606 }
 0x85f   : > { %v1731_v22 = vadd.f32 0.5, %v1730_v20  ;;  %v4609_v38 = vpop.eup %4608 }
 0x860   : > { %v1735_v29 = vadd.f32 0.5, %v1734_v21  ;;  %v1739_v39 = vmul.f32 0.5, %v4609_v38 }
 0x861   : > { %v1744_v32 = vmul.f32 %v4607_v25, %v1731_v22 }
 0x862   : > { %v1743_v34 = vmul.f32 %v3360_v24, %v1735_v29  ;;  %v1740_v44 = vadd.f32 0.5, %v1739_v39  ;;  %v3366_v24 = vld [vmem:[%s5147_s10 + $0x40] sm:$0xff] }
 0x864   : > { %v1745_v36 = vadd.f32 %v1744_v32, %v1743_v34 }
 0x866   : > { %4610 = vtanh.f32 %v1745_v36 }
 0x870   : > { %v4611_v46 = vpop.eup %4610 }
 0x871   : > { %v1747_v50 = vmul.f32 %v4611_v46, %v1740_v44 }
 0x873   : > { %3361 = vst [vmem:[%s5157_s12 + $0x38] sm:$0xff] %v1747_v50  ;;  %1820 = vmatmul.mubr.f32.vlgmr.msra.gmra.mrb[16].mxu0 %v1747_v50  ;;  %1891 = vmatmul.mubr.f32.vlgmr.msra.gmra.mrb[16].mxu1 %v1747_v50 }
 0x874   : > { %4003 = vmatpush1.bf16.msra.mxu0 %v5165_v9  ;;  %4035 = vmatpush1.bf16.msra.mxu1 %v5175_v19 }
 0x875   : > { %4005 = vmatprep.subr.bf16.mxu0 %v5167_v10  ;;  %4037 = vmatprep.subr.bf16.mxu1 %v5181_v27 }
 0x876   : > { %1992 = vmatprep.mubr.f32.mxu0 %v4920_v8  ;;  %2063 = vmatprep.mubr.f32.mxu1 %v4920_v8 }
 0x878   : > { %4007 = vmatpush1.bf16.msra.mxu0 %v5171_v17  ;;  %4039 = vmatpush1.bf16.msra.mxu1 %v5184_v31 }
 0x879   : > { %4009 = vmatprep.subr.bf16.mxu0 %v5178_v23  ;;  %4041 = vmatprep.subr.bf16.mxu1 %v5193_v40 }
 0x87c   : > { %4011 = vmatpush1.bf16.msra.mxu0 %v5187_v33  ;;  %4043 = vmatpush1.bf16.msra.mxu1 %v5196_v45 }
 0x87d   : > { %4013 = vmatprep.subr.bf16.mxu0 %v5191_v37  ;;  %4045 = vmatprep.subr.bf16.mxu1 %v5202_v49 }
 0x880   : > { %4015 = vmatpush1.bf16.msra.mxu0 %v5199_v47  ;;  %4047 = vmatpush1.bf16.msra.mxu1 %v5208_v58 }
 0x881   : > { %4017 = vmatprep.subr.bf16.mxu0 %v5205_v52  ;;  %4049 = vmatprep.subr.bf16.mxu1 %v5214_v61 }
 0x884   : > { %4019 = vmatpush1.bf16.msra.mxu0 %v5211_v59  ;;  %4051 = vmatpush1.bf16.msra.mxu1 %v5220_v7 }
 0x885   : > { %4021 = vmatprep.subr.bf16.mxu0 %v5217_v0  ;;  %4053 = vmatprep.subr.bf16.mxu1 %v5226_v13 }
 0x888   : > { %4023 = vmatpush1.bf16.msra.mxu0 %v5223_v11  ;;  %4055 = vmatpush1.bf16.msra.mxu1 %v5232_v26 }
 0x889   : > { %4025 = vmatprep.subr.bf16.mxu0 %v5229_v16  ;;  %4057 = vmatprep.subr.bf16.mxu1 %v5238_v30 }
 0x88c   : > { %4027 = vmatpush1.bf16.msra.mxu0 %v5235_v28  ;;  %4059 = vmatpush1.bf16.msra.mxu1 %v5244_v41 }
 0x88d   : > { %4029 = vmatprep.subr.bf16.mxu0 %v5241_v35  ;;  %4061 = vmatprep.subr.bf16.mxu1 %v5250_v43 }
 0x890   : > { %4031 = vmatpush1.bf16.msra.mxu0 %v5247_v42  ;;  %4063 = vmatpush1.bf16.msra.mxu1 %v5254_v48 }
 0x891   : > { %4065 = vmatprep.subr.bf16.mxu0 %v5161_v4  ;;  %4097 = vmatprep.subr.bf16.mxu1 %v5173_v18 }
 0x946   : > { %v1821_v54 = vpop.f32.mrb[16].mxu0  ;;  %v1892_v55 = vpop.f32.mrb[16].mxu1 }
 0x947   : > { %v1897_v56 = vadd.f32 %v3362_v51, %v1821_v54  ;;  %v1823_v57 = vpop.f32.mrb[17].mxu0  ;;  %v1894_v60 = vpop.f32.mrb[17].mxu1  ;;  %v1899_v3 = vadd.f32 %v3364_v62, %v1892_v55  ;;  %v3368_v51 = vld [vmem:[%s5139_s17 + $0x120] sm:$0xff]  ;;  %v3370_v62 = vld [vmem:[%s5139_s17 + $0x130] sm:$0xff] }
 0x948   : > { %v1898_v63 = vadd.f32 %v3363_v53, %v1823_v57  ;;  %v1900_v6 = vadd.f32 %v3365_v5, %v1894_v60  ;;  %v3369_v53 = vld [vmem:[%s5139_s17 + $0x128] sm:$0xff]  ;;  %v3371_v5 = vld [vmem:[%s5139_s17 + $0x138] sm:$0xff] }
 0x949   : > { %v1901_v1 = vmul.f32 0.5, %v1897_v56 }
 0x94a   : > { %v1905_v2 = vmul.f32 0.5, %v1898_v63  ;;  %v1910_v12 = vmul.f32 0.5, %v1900_v6 }
 0x94b   : > { %4612 = vtanh.f32 %v1901_v1 }
 0x94c   : > { %4614 = vtanh.f32 %v1905_v2 }
 0x94d   : > { %4616 = vtanh.f32 %v1899_v3 }
 0x94e   : > { %4618 = vtanh.f32 %v1910_v12 }
 0x955   : > { %v4613_v14 = vpop.eup %4612 }
 0x956   : > { %v4615_v15 = vpop.eup %4614  ;;  %v1903_v20 = vmul.f32 0.5, %v4613_v14 }
 0x957   : > { %v1907_v21 = vmul.f32 0.5, %v4615_v15  ;;  %v4617_v25 = vpop.eup %4616 }
 0x958   : > { %v1904_v22 = vadd.f32 0.5, %v1903_v20  ;;  %v4619_v38 = vpop.eup %4618 }
 0x959   : > { %v1908_v29 = vadd.f32 0.5, %v1907_v21  ;;  %v1912_v39 = vmul.f32 0.5, %v4619_v38 }
 0x95a   : > { %v1917_v32 = vmul.f32 %v4617_v25, %v1904_v22 }
 0x95b   : > { %v1916_v34 = vmul.f32 %v3366_v24, %v1908_v29  ;;  %v1913_v44 = vadd.f32 0.5, %v1912_v39  ;;  %v3372_v24 = vld [vmem:[%s5147_s10 + $0x48] sm:$0xff] }
 0x95d   : > { %v1918_v36 = vadd.f32 %v1917_v32, %v1916_v34 }
 0x95f   : > { %4620 = vtanh.f32 %v1918_v36 }
 0x969   : > { %v4621_v46 = vpop.eup %4620 }
 0x96a   : > { %v1920_v50 = vmul.f32 %v4621_v46, %v1913_v44 }
 0x96c   : > { %3367 = vst [vmem:[%s5157_s12 + $0x40] sm:$0xff] %v1920_v50  ;;  %1993 = vmatmul.mubr.f32.vlgmr.msra.gmra.mrb[18].mxu0 %v1920_v50  ;;  %2064 = vmatmul.mubr.f32.vlgmr.msra.gmra.mrb[18].mxu1 %v1920_v50 }
 0x96d   : > { %4067 = vmatpush1.bf16.msra.mxu0 %v5165_v9  ;;  %4099 = vmatpush1.bf16.msra.mxu1 %v5175_v19 }
 0x96e   : > { %4069 = vmatprep.subr.bf16.mxu0 %v5167_v10  ;;  %4101 = vmatprep.subr.bf16.mxu1 %v5181_v27 }
 0x96f   : > { %2165 = vmatprep.mubr.f32.mxu0 %v4920_v8  ;;  %2236 = vmatprep.mubr.f32.mxu1 %v4920_v8 }
 0x971   : > { %4071 = vmatpush1.bf16.msra.mxu0 %v5171_v17  ;;  %4103 = vmatpush1.bf16.msra.mxu1 %v5184_v31 }
 0x972   : > { %4073 = vmatprep.subr.bf16.mxu0 %v5178_v23  ;;  %4105 = vmatprep.subr.bf16.mxu1 %v5193_v40 }
 0x975   : > { %4075 = vmatpush1.bf16.msra.mxu0 %v5187_v33  ;;  %4107 = vmatpush1.bf16.msra.mxu1 %v5196_v45 }
 0x976   : > { %4077 = vmatprep.subr.bf16.mxu0 %v5191_v37  ;;  %4109 = vmatprep.subr.bf16.mxu1 %v5202_v49 }
 0x979   : > { %4079 = vmatpush1.bf16.msra.mxu0 %v5199_v47  ;;  %4111 = vmatpush1.bf16.msra.mxu1 %v5208_v58 }
 0x97a   : > { %4081 = vmatprep.subr.bf16.mxu0 %v5205_v52  ;;  %4113 = vmatprep.subr.bf16.mxu1 %v5214_v61 }
 0x97d   : > { %4083 = vmatpush1.bf16.msra.mxu0 %v5211_v59  ;;  %4115 = vmatpush1.bf16.msra.mxu1 %v5220_v7 }
 0x97e   : > { %4085 = vmatprep.subr.bf16.mxu0 %v5217_v0  ;;  %4117 = vmatprep.subr.bf16.mxu1 %v5226_v13 }
 0x981   : > { %4087 = vmatpush1.bf16.msra.mxu0 %v5223_v11  ;;  %4119 = vmatpush1.bf16.msra.mxu1 %v5232_v26 }
 0x982   : > { %4089 = vmatprep.subr.bf16.mxu0 %v5229_v16  ;;  %4121 = vmatprep.subr.bf16.mxu1 %v5238_v30 }
 0x985   : > { %4091 = vmatpush1.bf16.msra.mxu0 %v5235_v28  ;;  %4123 = vmatpush1.bf16.msra.mxu1 %v5244_v41 }
 0x986   : > { %4093 = vmatprep.subr.bf16.mxu0 %v5241_v35  ;;  %4125 = vmatprep.subr.bf16.mxu1 %v5250_v43 }
 0x989   : > { %4095 = vmatpush1.bf16.msra.mxu0 %v5247_v42  ;;  %4127 = vmatpush1.bf16.msra.mxu1 %v5254_v48 }
 0x98a   : > { %4129 = vmatprep.subr.bf16.mxu0 %v5161_v4  ;;  %4161 = vmatprep.subr.bf16.mxu1 %v5173_v18 }
 0xa3f   : > { %v1994_v54 = vpop.f32.mrb[18].mxu0  ;;  %v2065_v55 = vpop.f32.mrb[18].mxu1 }
 0xa40   : > { %v2070_v56 = vadd.f32 %v3368_v51, %v1994_v54  ;;  %v1996_v57 = vpop.f32.mrb[19].mxu0  ;;  %v2067_v60 = vpop.f32.mrb[19].mxu1  ;;  %v2072_v3 = vadd.f32 %v3370_v62, %v2065_v55  ;;  %v3374_v51 = vld [vmem:[%s5139_s17 + $0x140] sm:$0xff]  ;;  %v3376_v62 = vld [vmem:[%s5139_s17 + $0x150] sm:$0xff] }
 0xa41   : > { %v2071_v63 = vadd.f32 %v3369_v53, %v1996_v57  ;;  %v2073_v6 = vadd.f32 %v3371_v5, %v2067_v60  ;;  %v3375_v53 = vld [vmem:[%s5139_s17 + $0x148] sm:$0xff]  ;;  %v3377_v5 = vld [vmem:[%s5139_s17 + $0x158] sm:$0xff] }
 0xa42   : > { %v2074_v1 = vmul.f32 0.5, %v2070_v56 }
 0xa43   : > { %v2078_v2 = vmul.f32 0.5, %v2071_v63  ;;  %v2083_v12 = vmul.f32 0.5, %v2073_v6 }
 0xa44   : > { %4622 = vtanh.f32 %v2074_v1 }
 0xa45   : > { %4624 = vtanh.f32 %v2078_v2 }
 0xa46   : > { %4626 = vtanh.f32 %v2072_v3 }
 0xa47   : > { %4628 = vtanh.f32 %v2083_v12 }
 0xa4e   : > { %v4623_v14 = vpop.eup %4622 }
 0xa4f   : > { %v4625_v15 = vpop.eup %4624  ;;  %v2076_v20 = vmul.f32 0.5, %v4623_v14 }
 0xa50   : > { %v2080_v21 = vmul.f32 0.5, %v4625_v15  ;;  %v4627_v25 = vpop.eup %4626 }
 0xa51   : > { %v2077_v22 = vadd.f32 0.5, %v2076_v20  ;;  %v4629_v38 = vpop.eup %4628 }
 0xa52   : > { %v2081_v29 = vadd.f32 0.5, %v2080_v21  ;;  %v2085_v39 = vmul.f32 0.5, %v4629_v38 }
 0xa53   : > { %v2090_v32 = vmul.f32 %v4627_v25, %v2077_v22 }
 0xa54   : > { %v2089_v34 = vmul.f32 %v3372_v24, %v2081_v29  ;;  %v2086_v44 = vadd.f32 0.5, %v2085_v39  ;;  %v3378_v24 = vld [vmem:[%s5147_s10 + $0x50] sm:$0xff] }
 0xa56   : > { %v2091_v36 = vadd.f32 %v2090_v32, %v2089_v34 }
 0xa58   : > { %4630 = vtanh.f32 %v2091_v36 }
 0xa62   : > { %v4631_v46 = vpop.eup %4630 }
 0xa63   : > { %v2093_v50 = vmul.f32 %v4631_v46, %v2086_v44 }
 0xa65   : > { %3373 = vst [vmem:[%s5157_s12 + $0x48] sm:$0xff] %v2093_v50  ;;  %2166 = vmatmul.mubr.f32.vlgmr.msra.gmra.mrb[20].mxu0 %v2093_v50  ;;  %2237 = vmatmul.mubr.f32.vlgmr.msra.gmra.mrb[20].mxu1 %v2093_v50 }
 0xa66   : > { %4131 = vmatpush1.bf16.msra.mxu0 %v5165_v9  ;;  %4163 = vmatpush1.bf16.msra.mxu1 %v5175_v19 }
 0xa67   : > { %4133 = vmatprep.subr.bf16.mxu0 %v5167_v10  ;;  %4165 = vmatprep.subr.bf16.mxu1 %v5181_v27 }
 0xa68   : > { %2338 = vmatprep.mubr.f32.mxu0 %v4920_v8  ;;  %2409 = vmatprep.mubr.f32.mxu1 %v4920_v8 }
 0xa6a   : > { %4135 = vmatpush1.bf16.msra.mxu0 %v5171_v17  ;;  %4167 = vmatpush1.bf16.msra.mxu1 %v5184_v31 }
 0xa6b   : > { %4137 = vmatprep.subr.bf16.mxu0 %v5178_v23  ;;  %4169 = vmatprep.subr.bf16.mxu1 %v5193_v40 }
 0xa6e   : > { %4139 = vmatpush1.bf16.msra.mxu0 %v5187_v33  ;;  %4171 = vmatpush1.bf16.msra.mxu1 %v5196_v45 }
 0xa6f   : > { %4141 = vmatprep.subr.bf16.mxu0 %v5191_v37  ;;  %4173 = vmatprep.subr.bf16.mxu1 %v5202_v49 }
 0xa72   : > { %4143 = vmatpush1.bf16.msra.mxu0 %v5199_v47  ;;  %4175 = vmatpush1.bf16.msra.mxu1 %v5208_v58 }
 0xa73   : > { %4145 = vmatprep.subr.bf16.mxu0 %v5205_v52  ;;  %4177 = vmatprep.subr.bf16.mxu1 %v5214_v61 }
 0xa76   : > { %4147 = vmatpush1.bf16.msra.mxu0 %v5211_v59  ;;  %4179 = vmatpush1.bf16.msra.mxu1 %v5220_v7 }
 0xa77   : > { %4149 = vmatprep.subr.bf16.mxu0 %v5217_v0  ;;  %4181 = vmatprep.subr.bf16.mxu1 %v5226_v13 }
 0xa7a   : > { %4151 = vmatpush1.bf16.msra.mxu0 %v5223_v11  ;;  %4183 = vmatpush1.bf16.msra.mxu1 %v5232_v26 }
 0xa7b   : > { %4153 = vmatprep.subr.bf16.mxu0 %v5229_v16  ;;  %4185 = vmatprep.subr.bf16.mxu1 %v5238_v30 }
 0xa7e   : > { %4155 = vmatpush1.bf16.msra.mxu0 %v5235_v28  ;;  %4187 = vmatpush1.bf16.msra.mxu1 %v5244_v41 }
 0xa7f   : > { %4157 = vmatprep.subr.bf16.mxu0 %v5241_v35  ;;  %4189 = vmatprep.subr.bf16.mxu1 %v5250_v43 }
 0xa82   : > { %4159 = vmatpush1.bf16.msra.mxu0 %v5247_v42  ;;  %4191 = vmatpush1.bf16.msra.mxu1 %v5254_v48 }
 0xa83   : > { %4193 = vmatprep.subr.bf16.mxu0 %v5161_v4  ;;  %4225 = vmatprep.subr.bf16.mxu1 %v5173_v18 }
 0xb38   : > { %v2167_v54 = vpop.f32.mrb[20].mxu0  ;;  %v2238_v55 = vpop.f32.mrb[20].mxu1 }
 0xb39   : > { %v2243_v56 = vadd.f32 %v3374_v51, %v2167_v54  ;;  %v2169_v57 = vpop.f32.mrb[21].mxu0  ;;  %v2240_v60 = vpop.f32.mrb[21].mxu1  ;;  %v2245_v3 = vadd.f32 %v3376_v62, %v2238_v55  ;;  %v3380_v51 = vld [vmem:[%s5139_s17 + $0x160] sm:$0xff]  ;;  %v3382_v62 = vld [vmem:[%s5139_s17 + $0x170] sm:$0xff] }
 0xb3a   : > { %v2244_v63 = vadd.f32 %v3375_v53, %v2169_v57  ;;  %v2246_v6 = vadd.f32 %v3377_v5, %v2240_v60  ;;  %v3381_v53 = vld [vmem:[%s5139_s17 + $0x168] sm:$0xff]  ;;  %v3383_v5 = vld [vmem:[%s5139_s17 + $0x178] sm:$0xff] }
 0xb3b   : > { %v2247_v1 = vmul.f32 0.5, %v2243_v56 }
 0xb3c   : > { %v2251_v2 = vmul.f32 0.5, %v2244_v63  ;;  %v2256_v12 = vmul.f32 0.5, %v2246_v6 }
 0xb3d   : > { %4632 = vtanh.f32 %v2247_v1 }
 0xb3e   : > { %4634 = vtanh.f32 %v2251_v2 }
 0xb3f   : > { %4636 = vtanh.f32 %v2245_v3 }
 0xb40   : > { %4638 = vtanh.f32 %v2256_v12 }
 0xb47   : > { %v4633_v14 = vpop.eup %4632 }
 0xb48   : > { %v4635_v15 = vpop.eup %4634  ;;  %v2249_v20 = vmul.f32 0.5, %v4633_v14 }
 0xb49   : > { %v2253_v21 = vmul.f32 0.5, %v4635_v15  ;;  %v4637_v25 = vpop.eup %4636 }
 0xb4a   : > { %v2250_v22 = vadd.f32 0.5, %v2249_v20  ;;  %v4639_v38 = vpop.eup %4638 }
 0xb4b   : > { %v2254_v29 = vadd.f32 0.5, %v2253_v21  ;;  %v2258_v39 = vmul.f32 0.5, %v4639_v38 }
 0xb4c   : > { %v2263_v32 = vmul.f32 %v4637_v25, %v2250_v22 }
 0xb4d   : > { %v2262_v34 = vmul.f32 %v3378_v24, %v2254_v29  ;;  %v2259_v44 = vadd.f32 0.5, %v2258_v39  ;;  %v3384_v24 = vld [vmem:[%s5147_s10 + $0x58] sm:$0xff] }
 0xb4f   : > { %v2264_v36 = vadd.f32 %v2263_v32, %v2262_v34 }
 0xb51   : > { %4640 = vtanh.f32 %v2264_v36 }
 0xb5b   : > { %v4641_v46 = vpop.eup %4640 }
 0xb5c   : > { %v2266_v50 = vmul.f32 %v4641_v46, %v2259_v44 }
 0xb5e   : > { %3379 = vst [vmem:[%s5157_s12 + $0x50] sm:$0xff] %v2266_v50  ;;  %2339 = vmatmul.mubr.f32.vlgmr.msra.gmra.mrb[22].mxu0 %v2266_v50  ;;  %2410 = vmatmul.mubr.f32.vlgmr.msra.gmra.mrb[22].mxu1 %v2266_v50 }
 0xb5f   : > { %4195 = vmatpush1.bf16.msra.mxu0 %v5165_v9  ;;  %4227 = vmatpush1.bf16.msra.mxu1 %v5175_v19 }
 0xb60   : > { %4197 = vmatprep.subr.bf16.mxu0 %v5167_v10  ;;  %4229 = vmatprep.subr.bf16.mxu1 %v5181_v27 }
 0xb61   : > { %2511 = vmatprep.mubr.f32.mxu0 %v4920_v8  ;;  %2582 = vmatprep.mubr.f32.mxu1 %v4920_v8 }
 0xb63   : > { %4199 = vmatpush1.bf16.msra.mxu0 %v5171_v17  ;;  %4231 = vmatpush1.bf16.msra.mxu1 %v5184_v31 }
 0xb64   : > { %4201 = vmatprep.subr.bf16.mxu0 %v5178_v23  ;;  %4233 = vmatprep.subr.bf16.mxu1 %v5193_v40 }
 0xb67   : > { %4203 = vmatpush1.bf16.msra.mxu0 %v5187_v33  ;;  %4235 = vmatpush1.bf16.msra.mxu1 %v5196_v45 }
 0xb68   : > { %4205 = vmatprep.subr.bf16.mxu0 %v5191_v37  ;;  %4237 = vmatprep.subr.bf16.mxu1 %v5202_v49 }
 0xb6b   : > { %4207 = vmatpush1.bf16.msra.mxu0 %v5199_v47  ;;  %4239 = vmatpush1.bf16.msra.mxu1 %v5208_v58 }
 0xb6c   : > { %4209 = vmatprep.subr.bf16.mxu0 %v5205_v52  ;;  %4241 = vmatprep.subr.bf16.mxu1 %v5214_v61 }
 0xb6f   : > { %4211 = vmatpush1.bf16.msra.mxu0 %v5211_v59  ;;  %4243 = vmatpush1.bf16.msra.mxu1 %v5220_v7 }
 0xb70   : > { %4213 = vmatprep.subr.bf16.mxu0 %v5217_v0  ;;  %4245 = vmatprep.subr.bf16.mxu1 %v5226_v13 }
 0xb73   : > { %4215 = vmatpush1.bf16.msra.mxu0 %v5223_v11  ;;  %4247 = vmatpush1.bf16.msra.mxu1 %v5232_v26 }
 0xb74   : > { %4217 = vmatprep.subr.bf16.mxu0 %v5229_v16  ;;  %4249 = vmatprep.subr.bf16.mxu1 %v5238_v30 }
 0xb77   : > { %4219 = vmatpush1.bf16.msra.mxu0 %v5235_v28  ;;  %4251 = vmatpush1.bf16.msra.mxu1 %v5244_v41 }
 0xb78   : > { %4221 = vmatprep.subr.bf16.mxu0 %v5241_v35  ;;  %4253 = vmatprep.subr.bf16.mxu1 %v5250_v43 }
 0xb7b   : > { %4223 = vmatpush1.bf16.msra.mxu0 %v5247_v42  ;;  %4255 = vmatpush1.bf16.msra.mxu1 %v5254_v48 }
 0xb7c   : > { %4257 = vmatprep.subr.bf16.mxu0 %v5161_v4  ;;  %4289 = vmatprep.subr.bf16.mxu1 %v5173_v18 }
 0xc31   : > { %v2340_v54 = vpop.f32.mrb[22].mxu0  ;;  %v2411_v55 = vpop.f32.mrb[22].mxu1 }
 0xc32   : > { %v2416_v56 = vadd.f32 %v3380_v51, %v2340_v54  ;;  %v2342_v57 = vpop.f32.mrb[23].mxu0  ;;  %v2413_v60 = vpop.f32.mrb[23].mxu1  ;;  %v2418_v3 = vadd.f32 %v3382_v62, %v2411_v55  ;;  %v3386_v51 = vld [vmem:[%s5139_s17 + $0x180] sm:$0xff]  ;;  %v3388_v62 = vld [vmem:[%s5139_s17 + $0x190] sm:$0xff] }
 0xc33   : > { %v2417_v63 = vadd.f32 %v3381_v53, %v2342_v57  ;;  %v2419_v6 = vadd.f32 %v3383_v5, %v2413_v60  ;;  %v3387_v53 = vld [vmem:[%s5139_s17 + $0x188] sm:$0xff]  ;;  %v3389_v5 = vld [vmem:[%s5139_s17 + $0x198] sm:$0xff] }
 0xc34   : > { %v2420_v1 = vmul.f32 0.5, %v2416_v56 }
 0xc35   : > { %v2424_v2 = vmul.f32 0.5, %v2417_v63  ;;  %v2429_v12 = vmul.f32 0.5, %v2419_v6 }
 0xc36   : > { %4642 = vtanh.f32 %v2420_v1 }
 0xc37   : > { %4644 = vtanh.f32 %v2424_v2 }
 0xc38   : > { %4646 = vtanh.f32 %v2418_v3 }
 0xc39   : > { %4648 = vtanh.f32 %v2429_v12 }
 0xc40   : > { %v4643_v14 = vpop.eup %4642 }
 0xc41   : > { %v4645_v15 = vpop.eup %4644  ;;  %v2422_v20 = vmul.f32 0.5, %v4643_v14 }
 0xc42   : > { %v2426_v21 = vmul.f32 0.5, %v4645_v15  ;;  %v4647_v25 = vpop.eup %4646 }
 0xc43   : > { %v2423_v22 = vadd.f32 0.5, %v2422_v20  ;;  %v4649_v38 = vpop.eup %4648 }
 0xc44   : > { %v2427_v29 = vadd.f32 0.5, %v2426_v21  ;;  %v2431_v39 = vmul.f32 0.5, %v4649_v38 }
 0xc45   : > { %v2436_v32 = vmul.f32 %v4647_v25, %v2423_v22 }
 0xc46   : > { %v2435_v34 = vmul.f32 %v3384_v24, %v2427_v29  ;;  %v2432_v44 = vadd.f32 0.5, %v2431_v39  ;;  %v3390_v24 = vld [vmem:[%s5147_s10 + $0x60] sm:$0xff] }
 0xc48   : > { %v2437_v36 = vadd.f32 %v2436_v32, %v2435_v34 }
 0xc4a   : > { %4650 = vtanh.f32 %v2437_v36 }
 0xc54   : > { %v4651_v46 = vpop.eup %4650 }
 0xc55   : > { %v2439_v50 = vmul.f32 %v4651_v46, %v2432_v44 }
 0xc57   : > { %3385 = vst [vmem:[%s5157_s12 + $0x58] sm:$0xff] %v2439_v50  ;;  %2512 = vmatmul.mubr.f32.vlgmr.msra.gmra.mrb[24].mxu0 %v2439_v50  ;;  %2583 = vmatmul.mubr.f32.vlgmr.msra.gmra.mrb[24].mxu1 %v2439_v50 }
 0xc58   : > { %4259 = vmatpush1.bf16.msra.mxu0 %v5165_v9  ;;  %4291 = vmatpush1.bf16.msra.mxu1 %v5175_v19 }
 0xc59   : > { %4261 = vmatprep.subr.bf16.mxu0 %v5167_v10  ;;  %4293 = vmatprep.subr.bf16.mxu1 %v5181_v27 }
 0xc5a   : > { %2684 = vmatprep.mubr.f32.mxu0 %v4920_v8  ;;  %2755 = vmatprep.mubr.f32.mxu1 %v4920_v8 }
 0xc5c   : > { %4263 = vmatpush1.bf16.msra.mxu0 %v5171_v17  ;;  %4295 = vmatpush1.bf16.msra.mxu1 %v5184_v31 }
 0xc5d   : > { %4265 = vmatprep.subr.bf16.mxu0 %v5178_v23  ;;  %4297 = vmatprep.subr.bf16.mxu1 %v5193_v40 }
 0xc60   : > { %4267 = vmatpush1.bf16.msra.mxu0 %v5187_v33  ;;  %4299 = vmatpush1.bf16.msra.mxu1 %v5196_v45 }
 0xc61   : > { %4269 = vmatprep.subr.bf16.mxu0 %v5191_v37  ;;  %4301 = vmatprep.subr.bf16.mxu1 %v5202_v49 }
 0xc64   : > { %4271 = vmatpush1.bf16.msra.mxu0 %v5199_v47  ;;  %4303 = vmatpush1.bf16.msra.mxu1 %v5208_v58 }
 0xc65   : > { %4273 = vmatprep.subr.bf16.mxu0 %v5205_v52  ;;  %4305 = vmatprep.subr.bf16.mxu1 %v5214_v61 }
 0xc68   : > { %4275 = vmatpush1.bf16.msra.mxu0 %v5211_v59  ;;  %4307 = vmatpush1.bf16.msra.mxu1 %v5220_v7 }
 0xc69   : > { %4277 = vmatprep.subr.bf16.mxu0 %v5217_v0  ;;  %4309 = vmatprep.subr.bf16.mxu1 %v5226_v13 }
 0xc6c   : > { %4279 = vmatpush1.bf16.msra.mxu0 %v5223_v11  ;;  %4311 = vmatpush1.bf16.msra.mxu1 %v5232_v26 }
 0xc6d   : > { %4281 = vmatprep.subr.bf16.mxu0 %v5229_v16  ;;  %4313 = vmatprep.subr.bf16.mxu1 %v5238_v30 }
 0xc70   : > { %4283 = vmatpush1.bf16.msra.mxu0 %v5235_v28  ;;  %4315 = vmatpush1.bf16.msra.mxu1 %v5244_v41 }
 0xc71   : > { %4285 = vmatprep.subr.bf16.mxu0 %v5241_v35  ;;  %4317 = vmatprep.subr.bf16.mxu1 %v5250_v43 }
 0xc74   : > { %4287 = vmatpush1.bf16.msra.mxu0 %v5247_v42  ;;  %4319 = vmatpush1.bf16.msra.mxu1 %v5254_v48 }
 0xc75   : > { %4321 = vmatprep.subr.bf16.mxu0 %v5161_v4  ;;  %4353 = vmatprep.subr.bf16.mxu1 %v5173_v18 }
 0xd2a   : > { %v2513_v54 = vpop.f32.mrb[24].mxu0  ;;  %v2584_v55 = vpop.f32.mrb[24].mxu1 }
 0xd2b   : > { %v2589_v56 = vadd.f32 %v3386_v51, %v2513_v54  ;;  %v2515_v57 = vpop.f32.mrb[25].mxu0  ;;  %v2586_v60 = vpop.f32.mrb[25].mxu1  ;;  %v2591_v3 = vadd.f32 %v3388_v62, %v2584_v55  ;;  %v3392_v51 = vld [vmem:[%s5139_s17 + $0x1a0] sm:$0xff]  ;;  %v3394_v62 = vld [vmem:[%s5139_s17 + $0x1b0] sm:$0xff] }
 0xd2c   : > { %v2590_v63 = vadd.f32 %v3387_v53, %v2515_v57  ;;  %v2592_v6 = vadd.f32 %v3389_v5, %v2586_v60  ;;  %v3393_v53 = vld [vmem:[%s5139_s17 + $0x1a8] sm:$0xff]  ;;  %v3395_v5 = vld [vmem:[%s5139_s17 + $0x1b8] sm:$0xff] }
 0xd2d   : > { %v2593_v1 = vmul.f32 0.5, %v2589_v56 }
 0xd2e   : > { %v2597_v2 = vmul.f32 0.5, %v2590_v63  ;;  %v2602_v12 = vmul.f32 0.5, %v2592_v6 }
 0xd2f   : > { %4652 = vtanh.f32 %v2593_v1 }
 0xd30   : > { %4654 = vtanh.f32 %v2597_v2 }
 0xd31   : > { %4656 = vtanh.f32 %v2591_v3 }
 0xd32   : > { %4658 = vtanh.f32 %v2602_v12 }
 0xd39   : > { %v4653_v14 = vpop.eup %4652 }
 0xd3a   : > { %v4655_v15 = vpop.eup %4654  ;;  %v2595_v20 = vmul.f32 0.5, %v4653_v14 }
 0xd3b   : > { %v2599_v21 = vmul.f32 0.5, %v4655_v15  ;;  %v4657_v25 = vpop.eup %4656 }
 0xd3c   : > { %v2596_v22 = vadd.f32 0.5, %v2595_v20  ;;  %v4659_v38 = vpop.eup %4658 }
 0xd3d   : > { %v2600_v29 = vadd.f32 0.5, %v2599_v21  ;;  %v2604_v39 = vmul.f32 0.5, %v4659_v38  ;;  %v3396_v21 = vld [vmem:[%s5147_s10 + $0x68] sm:$0xff] }
 0xd3e   : > { %v2609_v32 = vmul.f32 %v4657_v25, %v2596_v22 }
 0xd3f   : > { %v2608_v34 = vmul.f32 %v3390_v24, %v2600_v29  ;;  %v2605_v44 = vadd.f32 0.5, %v2604_v39 }
 0xd41   : > { %v2610_v36 = vadd.f32 %v2609_v32, %v2608_v34 }
 0xd43   : > { %4660 = vtanh.f32 %v2610_v36 }
 0xd4d   : > { %v4661_v46 = vpop.eup %4660 }
 0xd4e   : > { %v2612_v50 = vmul.f32 %v4661_v46, %v2605_v44  ;;  %v3404_v46 = vld [vmem:[%s5139_s17 + $0x1e0] sm:$0xff] }
 0xd50   : > { %3391 = vst [vmem:[%s5157_s12 + $0x60] sm:$0xff] %v2612_v50  ;;  %2685 = vmatmul.mubr.f32.vlgmr.msra.gmra.mrb[26].mxu0 %v2612_v50  ;;  %2756 = vmatmul.mubr.f32.vlgmr.msra.gmra.mrb[26].mxu1 %v2612_v50  ;;  %v3405_v50 = vld [vmem:[%s5139_s17 + $0x1e8] sm:$0xff] }
 0xd51   : > { %4323 = vmatpush1.bf16.msra.mxu0 %v5165_v9  ;;  %4355 = vmatpush1.bf16.msra.mxu1 %v5175_v19 }
 0xd52   : > { %4325 = vmatprep.subr.bf16.mxu0 %v5167_v10  ;;  %4357 = vmatprep.subr.bf16.mxu1 %v5181_v27 }
 0xd53   : > { %2857 = vmatprep.mubr.f32.mxu0 %v4920_v8  ;;  %2928 = vmatprep.mubr.f32.mxu1 %v4920_v8 }
 0xd55   : > { %4327 = vmatpush1.bf16.msra.mxu0 %v5171_v17  ;;  %4359 = vmatpush1.bf16.msra.mxu1 %v5184_v31 }
 0xd56   : > { %4329 = vmatprep.subr.bf16.mxu0 %v5178_v23  ;;  %4361 = vmatprep.subr.bf16.mxu1 %v5193_v40 }
 0xd59   : > { %4331 = vmatpush1.bf16.msra.mxu0 %v5187_v33  ;;  %4363 = vmatpush1.bf16.msra.mxu1 %v5196_v45 }
 0xd5a   : > { %4333 = vmatprep.subr.bf16.mxu0 %v5191_v37  ;;  %4365 = vmatprep.subr.bf16.mxu1 %v5202_v49 }
 0xd5d   : > { %4335 = vmatpush1.bf16.msra.mxu0 %v5199_v47  ;;  %4367 = vmatpush1.bf16.msra.mxu1 %v5208_v58 }
 0xd5e   : > { %4337 = vmatprep.subr.bf16.mxu0 %v5205_v52  ;;  %4369 = vmatprep.subr.bf16.mxu1 %v5214_v61 }
 0xd61   : > { %4339 = vmatpush1.bf16.msra.mxu0 %v5211_v59  ;;  %4371 = vmatpush1.bf16.msra.mxu1 %v5220_v7 }
 0xd62   : > { %4341 = vmatprep.subr.bf16.mxu0 %v5217_v0  ;;  %4373 = vmatprep.subr.bf16.mxu1 %v5226_v13 }
 0xd65   : > { %4343 = vmatpush1.bf16.msra.mxu0 %v5223_v11  ;;  %4375 = vmatpush1.bf16.msra.mxu1 %v5232_v26 }
 0xd66   : > { %4345 = vmatprep.subr.bf16.mxu0 %v5229_v16  ;;  %4377 = vmatprep.subr.bf16.mxu1 %v5238_v30 }
 0xd69   : > { %4347 = vmatpush1.bf16.msra.mxu0 %v5235_v28  ;;  %4379 = vmatpush1.bf16.msra.mxu1 %v5244_v41 }
 0xd6a   : > { %4349 = vmatprep.subr.bf16.mxu0 %v5241_v35  ;;  %4381 = vmatprep.subr.bf16.mxu1 %v5250_v43 }
 0xd6d   : > { %4351 = vmatpush1.bf16.msra.mxu0 %v5247_v42  ;;  %4383 = vmatpush1.bf16.msra.mxu1 %v5254_v48 }
 0xd6e   : > { %4385 = vmatprep.subr.bf16.mxu0 %v5161_v4  ;;  %4417 = vmatprep.subr.bf16.mxu1 %v5173_v18 }
 0xe23   : > { %v2686_v54 = vpop.f32.mrb[26].mxu0  ;;  %v2757_v55 = vpop.f32.mrb[26].mxu1 }
 0xe24   : > { %v2762_v56 = vadd.f32 %v3392_v51, %v2686_v54  ;;  %v2688_v57 = vpop.f32.mrb[27].mxu0  ;;  %v2759_v60 = vpop.f32.mrb[27].mxu1  ;;  %v2764_v3 = vadd.f32 %v3394_v62, %v2757_v55 }
 0xe25   : > { %v2763_v63 = vadd.f32 %v3393_v53, %v2688_v57  ;;  %v2765_v4 = vadd.f32 %v3395_v5, %v2759_v60  ;;  %v3406_v57 = vld [vmem:[%s5139_s17 + $0x1f0] sm:$0xff] }
 0xe26   : > { %v2766_v1 = vmul.f32 0.5, %v2762_v56 }
 0xe27   : > { %v2770_v2 = vmul.f32 0.5, %v2763_v63  ;;  %v2775_v6 = vmul.f32 0.5, %v2765_v4 }
 0xe28   : > { %4662 = vtanh.f32 %v2766_v1 }
 0xe29   : > { %4664 = vtanh.f32 %v2770_v2  ;;  %v3407_v2 = vld [vmem:[%s5139_s17 + $0x1f8] sm:$0xff] }
 0xe2a   : > { %4666 = vtanh.f32 %v2764_v3 }
 0xe2b   : > { %4668 = vtanh.f32 %v2775_v6 }
 0xe32   : > { %v4663_v18 = vpop.eup %4662 }
 0xe33   : > { %v4665_v12 = vpop.eup %4664  ;;  %v2768_v14 = vmul.f32 0.5, %v4663_v18 }
 0xe34   : > { %v2772_v15 = vmul.f32 0.5, %v4665_v12  ;;  %v4667_v22 = vpop.eup %4666 }
 0xe35   : > { %v2769_v20 = vadd.f32 0.5, %v2768_v14  ;;  %v4669_v34 = vpop.eup %4668 }
 0xe36   : > { %v2773_v24 = vadd.f32 0.5, %v2772_v15  ;;  %v2777_v36 = vmul.f32 0.5, %v4669_v34  ;;  %v3408_v15 = vld [vmem:[%s5147_s10 + $0x78] sm:$0xff] }
 0xe37   : > { %v2782_v25 = vmul.f32 %v4667_v22, %v2769_v20 }
 0xe38   : > { %v2781_v29 = vmul.f32 %v3396_v21, %v2773_v24  ;;  %v2778_v38 = vadd.f32 0.5, %v2777_v36 }
 0xe3a   : > { %v2783_v32 = vadd.f32 %v2782_v25, %v2781_v29 }
 0xe3c   : > { %4670 = vtanh.f32 %v2783_v32 }
 0xe46   : > { %v4671_v39 = vpop.eup %4670 }
 0xe47   : > { %v2785_v44 = vmul.f32 %v4671_v39, %v2778_v38 }
 0xe49   : > { %3397 = vst [vmem:[%s5157_s12 + $0x68] sm:$0xff] %v2785_v44  ;;  %2858 = vmatmul.mubr.f32.vlgmr.msra.gmra.mrb[28].mxu0 %v2785_v44  ;;  %2929 = vmatmul.mubr.f32.vlgmr.msra.gmra.mrb[28].mxu1 %v2785_v44 }
 0xe4a   : > { %4387 = vmatpush1.bf16.msra.mxu0 %v5165_v9  ;;  %4419 = vmatpush1.bf16.msra.mxu1 %v5175_v19  ;;  %v3399_v9 = vld [vmem:[%s5139_s17 + $0x1c8] sm:$0xff] }
 0xe4b   : > { %4389 = vmatprep.subr.bf16.mxu0 %v5167_v10  ;;  %4421 = vmatprep.subr.bf16.mxu1 %v5181_v27 }
 0xe4c   : > { %3030 = vmatprep.mubr.f32.mxu0 %v4920_v8  ;;  %3101 = vmatprep.mubr.f32.mxu1 %v4920_v8  ;;  %v3398_v8 = vld [vmem:[%s5139_s17 + $0x1c0] sm:$0xff] }
 0xe4e   : > { %4391 = vmatpush1.bf16.msra.mxu0 %v5171_v17  ;;  %4423 = vmatpush1.bf16.msra.mxu1 %v5184_v31  ;;  %v3400_v31 = vld [vmem:[%s5139_s17 + $0x1d0] sm:$0xff] }
 0xe4f   : > { %4393 = vmatprep.subr.bf16.mxu0 %v5178_v23  ;;  %4425 = vmatprep.subr.bf16.mxu1 %v5193_v40 }
 0xe52   : > { %4395 = vmatpush1.bf16.msra.mxu0 %v5187_v33  ;;  %4427 = vmatpush1.bf16.msra.mxu1 %v5196_v45 }
 0xe53   : > { %4397 = vmatprep.subr.bf16.mxu0 %v5191_v37  ;;  %4429 = vmatprep.subr.bf16.mxu1 %v5202_v49 }
 0xe56   : > { %4399 = vmatpush1.bf16.msra.mxu0 %v5199_v47  ;;  %4431 = vmatpush1.bf16.msra.mxu1 %v5208_v58  ;;  %v3401_v47 = vld [vmem:[%s5139_s17 + $0x1d8] sm:$0xff] }
 0xe57   : > { %4401 = vmatprep.subr.bf16.mxu0 %v5205_v52  ;;  %4433 = vmatprep.subr.bf16.mxu1 %v5214_v61 }
 0xe5a   : > { %4403 = vmatpush1.bf16.msra.mxu0 %v5211_v59  ;;  %4435 = vmatpush1.bf16.msra.mxu1 %v5220_v7 }
 0xe5b   : > { %4405 = vmatprep.subr.bf16.mxu0 %v5217_v0  ;;  %4437 = vmatprep.subr.bf16.mxu1 %v5226_v13 }
 0xe5e   : > { %4407 = vmatpush1.bf16.msra.mxu0 %v5223_v11  ;;  %4439 = vmatpush1.bf16.msra.mxu1 %v5232_v26  ;;  %v3402_v11 = vld [vmem:[%s5147_s10 + $0x70] sm:$0xff] }
 0xe5f   : > { %4409 = vmatprep.subr.bf16.mxu0 %v5229_v16  ;;  %4441 = vmatprep.subr.bf16.mxu1 %v5238_v30 }
 0xe62   : > { %4411 = vmatpush1.bf16.msra.mxu0 %v5235_v28  ;;  %4443 = vmatpush1.bf16.msra.mxu1 %v5244_v41 }
 0xe63   : > { %4413 = vmatprep.subr.bf16.mxu0 %v5241_v35  ;;  %4445 = vmatprep.subr.bf16.mxu1 %v5250_v43 }
 0xe66   : > { %4415 = vmatpush1.bf16.msra.mxu0 %v5247_v42  ;;  %4447 = vmatpush1.bf16.msra.mxu1 %v5254_v48 }
 0xf1c   : > { %v2859_v10 = vpop.f32.mrb[28].mxu0  ;;  %v2930_v17 = vpop.f32.mrb[28].mxu1 }
 0xf1d   : > { %v2935_v19 = vadd.f32 %v3398_v8, %v2859_v10  ;;  %v2861_v23 = vpop.f32.mrb[29].mxu0  ;;  %v2932_v27 = vpop.f32.mrb[29].mxu1  ;;  %v2937_v45 = vadd.f32 %v3400_v31, %v2930_v17 }
 0xf1e   : > { %v2936_v33 = vadd.f32 %v3399_v9, %v2861_v23  ;;  %v2938_v49 = vadd.f32 %v3401_v47, %v2932_v27 }
 0xf1f   : > { %v2939_v37 = vmul.f32 0.5, %v2935_v19 }
 0xf20   : > { %v2943_v40 = vmul.f32 0.5, %v2936_v33  ;;  %v2948_v52 = vmul.f32 0.5, %v2938_v49 }
 0xf21   : > { %4672 = vtanh.f32 %v2939_v37 }
 0xf22   : > { %4674 = vtanh.f32 %v2943_v40 }
 0xf23   : > { %4676 = vtanh.f32 %v2937_v45 }
 0xf24   : > { %4678 = vtanh.f32 %v2948_v52 }
 0xf2b   : > { %v4673_v58 = vpop.eup %4672 }
 0xf2c   : > { %v4675_v59 = vpop.eup %4674  ;;  %v2941_v61 = vmul.f32 0.5, %v4673_v58 }
 0xf2d   : > { %v2945_v0 = vmul.f32 0.5, %v4675_v59  ;;  %v4677_v13 = vpop.eup %4676 }
 0xf2e   : > { %v2942_v7 = vadd.f32 0.5, %v2941_v61  ;;  %v4679_v35 = vpop.eup %4678 }
 0xf2f   : > { %v2946_v16 = vadd.f32 0.5, %v2945_v0  ;;  %v2950_v41 = vmul.f32 0.5, %v4679_v35 }
 0xf30   : > { %v2955_v26 = vmul.f32 %v4677_v13, %v2942_v7 }
 0xf31   : > { %v2954_v28 = vmul.f32 %v3402_v11, %v2946_v16  ;;  %v2951_v42 = vadd.f32 0.5, %v2950_v41 }
 0xf33   : > { %v2956_v30 = vadd.f32 %v2955_v26, %v2954_v28 }
 0xf35   : > { %4680 = vtanh.f32 %v2956_v30 }
 0xf3f   : > { %v4681_v43 = vpop.eup %4680 }
 0xf40   : > { %v2958_v48 = vmul.f32 %v4681_v43, %v2951_v42 }
 0xf42   : > { %3403 = vst [vmem:[%s5157_s12 + $0x70] sm:$0xff] %v2958_v48  ;;  %3031 = vmatmul.mubr.f32.vlgmr.msra.gmra.mrb[30].mxu0 %v2958_v48  ;;  %3102 = vmatmul.mubr.f32.vlgmr.msra.gmra.mrb[30].mxu1 %v2958_v48 }
0x1015   : > { %v3032_v51 = vpop.f32.mrb[30].mxu0  ;;  %v3103_v53 = vpop.f32.mrb[30].mxu1 }
0x1016   : > { %v3108_v54 = vadd.f32 %v3404_v46, %v3032_v51  ;;  %v3034_v55 = vpop.f32.mrb[31].mxu0  ;;  %v3105_v56 = vpop.f32.mrb[31].mxu1  ;;  %v3110_v1 = vadd.f32 %v3406_v57, %v3103_v53 }
0x1017   : > { %v3109_v60 = vadd.f32 %v3405_v50, %v3034_v55  ;;  %v3111_v3 = vadd.f32 %v3407_v2, %v3105_v56 }
0x1018   : > { %v3112_v62 = vmul.f32 0.5, %v3108_v54 }
0x1019   : > { %v3116_v63 = vmul.f32 0.5, %v3109_v60  ;;  %v3121_v5 = vmul.f32 0.5, %v3111_v3 }
0x101a   : > { %4682 = vtanh.f32 %v3112_v62 }
0x101b   : > { %4684 = vtanh.f32 %v3116_v63 }
0x101c   : > { %4686 = vtanh.f32 %v3110_v1 }
0x101d   : > { %4688 = vtanh.f32 %v3121_v5 }
0x1024   : > { %v4683_v4 = vpop.eup %4682 }
0x1025   : > { %v4685_v6 = vpop.eup %4684  ;;  %v3114_v18 = vmul.f32 0.5, %v4683_v4 }
0x1026   : > { %v3118_v12 = vmul.f32 0.5, %v4685_v6  ;;  %v4687_v20 = vpop.eup %4686 }
0x1027   : > { %v3115_v14 = vadd.f32 0.5, %v3114_v18  ;;  %v4689_v29 = vpop.eup %4688 }
0x1028   : > { %v3119_v21 = vadd.f32 0.5, %v3118_v12  ;;  %v3123_v32 = vmul.f32 0.5, %v4689_v29 }
0x1029   : > { %v3128_v22 = vmul.f32 %v4687_v20, %v3115_v14 }
0x102a   : > { %v3127_v24 = vmul.f32 %v3408_v15, %v3119_v21  ;;  %v3124_v34 = vadd.f32 0.5, %v3123_v32 }
0x102c   : > { %v3129_v25 = vadd.f32 %v3128_v22, %v3127_v24 }
0x102e   : > { %4690 = vtanh.f32 %v3129_v25  ;;  %3140 = vst [vmem:[#allocation12] sm:$0xff] (!%p3410_p7), %v3129_v25 }
0x1035   : > { %3138 = sbr.rel (%p3410_p7) target bundleno = 4157 (0x103d), region = 52 }
0x1038   : > { %v4691_v36 = vpop.eup %4690 }
0x1039   : > { %v3131_v38 = vmul.f32 %v4691_v36, %v3124_v34 }
0x103b   : > { %3409 = vst [vmem:[%s5157_s12 + $0x78] sm:$0xff] %v3131_v38  ;;  %3134 = vst [vmem:[#allocation2] sm:$0xff] %v3131_v38 }
0x103c   : > { %3139 = vst [vmem:[#allocation10] sm:$0xff] %v3131_v38 }
0x103d PF: > { %s4921_s24 = smov [#allocation10]   ;;  %s3423_s7 = sshll.u32 %s4977_s22, 11 }
0x103e   : > { %s3169_s29 = sshll.u32 %s4921_s24, 4  ;;  %s5870_s23 = scalar_lea.hbm %s5959_s3, %s3423_s7  ;;  %s3170_s29 = int_to_ptr.vmem [resolvable:$true] %s3169_s29 }
0x103f   : > { %s4780_s27 = scalar_lea.vmem %s3170_s29, 128  ;;  %p5983_p1 = scmp.eq.s32.totalorder %s4977_s22, 3 }
0x1040   : > { %p4781_p10 = scmp.ne.s32.totalorder %s3170_s29, %s4780_s27  ;;  %p4787_p6 = scmp.lt.s32.totalorder %s3170_s29, %s3170_s29 }
0x1041   : > { %p4788_p8 = scmp.lt.s32.totalorder %s4780_s27, %s4780_s27 }
0x1042   : > { %p4782_p5 = pnand %p4781_p10, %p5983_p1 }
0x1043   : > { %p4789_p9 = por %p4788_p8, %p4787_p6 }
0x1044   : > { %p4783_p2 = pneg %p4782_p5 }
0x1046   : > { %p4790_p0 = pnand %p4789_p9, %p4783_p2 }
0x1048   : > { %4793 = shalt.err (!%p4790_p0)
}
0x1049   : > { %s4794_s15 = scalar_lea.hbm %s5960_s4, 128  ;;  %p5984_p11 = pmov %p5983_p1 }
0x104a   : > { %p4795_p4 = scmp.ne.s32.totalorder %s5960_s4, %s4794_s15  ;;  %p4800_p7 = scmp.lt.u32.totalorder %s4794_s15, %s5960_s4 }
0x104c   : > { %p4796_p13 = pnand %p4795_p4, %p5984_p11 }
0x104e   : > { %p4797_p3 = pneg %p4796_p13 }
0x1050   : > { %p4802_p10 = pnand %p4800_p7, %p4797_p3 }
0x1052   : > { %4805 = shalt.err (!%p4802_p10)
}
0x1053   : > { %4458 = dma.vmem_to_hbm [thread:$0]  (%p5983_p1), %s3170_s29, 128, %s5960_s4, [#allocation11]  }
0x1054   : > { %s3155_s10 = sshll.u32 %s5157_s12, 4  ;;  %s3142_s24 = scalar_lea.sflag [#allocation5], %s5135_s6  ;;  %s5891_s10 = int_to_ptr.vmem [resolvable:$true] %s3155_s10 }
0x1055   : > { %s4806_s7 = scalar_lea.vmem %s5891_s10, 2048  ;;  %s4922_s13 = smov [#allocation9]  }
0x1056   : > { %p4807_p5 = scmp.ne.s32.totalorder %s5891_s10, %s4806_s7  ;;  %s4810_s0 = sshll.u32 %s4922_s13, 4  ;;  %s4811_s0 = int_to_ptr.vmem [resolvable:$false] %s4810_s0 }
0x1057   : > { %s4812_s27 = scalar_lea.vmem %s4811_s0, 4096  ;;  %p4813_p8 = scmp.lt.s32.totalorder %s5891_s10, %s4811_s0 }
0x1058   : > { %p4808_p2 = pnand %p4807_p5, %p5043_p12  ;;  %p4814_p9 = scmp.lt.s32.totalorder %s4812_s27, %s4806_s7 }
0x105a   : > { %p4809_p6 = pneg %p4808_p2  ;;  %p4815_p0 = por %p4814_p9, %p4813_p8 }
0x105c   : > { %p4816_p4 = pnand %p4815_p0, %p4809_p6 }
0x105e   : > { %4819 = shalt.err (!%p4816_p4)
}
0x105f   : > { %s4820_s12 = scalar_lea.hbm %s5870_s23, 2048  ;;  %s4824_s8 = scalar_lea.hbm %s5959_s3, 8192 }
0x1060   : > { %p4821_p11 = scmp.ne.s32.totalorder %s5870_s23, %s4820_s12  ;;  %p4825_p7 = scmp.lt.u32.totalorder %s5870_s23, %s5959_s3 }
0x1061   : > { %p4826_p10 = scmp.lt.u32.totalorder %s4824_s8, %s4820_s12  ;;  %p4828_p5 = scmp.lt.u32.totalorder %s4820_s12, %s5870_s23 }
0x1062   : > { %p4822_p13 = pnand %p4821_p11, %p5043_p12 }
0x1063   : > { %p4827_p1 = por %p4826_p10, %p4825_p7 }
0x1064   : > { %p4823_p3 = pneg %p4822_p13 }
0x1065   : > { %p4829_p2 = por %p4828_p5, %p4827_p1 }
0x1067   : > { %p4830_p6 = pnand %p4829_p2, %p4823_p3 }
0x1069   : > { %4833 = shalt.err (!%p4830_p6)
}
0x106a   : > { %s4923_s16 = smov 128   ;;  %s4924_s17 = smov 8  }
0x106b   : > { %4456 = dma.vmem_to_hbm [thread:$0]  (%p5043_p12), %s5891_s10, 2048, %s5870_s23, %s3142_s24, %s4923_s16, %s4923_s16, %s4924_s17  }
0x106c   : > { %s4925_s2 = smov [#allocation12]   ;;  %p5985_p9 = scmp.eq.s32.totalorder %s4977_s22, 3 }
0x106d   : > { %s3180_s26 = sshll.u32 %s4925_s2, 4  ;;  %s3181_s26 = int_to_ptr.vmem [resolvable:$true] %s3180_s26 }
0x106e   : > { %s4834_s14 = scalar_lea.vmem %s3181_s26, 128  ;;  %p4841_p11 = scmp.lt.s32.totalorder %s3181_s26, %s3181_s26 }
0x106f   : > { %p4835_p8 = scmp.ne.s32.totalorder %s3181_s26, %s4834_s14  ;;  %p4842_p13 = scmp.lt.s32.totalorder %s4834_s14, %s4834_s14 }
0x1071   : > { %p4836_p0 = pnand %p4835_p8, %p5985_p9  ;;  %p4843_p3 = por %p4842_p13, %p4841_p11 }
0x1073   : > { %p4837_p4 = pneg %p4836_p0 }
0x1075   : > { %p4844_p7 = pnand %p4843_p3, %p4837_p4 }
0x1077   : > { %4847 = shalt.err (!%p4844_p7)
}
0x1078   : > { %s4848_s9 = scalar_lea.hbm %s5961_s5, 128  ;;  %p5986_p10 = pmov %p5985_p9 }
0x1079   : > { %p4849_p12 = scmp.ne.s32.totalorder %s5961_s5, %s4848_s9  ;;  %p4854_p2 = scmp.lt.u32.totalorder %s4848_s9, %s5961_s5 }
0x107b   : > { %p4850_p1 = pnand %p4849_p12, %p5986_p10 }
0x107d   : > { %p4851_p5 = pneg %p4850_p1 }
0x107f   : > { %p4856_p6 = pnand %p4854_p2, %p4851_p5 }
0x1081   : > { %4859 = shalt.err (!%p4856_p6)
}
0x1082   : > { %p5987_p8 = pmov %p5985_p9 }
0x1084   : > { %4460 = dma.vmem_to_hbm [thread:$0]  (%p5987_p8), %s3181_s26, 128, %s5961_s5, [#allocation11]  }
0x1085   : > { %p5988_p9 = pmov %p5987_p8 }
0x1086   : > { %p5989_p0 = pmov %p5987_p8 }
0x1087   : > { %4889 = dma.done.wait (%p5988_p9), [#allocation11], 256  }
0x1088   : > { %4891 = vsyncadd (%p5989_p0), [#allocation11], 4294967040 }
0x1089 PF: > { %p4488_p4 = scmp.ge.s32.totalorder %s4910_s21, 2  ;;  %s3200_s12 = sand.u32 1, %s4898_s18  }
0x108a   : > { %p5990_p11 = scmp.ne.s32.totalorder %s5968_s25, 0  ;;  %s3201_s29 = scalar_lea.sflag [#allocation5], %s3200_s12 }
0x108c   : > { %p4478_p13 = pnand %p4488_p4, %p5990_p11 }
0x108e   : > { %4893 = dma.done.wait (!%p4478_p13), %s3201_s29, 2048  }
0x108f   : > { %4895 = vsyncadd (!%p4478_p13), %s3201_s29, 4294965248  ;;  %s5991_s28 = sld [smem:[#allocation18_spill]]  ;;  %p23_p3 = scmp.ge.s32.totalorder %s5010_s30, 6  }
0x1090   : > { %s5992_s18 = smov %s4902_s19  ;;  %s5993_s19 = smov %s4906_s20 }
0x1091   : > { %s5995_s21 = smov %s5010_s30  ;;  %25 = sbr.rel (!%p23_p3) target bundleno = 11 (0xb), region = 163 }
0x1095   : > { %s5994_s20 = smov %s5991_s28 }
0x1098   :  { %3206 = vsyncpa [#allocation4], 1 }
0x1099   :  { %3208 = vsyncpa [#allocation4 + $0x1], 1 }
0x109a   :  { %3209 = vsyncpa [#allocation7], 1 }
0x109b   :  { %3211 = vsyncpa [#allocation7 + $0x1], 1 }
0x109c   :  { %3212 = vsyncpa [#allocation5], 1 }
0x109d   :  { %3214 = vsyncpa [#allocation5 + $0x1], 1 }
0x109e   :  { %3215 = vsyncpa [#allocation11], 1 }

</bundles_post_ra>
